<compile_context>
chip_gen: v7x
topology: tpu7x:2x2x1
jax: 0.10.0
libtpu: 0.0.40
codegen_flags: <defaults>
</compile_context>

<pallas_src>
import functools

import jax
import jax.numpy as jnp
from jax.experimental import pallas as pl
from jax.experimental.pallas import tpu as pltpu


_VMEM = pl.BlockSpec(memory_space=pltpu.MemorySpace.VMEM)


# ----------------------------------------------------------------------------
# Fused forward kernel
# ----------------------------------------------------------------------------
def _fused_vae_kernel(
    # ---- inputs ----
    x_ref,                 # (1, C, L)
    w1_ref, b1_ref,        # (16, K1*C), (16, 1)        conv1 (im2col layout)
    sel1_ref,              # (L1-1, P1)                 even-column pool selector
    w2_ref, b2_ref,        # (8, K2*16), (8, 1)         merged conv21/conv22
    wE_ref, bE_ref,        # (4, L2-1, 20), (1, 20)     enc Linear w/ pool+flatten folded
    wD_ref, bD_ref,        # (4, 20, F), (4, F)         dec Linear, view(1,4,-1) folded
    wt1_ref, bt1_ref,      # (16, K2*4), (16, 1)        tconv1 as conv (flipped)
    wt2_ref, bt2_ref,      # (C, K3*16), (C, 1)         tconv2 as conv (flipped)
    # ---- outputs ----
    y_ref, mu_ref, lv_ref, # (1, C, L), (1, 20), (1, 20)
    # ---- VMEM scratch ----
    col1, col2, col3, col4, pad1, pad2,
    *, C, F, K1, K2, K3, L, L1, P1, L2, L3):
    f32 = jnp.float32

    # ------------------ encoder: conv1 -> ReLU -> MaxPool(2,2) ------------------
    x = x_ref[0]                                        # (C, L)
    for k in range(K1):                                 # im2col (tap-major, chan-minor)
        col1[k * C:(k + 1) * C, :] = x[:, k:k + L1]
    a1 = jnp.dot(w1_ref[...], col1[...], preferred_element_type=f32) + b1_ref[...]
    a1 = jnp.maximum(a1, 0.0)                           # (16, L1)
    m1 = jnp.maximum(a1[:, :L1 - 1], a1[:, 1:L1])       # adjacent-pair max
    h = jnp.dot(m1, sel1_ref[...], preferred_element_type=f32)   # (16, P1) pooled

    # ---- merged conv21/conv22 -> ReLU; pool + Flatten folded into enc Linear ----
    for k in range(K2):
        col2[k * 16:(k + 1) * 16, :] = h[:, k:k + L2]
    a2 = jnp.dot(w2_ref[...], col2[...], preferred_element_type=f32) + b2_ref[...]
    a2 = jnp.maximum(a2, 0.0)                           # (8, L2) rows: b1c0,b2c0,b1c1,...
    m2 = jnp.maximum(a2[:, :L2 - 1], a2[:, 1:L2])       # (8, L2-1)
    ml = jnp.zeros((2, 20), f32) + bE_ref[...]          # row0 -> mu, row1 -> logvar
    for c in range(4):
        ml = ml + jnp.dot(m2[2 * c:2 * c + 2, :], wE_ref[c], preferred_element_type=f32)
    mu_ref[...] = ml[0:1]
    lv_ref[...] = ml[1:2]

    # ----------- reparameterize: eval mode / use_var=False  =>  z = mu -----------
    # TODO(synk): training-mode sampling (mu + exp(logvar/2) * randn) not implemented.
    z = ml[0:1]                                         # (1, 20)

    # -------------- decoder: Linear -> ReLU, written as (4, F) rows --------------
    pad1[...] = jnp.zeros((4, F + 2 * (K2 - 1)), f32)   # in-kernel zero padding
    for c in range(4):
        row = jnp.dot(z, wD_ref[c], preferred_element_type=f32) + bD_ref[c:c + 1, :]
        pad1[c:c + 1, K2 - 1:K2 - 1 + F] = jnp.maximum(row, 0.0)

    # -------- ConvTranspose1d(4,16,11) == conv on padded input, flipped taps -----
    hp = pad1[...]                                      # (4, F + 20)
    for k in range(K2):
        col3[k * 4:(k + 1) * 4, :] = hp[:, k:k + L3]
    a3 = jnp.dot(wt1_ref[...], col3[...], preferred_element_type=f32) + bt1_ref[...]
    a3 = jnp.maximum(a3, 0.0)                           # (16, L3)

    # -------- ConvTranspose1d(16,C,31) == conv on padded input, flipped taps -----
    pad2[...] = jnp.zeros((16, L3 + 2 * (K3 - 1)), f32)
    pad2[:, K3 - 1:K3 - 1 + L3] = a3
    ap = pad2[...]                                      # (16, L3 + 60)
    for k in range(K3):
        col4[k * 16:(k + 1) * 16, :] = ap[:, k:k + L]
    y = jnp.dot(wt2_ref[...], col4[...], preferred_element_type=f32) + bt2_ref[...]
    # nn.Dropout(p=0) is the identity.
    y_ref[0] = y                                        # (C, L)


# ----------------------------------------------------------------------------
# Wrapper: single pallas_call for the whole forward
# ----------------------------------------------------------------------------
def make_forward(inp_channel, mult):
    C = inp_channel
    F = 160 + 200 * (mult - 1)      # encoder Linear input size ("flat")
    K1, K2, K3 = 21, 11, 31
    L = F + 40                      # input length implied by the architecture
    L1 = L - K1 + 1                 # conv1 output length
    P1 = L1 // 2                    # after MaxPool(2,2)
    L2 = P1 - K2 + 1                # conv21/22 output length (== F // 2)
    L3 = F + K2 - 1                 # tconv1 output length

    kernel = functools.partial(_fused_vae_kernel, C=C, F=F, K1=K1, K2=K2, K3=K3,
                               L=L, L1=L1, P1=P1, L2=L2, L3=L3)
    call = pl.pallas_call(
        kernel,
        out_shape=(jax.ShapeDtypeStruct((1, C, L), jnp.float32),
                   jax.ShapeDtypeStruct((1, 20), jnp.float32),
                   jax.ShapeDtypeStruct((1, 20), jnp.float32)),
        in_specs=[_VMEM] * 14,
        out_specs=(_VMEM, _VMEM, _VMEM),
        scratch_shapes=[
            pltpu.VMEM((K1 * C, L1), jnp.float32),            # conv1 im2col
            pltpu.VMEM((K2 * 16, L2), jnp.float32),           # conv2 im2col
            pltpu.VMEM((K2 * 4, L3), jnp.float32),            # tconv1 im2col
            pltpu.VMEM((K3 * 16, L), jnp.float32),            # tconv2 im2col
            pltpu.VMEM((4, F + 2 * (K2 - 1)), jnp.float32),   # padded dec Linear out
            pltpu.VMEM((16, L3 + 2 * (K3 - 1)), jnp.float32), # padded tconv1 out
        ],
    )

    @jax.jit
    def forward(params, I):
        """I: (1, C, L) -> (y: (1, C, L), mu: (1, 20), logvar: (1, 20))."""
        return call(I.astype(jnp.float32),
                    params["w1"], params["b1"], params["sel1"],
                    params["w2"], params["b2"],
                    params["wE"], params["bE"],
                    params["wD"], params["bD"],
                    params["wt1"], params["bt1"],
                    params["wt2"], params["bt2"])

    return forward


# ----------------------------------------------------------------------------
# Parameters: PyTorch-layout init + one-time re-layout to kernel layouts
# ----------------------------------------------------------------------------
def init_raw_params(key, inp_channel, mult):
    """PyTorch-layout parameters with nn.Conv1d / nn.Linear default init bounds."""
    F = 160 + 200 * (mult - 1)

    def u(k, shape, fan_in):
        bound = float(fan_in) ** -0.5
        return jax.random.uniform(k, shape, jnp.float32, -bound, bound)

    ks = jax.random.split(key, 14)
    return {
        "conv1_w":  u(ks[0],  (16, inp_channel, 21), inp_channel * 21),
        "conv1_b":  u(ks[1],  (16,),                 inp_channel * 21),
        "conv21_w": u(ks[2],  (4, 16, 11),           16 * 11),
        "conv21_b": u(ks[3],  (4,),                  16 * 11),
        "conv22_w": u(ks[4],  (4, 16, 11),           16 * 11),
        "conv22_b": u(ks[5],  (4,),                  16 * 11),
        "enc_lin_w": u(ks[6], (20, F),               F),
        "enc_lin_b": u(ks[7], (20,),                 F),
        "dec_lin_w": u(ks[8], (F * 4, 20),           20),
        "dec_lin_b": u(ks[9], (F * 4,),              20),
        "tconv1_w": u(ks[10], (4, 16, 11),           4 * 11),
        "tconv1_b": u(ks[11], (16,),                 4 * 11),
        "tconv2_w": u(ks[12], (16, inp_channel, 31), 16 * 31),
        "tconv2_b": u(ks[13], (inp_channel,),        16 * 31),
    }


def prepare_params(raw, inp_channel, mult):
    """One-time re-layout of PyTorch-style weights into kernel-ready layouts."""
    C = inp_channel
    F = 160 + 200 * (mult - 1)
    K1, K2, K3 = 21, 11, 31
    L = F + 40
    L1 = L - K1 + 1
    P1 = L1 // 2
    L2 = P1 - K2 + 1

    def conv_flat(w):                       # (Cout, Cin, K) -> (Cout, K*Cin) im2col layout
        Cout, Cin, K = w.shape
        return jnp.transpose(w, (0, 2, 1)).reshape(Cout, K * Cin)

    def tconv_to_conv(w):                   # ConvTranspose1d (Cin, Cout, K) -> conv (Cout, Cin, K)
        return jnp.flip(jnp.transpose(w, (1, 0, 2)), axis=-1)

    # Merge conv21/conv22 with interleaved output channels (branch1, branch2, ...).
    w2m = jnp.stack([raw["conv21_w"], raw["conv22_w"]], axis=1).reshape(8, 16, K2)
    b2m = jnp.stack([raw["conv21_b"], raw["conv22_b"]], axis=1).reshape(8)

    # Even-column selection matrix implementing MaxPool(2,2) after the pair-max.
    sel1 = jnp.zeros((L1 - 1, P1), jnp.float32)
    sel1 = sel1.at[2 * jnp.arange(P1), jnp.arange(P1)].set(1.0)

    # Encoder Linear with the second MaxPool + Flatten folded in:
    # wE[c, 2p, :] = enc_lin_w.T[c*(F//4) + p, :]; odd rows stay zero.
    wEt = raw["enc_lin_w"].T.reshape(4, F // 4, 20)
    wE = jnp.zeros((4, L2 - 1, 20), jnp.float32).at[:, 0::2, :].set(wEt)

    return {
        "w1": conv_flat(raw["conv1_w"]), "b1": raw["conv1_b"].reshape(16, 1),
        "sel1": sel1,
        "w2": conv_flat(w2m), "b2": b2m.reshape(8, 1),
        "wE": wE, "bE": raw["enc_lin_b"].reshape(1, 20),
        "wD": raw["dec_lin_w"].reshape(4, F, 20).transpose(0, 2, 1),
        "bD": raw["dec_lin_b"].reshape(4, F),
        "wt1": conv_flat(tconv_to_conv(raw["tconv1_w"])), "bt1": raw["tconv1_b"].reshape(16, 1),
        "wt2": conv_flat(tconv_to_conv(raw["tconv2_w"])), "bt2": raw["tconv2_b"].reshape(C, 1),
    }


# ----------------------------------------------------------------------------
if __name__ == "__main__":
    inp_channel, mult = 4, 1
    F = 160 + 200 * (mult - 1)
    L = F + 40                                  # = 200, length implied by the module

    key = jax.random.PRNGKey(0)
    kp, kx = jax.random.split(key)
    raw = init_raw_params(kp, inp_channel, mult)
    params = prepare_params(raw, inp_channel, mult)   # one-time weight re-layout
    I = jax.random.normal(kx, (1, inp_channel, L), jnp.float32)

    forward = make_forward(inp_channel, mult)
    y, mu, logvar = forward(params, I)
    jax.block_until_ready((y, mu, logvar))

    assert y.shape == (1, inp_channel, L), y.shape
    assert mu.shape == (1, 20) and logvar.shape == (1, 20)
    assert bool(jnp.all(jnp.isfinite(y)))
    assert bool(jnp.all(jnp.isfinite(mu))) and bool(jnp.all(jnp.isfinite(logvar)))
    print("KERNEL_OK")
</pallas_src>

<mosaic_0001>
module attributes {stable_mosaic.version = 11 : i64} {
  func.func @_fused_vae_kernel(%arg0: memref<1x4x200xf32, #tpu.memory_space<vmem>>, %arg1: memref<16x84xf32, #tpu.memory_space<vmem>>, %arg2: memref<16x1xf32, #tpu.memory_space<vmem>>, %arg3: memref<179x90xf32, #tpu.memory_space<vmem>>, %arg4: memref<8x176xf32, #tpu.memory_space<vmem>>, %arg5: memref<8x1xf32, #tpu.memory_space<vmem>>, %arg6: memref<4x79x20xf32, #tpu.memory_space<vmem>>, %arg7: memref<1x20xf32, #tpu.memory_space<vmem>>, %arg8: memref<4x20x160xf32, #tpu.memory_space<vmem>>, %arg9: memref<4x160xf32, #tpu.memory_space<vmem>>, %arg10: memref<16x44xf32, #tpu.memory_space<vmem>>, %arg11: memref<16x1xf32, #tpu.memory_space<vmem>>, %arg12: memref<4x496xf32, #tpu.memory_space<vmem>>, %arg13: memref<4x1xf32, #tpu.memory_space<vmem>>, %arg14: memref<1x4x200xf32, #tpu.memory_space<vmem>>, %arg15: memref<1x20xf32, #tpu.memory_space<vmem>>, %arg16: memref<1x20xf32, #tpu.memory_space<vmem>>, %arg17: memref<84x180xf32, #tpu.memory_space<vmem>>, %arg18: memref<176x80xf32, #tpu.memory_space<vmem>>, %arg19: memref<44x170xf32, #tpu.memory_space<vmem>>, %arg20: memref<496x200xf32, #tpu.memory_space<vmem>>, %arg21: memref<4x180xf32, #tpu.memory_space<vmem>>, %arg22: memref<16x230xf32, #tpu.memory_space<vmem>>) attributes {dimension_semantics = [], scalar_prefetch = 0 : i64, scratch_operands = 6 : i64, tpu.core_type = #tpu.core_type<tc>} {
    %c0 = arith.constant 0 : index
    %c0_0 = arith.constant 0 : index
    %c0_1 = arith.constant 0 : index
    %0 = vector.load %arg0[%c0, %c0_0, %c0_1] : memref<1x4x200xf32, #tpu.memory_space<vmem>>, vector<1x4x200xf32>
    %1 = vector.shape_cast %0 : vector<1x4x200xf32> to vector<4x200xf32>
    %2 = vector.extract_strided_slice %1 {offsets = [0, 0], sizes = [4, 180], strides = [1, 1]} : vector<4x200xf32> to vector<4x180xf32>
    %c0_2 = arith.constant 0 : index
    %c0_3 = arith.constant 0 : index
    %3 = vector.load %arg17[%c0_2, %c0_3] : memref<84x180xf32, #tpu.memory_space<vmem>>, vector<4x180xf32>
    tpu.vector_store %arg17[%c0_2, %c0_3], %2 {strides = array<i32>} : memref<84x180xf32, #tpu.memory_space<vmem>>, vector<4x180xf32>,
    %4 = vector.extract_strided_slice %1 {offsets = [0, 1], sizes = [4, 180], strides = [1, 1]} : vector<4x200xf32> to vector<4x180xf32>
    %c4 = arith.constant 4 : index
    %c0_4 = arith.constant 0 : index
    %5 = vector.load %arg17[%c4, %c0_4] : memref<84x180xf32, #tpu.memory_space<vmem>>, vector<4x180xf32>
    tpu.vector_store %arg17[%c4, %c0_4], %4 {strides = array<i32>} : memref<84x180xf32, #tpu.memory_space<vmem>>, vector<4x180xf32>,
    %6 = vector.extract_strided_slice %1 {offsets = [0, 2], sizes = [4, 180], strides = [1, 1]} : vector<4x200xf32> to vector<4x180xf32>
    %c8 = arith.constant 8 : index
    %c0_5 = arith.constant 0 : index
    %7 = vector.load %arg17[%c8, %c0_5] : memref<84x180xf32, #tpu.memory_space<vmem>>, vector<4x180xf32>
    tpu.vector_store %arg17[%c8, %c0_5], %6 {strides = array<i32>} : memref<84x180xf32, #tpu.memory_space<vmem>>, vector<4x180xf32>,
    %8 = vector.extract_strided_slice %1 {offsets = [0, 3], sizes = [4, 180], strides = [1, 1]} : vector<4x200xf32> to vector<4x180xf32>
    %c12 = arith.constant 12 : index
    %c0_6 = arith.constant 0 : index
    %9 = vector.load %arg17[%c12, %c0_6] : memref<84x180xf32, #tpu.memory_space<vmem>>, vector<4x180xf32>
    tpu.vector_store %arg17[%c12, %c0_6], %8 {strides = array<i32>} : memref<84x180xf32, #tpu.memory_space<vmem>>, vector<4x180xf32>,
    %10 = vector.extract_strided_slice %1 {offsets = [0, 4], sizes = [4, 180], strides = [1, 1]} : vector<4x200xf32> to vector<4x180xf32>
    %c16 = arith.constant 16 : index
    %c0_7 = arith.constant 0 : index
    %11 = vector.load %arg17[%c16, %c0_7] : memref<84x180xf32, #tpu.memory_space<vmem>>, vector<4x180xf32>
    tpu.vector_store %arg17[%c16, %c0_7], %10 {strides = array<i32>} : memref<84x180xf32, #tpu.memory_space<vmem>>, vector<4x180xf32>,
    %12 = vector.extract_strided_slice %1 {offsets = [0, 5], sizes = [4, 180], strides = [1, 1]} : vector<4x200xf32> to vector<4x180xf32>
    %c20 = arith.constant 20 : index
    %c0_8 = arith.constant 0 : index
    %13 = vector.load %arg17[%c20, %c0_8] : memref<84x180xf32, #tpu.memory_space<vmem>>, vector<4x180xf32>
    tpu.vector_store %arg17[%c20, %c0_8], %12 {strides = array<i32>} : memref<84x180xf32, #tpu.memory_space<vmem>>, vector<4x180xf32>,
    %14 = vector.extract_strided_slice %1 {offsets = [0, 6], sizes = [4, 180], strides = [1, 1]} : vector<4x200xf32> to vector<4x180xf32>
    %c24 = arith.constant 24 : index
    %c0_9 = arith.constant 0 : index
    %15 = vector.load %arg17[%c24, %c0_9] : memref<84x180xf32, #tpu.memory_space<vmem>>, vector<4x180xf32>
    tpu.vector_store %arg17[%c24, %c0_9], %14 {strides = array<i32>} : memref<84x180xf32, #tpu.memory_space<vmem>>, vector<4x180xf32>,
    %16 = vector.extract_strided_slice %1 {offsets = [0, 7], sizes = [4, 180], strides = [1, 1]} : vector<4x200xf32> to vector<4x180xf32>
    %c28 = arith.constant 28 : index
    %c0_10 = arith.constant 0 : index
    %17 = vector.load %arg17[%c28, %c0_10] : memref<84x180xf32, #tpu.memory_space<vmem>>, vector<4x180xf32>
    tpu.vector_store %arg17[%c28, %c0_10], %16 {strides = array<i32>} : memref<84x180xf32, #tpu.memory_space<vmem>>, vector<4x180xf32>,
    %18 = vector.extract_strided_slice %1 {offsets = [0, 8], sizes = [4, 180], strides = [1, 1]} : vector<4x200xf32> to vector<4x180xf32>
    %c32 = arith.constant 32 : index
    %c0_11 = arith.constant 0 : index
    %19 = vector.load %arg17[%c32, %c0_11] : memref<84x180xf32, #tpu.memory_space<vmem>>, vector<4x180xf32>
    tpu.vector_store %arg17[%c32, %c0_11], %18 {strides = array<i32>} : memref<84x180xf32, #tpu.memory_space<vmem>>, vector<4x180xf32>,
    %20 = vector.extract_strided_slice %1 {offsets = [0, 9], sizes = [4, 180], strides = [1, 1]} : vector<4x200xf32> to vector<4x180xf32>
    %c36 = arith.constant 36 : index
    %c0_12 = arith.constant 0 : index
    %21 = vector.load %arg17[%c36, %c0_12] : memref<84x180xf32, #tpu.memory_space<vmem>>, vector<4x180xf32>
    tpu.vector_store %arg17[%c36, %c0_12], %20 {strides = array<i32>} : memref<84x180xf32, #tpu.memory_space<vmem>>, vector<4x180xf32>,
    %22 = vector.extract_strided_slice %1 {offsets = [0, 10], sizes = [4, 180], strides = [1, 1]} : vector<4x200xf32> to vector<4x180xf32>
    %c40 = arith.constant 40 : index
    %c0_13 = arith.constant 0 : index
    %23 = vector.load %arg17[%c40, %c0_13] : memref<84x180xf32, #tpu.memory_space<vmem>>, vector<4x180xf32>
    tpu.vector_store %arg17[%c40, %c0_13], %22 {strides = array<i32>} : memref<84x180xf32, #tpu.memory_space<vmem>>, vector<4x180xf32>,
    %24 = vector.extract_strided_slice %1 {offsets = [0, 11], sizes = [4, 180], strides = [1, 1]} : vector<4x200xf32> to vector<4x180xf32>
    %c44 = arith.constant 44 : index
    %c0_14 = arith.constant 0 : index
    %25 = vector.load %arg17[%c44, %c0_14] : memref<84x180xf32, #tpu.memory_space<vmem>>, vector<4x180xf32>
    tpu.vector_store %arg17[%c44, %c0_14], %24 {strides = array<i32>} : memref<84x180xf32, #tpu.memory_space<vmem>>, vector<4x180xf32>,
    %26 = vector.extract_strided_slice %1 {offsets = [0, 12], sizes = [4, 180], strides = [1, 1]} : vector<4x200xf32> to vector<4x180xf32>
    %c48 = arith.constant 48 : index
    %c0_15 = arith.constant 0 : index
    %27 = vector.load %arg17[%c48, %c0_15] : memref<84x180xf32, #tpu.memory_space<vmem>>, vector<4x180xf32>
    tpu.vector_store %arg17[%c48, %c0_15], %26 {strides = array<i32>} : memref<84x180xf32, #tpu.memory_space<vmem>>, vector<4x180xf32>,
    %28 = vector.extract_strided_slice %1 {offsets = [0, 13], sizes = [4, 180], strides = [1, 1]} : vector<4x200xf32> to vector<4x180xf32>
    %c52 = arith.constant 52 : index
    %c0_16 = arith.constant 0 : index
    %29 = vector.load %arg17[%c52, %c0_16] : memref<84x180xf32, #tpu.memory_space<vmem>>, vector<4x180xf32>
    tpu.vector_store %arg17[%c52, %c0_16], %28 {strides = array<i32>} : memref<84x180xf32, #tpu.memory_space<vmem>>, vector<4x180xf32>,
    %30 = vector.extract_strided_slice %1 {offsets = [0, 14], sizes = [4, 180], strides = [1, 1]} : vector<4x200xf32> to vector<4x180xf32>
    %c56 = arith.constant 56 : index
    %c0_17 = arith.constant 0 : index
    %31 = vector.load %arg17[%c56, %c0_17] : memref<84x180xf32, #tpu.memory_space<vmem>>, vector<4x180xf32>
    tpu.vector_store %arg17[%c56, %c0_17], %30 {strides = array<i32>} : memref<84x180xf32, #tpu.memory_space<vmem>>, vector<4x180xf32>,
    %32 = vector.extract_strided_slice %1 {offsets = [0, 15], sizes = [4, 180], strides = [1, 1]} : vector<4x200xf32> to vector<4x180xf32>
    %c60 = arith.constant 60 : index
    %c0_18 = arith.constant 0 : index
    %33 = vector.load %arg17[%c60, %c0_18] : memref<84x180xf32, #tpu.memory_space<vmem>>, vector<4x180xf32>
    tpu.vector_store %arg17[%c60, %c0_18], %32 {strides = array<i32>} : memref<84x180xf32, #tpu.memory_space<vmem>>, vector<4x180xf32>,
    %34 = vector.extract_strided_slice %1 {offsets = [0, 16], sizes = [4, 180], strides = [1, 1]} : vector<4x200xf32> to vector<4x180xf32>
    %c64 = arith.constant 64 : index
    %c0_19 = arith.constant 0 : index
    %35 = vector.load %arg17[%c64, %c0_19] : memref<84x180xf32, #tpu.memory_space<vmem>>, vector<4x180xf32>
    tpu.vector_store %arg17[%c64, %c0_19], %34 {strides = array<i32>} : memref<84x180xf32, #tpu.memory_space<vmem>>, vector<4x180xf32>,
    %36 = vector.extract_strided_slice %1 {offsets = [0, 17], sizes = [4, 180], strides = [1, 1]} : vector<4x200xf32> to vector<4x180xf32>
    %c68 = arith.constant 68 : index
    %c0_20 = arith.constant 0 : index
    %37 = vector.load %arg17[%c68, %c0_20] : memref<84x180xf32, #tpu.memory_space<vmem>>, vector<4x180xf32>
    tpu.vector_store %arg17[%c68, %c0_20], %36 {strides = array<i32>} : memref<84x180xf32, #tpu.memory_space<vmem>>, vector<4x180xf32>,
    %38 = vector.extract_strided_slice %1 {offsets = [0, 18], sizes = [4, 180], strides = [1, 1]} : vector<4x200xf32> to vector<4x180xf32>
    %c72 = arith.constant 72 : index
    %c0_21 = arith.constant 0 : index
    %39 = vector.load %arg17[%c72, %c0_21] : memref<84x180xf32, #tpu.memory_space<vmem>>, vector<4x180xf32>
    tpu.vector_store %arg17[%c72, %c0_21], %38 {strides = array<i32>} : memref<84x180xf32, #tpu.memory_space<vmem>>, vector<4x180xf32>,
    %40 = vector.extract_strided_slice %1 {offsets = [0, 19], sizes = [4, 180], strides = [1, 1]} : vector<4x200xf32> to vector<4x180xf32>
    %c76 = arith.constant 76 : index
    %c0_22 = arith.constant 0 : index
    %41 = vector.load %arg17[%c76, %c0_22] : memref<84x180xf32, #tpu.memory_space<vmem>>, vector<4x180xf32>
    tpu.vector_store %arg17[%c76, %c0_22], %40 {strides = array<i32>} : memref<84x180xf32, #tpu.memory_space<vmem>>, vector<4x180xf32>,
    %42 = vector.extract_strided_slice %1 {offsets = [0, 20], sizes = [4, 180], strides = [1, 1]} : vector<4x200xf32> to vector<4x180xf32>
    %c80 = arith.constant 80 : index
    %c0_23 = arith.constant 0 : index
    %43 = vector.load %arg17[%c80, %c0_23] : memref<84x180xf32, #tpu.memory_space<vmem>>, vector<4x180xf32>
    tpu.vector_store %arg17[%c80, %c0_23], %42 {strides = array<i32>} : memref<84x180xf32, #tpu.memory_space<vmem>>, vector<4x180xf32>,
    %c0_24 = arith.constant 0 : index
    %c0_25 = arith.constant 0 : index
    %44 = vector.load %arg1[%c0_24, %c0_25] : memref<16x84xf32, #tpu.memory_space<vmem>>, vector<16x84xf32>
    %c0_26 = arith.constant 0 : index
    %c0_27 = arith.constant 0 : index
    %45 = vector.load %arg17[%c0_26, %c0_27] : memref<84x180xf32, #tpu.memory_space<vmem>>, vector<84x180xf32>
    %cst = arith.constant dense<0.000000e+00> : vector<16x180xf32>
    %46 = tpu.matmul %44, %45, %cst {dimension_numbers = #tpu.dot_dimension_numbers<[1], [0], [0], [1], [0, 0, 1, 1], [], []>} : vector<16x84xf32>, vector<84x180xf32>, vector<16x180xf32> -> vector<16x180xf32>
    %c0_28 = arith.constant 0 : index
    %c0_29 = arith.constant 0 : index
    %47 = vector.load %arg2[%c0_28, %c0_29] : memref<16x1xf32, #tpu.memory_space<vmem>>, vector<16x1xf32>
    %48 = vector.broadcast %47 : vector<16x1xf32> to vector<16x180xf32>
    %49 = arith.addf %46, %48 : vector<16x180xf32>
    %cst_30 = arith.constant 0.000000e+00 : f32
    %50 = vector.broadcast %cst_30 : f32 to vector<16x180xf32>
    %51 = arith.maximumf %49, %50 : vector<16x180xf32>
    %52 = vector.extract_strided_slice %51 {offsets = [0, 0], sizes = [16, 179], strides = [1, 1]} : vector<16x180xf32> to vector<16x179xf32>
    %53 = vector.extract_strided_slice %51 {offsets = [0, 1], sizes = [16, 179], strides = [1, 1]} : vector<16x180xf32> to vector<16x179xf32>
    %54 = arith.maximumf %52, %53 : vector<16x179xf32>
    %c0_31 = arith.constant 0 : index
    %c0_32 = arith.constant 0 : index
    %55 = vector.load %arg3[%c0_31, %c0_32] : memref<179x90xf32, #tpu.memory_space<vmem>>, vector<179x90xf32>
    %cst_33 = arith.constant dense<0.000000e+00> : vector<16x90xf32>
    %56 = tpu.matmul %54, %55, %cst_33 {dimension_numbers = #tpu.dot_dimension_numbers<[1], [0], [0], [1], [0, 0, 1, 1], [], []>} : vector<16x179xf32>, vector<179x90xf32>, vector<16x90xf32> -> vector<16x90xf32>
    %57 = vector.extract_strided_slice %56 {offsets = [0, 0], sizes = [16, 80], strides = [1, 1]} : vector<16x90xf32> to vector<16x80xf32>
    %c0_34 = arith.constant 0 : index
    %c0_35 = arith.constant 0 : index
    %58 = vector.load %arg18[%c0_34, %c0_35] : memref<176x80xf32, #tpu.memory_space<vmem>>, vector<16x80xf32>
    tpu.vector_store %arg18[%c0_34, %c0_35], %57 {strides = array<i32>} : memref<176x80xf32, #tpu.memory_space<vmem>>, vector<16x80xf32>,
    %59 = vector.extract_strided_slice %56 {offsets = [0, 1], sizes = [16, 80], strides = [1, 1]} : vector<16x90xf32> to vector<16x80xf32>
    %c16_36 = arith.constant 16 : index
    %c0_37 = arith.constant 0 : index
    %60 = vector.load %arg18[%c16_36, %c0_37] : memref<176x80xf32, #tpu.memory_space<vmem>>, vector<16x80xf32>
    tpu.vector_store %arg18[%c16_36, %c0_37], %59 {strides = array<i32>} : memref<176x80xf32, #tpu.memory_space<vmem>>, vector<16x80xf32>,
    %61 = vector.extract_strided_slice %56 {offsets = [0, 2], sizes = [16, 80], strides = [1, 1]} : vector<16x90xf32> to vector<16x80xf32>
    %c32_38 = arith.constant 32 : index
    %c0_39 = arith.constant 0 : index
    %62 = vector.load %arg18[%c32_38, %c0_39] : memref<176x80xf32, #tpu.memory_space<vmem>>, vector<16x80xf32>
    tpu.vector_store %arg18[%c32_38, %c0_39], %61 {strides = array<i32>} : memref<176x80xf32, #tpu.memory_space<vmem>>, vector<16x80xf32>,
    %63 = vector.extract_strided_slice %56 {offsets = [0, 3], sizes = [16, 80], strides = [1, 1]} : vector<16x90xf32> to vector<16x80xf32>
    %c48_40 = arith.constant 48 : index
    %c0_41 = arith.constant 0 : index
    %64 = vector.load %arg18[%c48_40, %c0_41] : memref<176x80xf32, #tpu.memory_space<vmem>>, vector<16x80xf32>
    tpu.vector_store %arg18[%c48_40, %c0_41], %63 {strides = array<i32>} : memref<176x80xf32, #tpu.memory_space<vmem>>, vector<16x80xf32>,
    %65 = vector.extract_strided_slice %56 {offsets = [0, 4], sizes = [16, 80], strides = [1, 1]} : vector<16x90xf32> to vector<16x80xf32>
    %c64_42 = arith.constant 64 : index
    %c0_43 = arith.constant 0 : index
    %66 = vector.load %arg18[%c64_42, %c0_43] : memref<176x80xf32, #tpu.memory_space<vmem>>, vector<16x80xf32>
    tpu.vector_store %arg18[%c64_42, %c0_43], %65 {strides = array<i32>} : memref<176x80xf32, #tpu.memory_space<vmem>>, vector<16x80xf32>,
    %67 = vector.extract_strided_slice %56 {offsets = [0, 5], sizes = [16, 80], strides = [1, 1]} : vector<16x90xf32> to vector<16x80xf32>
    %c80_44 = arith.constant 80 : index
    %c0_45 = arith.constant 0 : index
    %68 = vector.load %arg18[%c80_44, %c0_45] : memref<176x80xf32, #tpu.memory_space<vmem>>, vector<16x80xf32>
    tpu.vector_store %arg18[%c80_44, %c0_45], %67 {strides = array<i32>} : memref<176x80xf32, #tpu.memory_space<vmem>>, vector<16x80xf32>,
    %69 = vector.extract_strided_slice %56 {offsets = [0, 6], sizes = [16, 80], strides = [1, 1]} : vector<16x90xf32> to vector<16x80xf32>
    %c96 = arith.constant 96 : index
    %c0_46 = arith.constant 0 : index
    %70 = vector.load %arg18[%c96, %c0_46] : memref<176x80xf32, #tpu.memory_space<vmem>>, vector<16x80xf32>
    tpu.vector_store %arg18[%c96, %c0_46], %69 {strides = array<i32>} : memref<176x80xf32, #tpu.memory_space<vmem>>, vector<16x80xf32>,
    %71 = vector.extract_strided_slice %56 {offsets = [0, 7], sizes = [16, 80], strides = [1, 1]} : vector<16x90xf32> to vector<16x80xf32>
    %c112 = arith.constant 112 : index
    %c0_47 = arith.constant 0 : index
    %72 = vector.load %arg18[%c112, %c0_47] : memref<176x80xf32, #tpu.memory_space<vmem>>, vector<16x80xf32>
    tpu.vector_store %arg18[%c112, %c0_47], %71 {strides = array<i32>} : memref<176x80xf32, #tpu.memory_space<vmem>>, vector<16x80xf32>,
    %73 = vector.extract_strided_slice %56 {offsets = [0, 8], sizes = [16, 80], strides = [1, 1]} : vector<16x90xf32> to vector<16x80xf32>
    %c128 = arith.constant 128 : index
    %c0_48 = arith.constant 0 : index
    %74 = vector.load %arg18[%c128, %c0_48] : memref<176x80xf32, #tpu.memory_space<vmem>>, vector<16x80xf32>
    tpu.vector_store %arg18[%c128, %c0_48], %73 {strides = array<i32>} : memref<176x80xf32, #tpu.memory_space<vmem>>, vector<16x80xf32>,
    %75 = vector.extract_strided_slice %56 {offsets = [0, 9], sizes = [16, 80], strides = [1, 1]} : vector<16x90xf32> to vector<16x80xf32>
    %c144 = arith.constant 144 : index
    %c0_49 = arith.constant 0 : index
    %76 = vector.load %arg18[%c144, %c0_49] : memref<176x80xf32, #tpu.memory_space<vmem>>, vector<16x80xf32>
    tpu.vector_store %arg18[%c144, %c0_49], %75 {strides = array<i32>} : memref<176x80xf32, #tpu.memory_space<vmem>>, vector<16x80xf32>,
    %77 = vector.extract_strided_slice %56 {offsets = [0, 10], sizes = [16, 80], strides = [1, 1]} : vector<16x90xf32> to vector<16x80xf32>
    %c160 = arith.constant 160 : index
    %c0_50 = arith.constant 0 : index
    %78 = vector.load %arg18[%c160, %c0_50] : memref<176x80xf32, #tpu.memory_space<vmem>>, vector<16x80xf32>
    tpu.vector_store %arg18[%c160, %c0_50], %77 {strides = array<i32>} : memref<176x80xf32, #tpu.memory_space<vmem>>, vector<16x80xf32>,
    %c0_51 = arith.constant 0 : index
    %c0_52 = arith.constant 0 : index
    %79 = vector.load %arg4[%c0_51, %c0_52] : memref<8x176xf32, #tpu.memory_space<vmem>>, vector<8x176xf32>
    %c0_53 = arith.constant 0 : index
    %c0_54 = arith.constant 0 : index
    %80 = vector.load %arg18[%c0_53, %c0_54] : memref<176x80xf32, #tpu.memory_space<vmem>>, vector<176x80xf32>
    %cst_55 = arith.constant dense<0.000000e+00> : vector<8x80xf32>
    %81 = tpu.matmul %79, %80, %cst_55 {dimension_numbers = #tpu.dot_dimension_numbers<[1], [0], [0], [1], [0, 0, 1, 1], [], []>} : vector<8x176xf32>, vector<176x80xf32>, vector<8x80xf32> -> vector<8x80xf32>
    %c0_56 = arith.constant 0 : index
    %c0_57 = arith.constant 0 : index
    %82 = vector.load %arg5[%c0_56, %c0_57] : memref<8x1xf32, #tpu.memory_space<vmem>>, vector<8x1xf32>
    %83 = vector.broadcast %82 : vector<8x1xf32> to vector<8x80xf32>
    %84 = arith.addf %81, %83 : vector<8x80xf32>
    %cst_58 = arith.constant 0.000000e+00 : f32
    %85 = vector.broadcast %cst_58 : f32 to vector<8x80xf32>
    %86 = arith.maximumf %84, %85 : vector<8x80xf32>
    %87 = vector.extract_strided_slice %86 {offsets = [0, 0], sizes = [8, 79], strides = [1, 1]} : vector<8x80xf32> to vector<8x79xf32>
    %88 = vector.extract_strided_slice %86 {offsets = [0, 1], sizes = [8, 79], strides = [1, 1]} : vector<8x80xf32> to vector<8x79xf32>
    %89 = arith.maximumf %87, %88 : vector<8x79xf32>
    %cst_59 = arith.constant 0.000000e+00 : f32
    %90 = vector.broadcast %cst_59 : f32 to vector<2x20xf32>
    %c0_60 = arith.constant 0 : index
    %c0_61 = arith.constant 0 : index
    %91 = vector.load %arg7[%c0_60, %c0_61] : memref<1x20xf32, #tpu.memory_space<vmem>>, vector<1x20xf32>
    %92 = vector.broadcast %91 : vector<1x20xf32> to vector<2x20xf32>
    %93 = arith.addf %90, %92 : vector<2x20xf32>
    %94 = vector.extract_strided_slice %89 {offsets = [0, 0], sizes = [2, 79], strides = [1, 1]} : vector<8x79xf32> to vector<2x79xf32>
    %c0_62 = arith.constant 0 : index
    %c0_63 = arith.constant 0 : index
    %c0_64 = arith.constant 0 : index
    %95 = vector.load %arg6[%c0_62, %c0_63, %c0_64] : memref<4x79x20xf32, #tpu.memory_space<vmem>>, vector<1x79x20xf32>
    %96 = vector.shape_cast %95 : vector<1x79x20xf32> to vector<79x20xf32>
    %cst_65 = arith.constant dense<0.000000e+00> : vector<2x20xf32>
    %97 = tpu.matmul %94, %96, %cst_65 {dimension_numbers = #tpu.dot_dimension_numbers<[1], [0], [0], [1], [0, 0, 1, 1], [], []>} : vector<2x79xf32>, vector<79x20xf32>, vector<2x20xf32> -> vector<2x20xf32>
    %98 = arith.addf %93, %97 : vector<2x20xf32>
    %99 = vector.extract_strided_slice %89 {offsets = [2, 0], sizes = [2, 79], strides = [1, 1]} : vector<8x79xf32> to vector<2x79xf32>
    %c1 = arith.constant 1 : index
    %c0_66 = arith.constant 0 : index
    %c0_67 = arith.constant 0 : index
    %100 = vector.load %arg6[%c1, %c0_66, %c0_67] : memref<4x79x20xf32, #tpu.memory_space<vmem>>, vector<1x79x20xf32>
    %101 = vector.shape_cast %100 : vector<1x79x20xf32> to vector<79x20xf32>
    %cst_68 = arith.constant dense<0.000000e+00> : vector<2x20xf32>
    %102 = tpu.matmul %99, %101, %cst_68 {dimension_numbers = #tpu.dot_dimension_numbers<[1], [0], [0], [1], [0, 0, 1, 1], [], []>} : vector<2x79xf32>, vector<79x20xf32>, vector<2x20xf32> -> vector<2x20xf32>
    %103 = arith.addf %98, %102 : vector<2x20xf32>
    %104 = vector.extract_strided_slice %89 {offsets = [4, 0], sizes = [2, 79], strides = [1, 1]} : vector<8x79xf32> to vector<2x79xf32>
    %c2 = arith.constant 2 : index
    %c0_69 = arith.constant 0 : index
    %c0_70 = arith.constant 0 : index
    %105 = vector.load %arg6[%c2, %c0_69, %c0_70] : memref<4x79x20xf32, #tpu.memory_space<vmem>>, vector<1x79x20xf32>
    %106 = vector.shape_cast %105 : vector<1x79x20xf32> to vector<79x20xf32>
    %cst_71 = arith.constant dense<0.000000e+00> : vector<2x20xf32>
    %107 = tpu.matmul %104, %106, %cst_71 {dimension_numbers = #tpu.dot_dimension_numbers<[1], [0], [0], [1], [0, 0, 1, 1], [], []>} : vector<2x79xf32>, vector<79x20xf32>, vector<2x20xf32> -> vector<2x20xf32>
    %108 = arith.addf %103, %107 : vector<2x20xf32>
    %109 = vector.extract_strided_slice %89 {offsets = [6, 0], sizes = [2, 79], strides = [1, 1]} : vector<8x79xf32> to vector<2x79xf32>
    %c3 = arith.constant 3 : index
    %c0_72 = arith.constant 0 : index
    %c0_73 = arith.constant 0 : index
    %110 = vector.load %arg6[%c3, %c0_72, %c0_73] : memref<4x79x20xf32, #tpu.memory_space<vmem>>, vector<1x79x20xf32>
    %111 = vector.shape_cast %110 : vector<1x79x20xf32> to vector<79x20xf32>
    %cst_74 = arith.constant dense<0.000000e+00> : vector<2x20xf32>
    %112 = tpu.matmul %109, %111, %cst_74 {dimension_numbers = #tpu.dot_dimension_numbers<[1], [0], [0], [1], [0, 0, 1, 1], [], []>} : vector<2x79xf32>, vector<79x20xf32>, vector<2x20xf32> -> vector<2x20xf32>
    %113 = arith.addf %108, %112 : vector<2x20xf32>
    %114 = vector.extract_strided_slice %113 {offsets = [0, 0], sizes = [1, 20], strides = [1, 1]} : vector<2x20xf32> to vector<1x20xf32>
    %c0_75 = arith.constant 0 : index
    %c0_76 = arith.constant 0 : index
    %115 = vector.load %arg15[%c0_75, %c0_76] : memref<1x20xf32, #tpu.memory_space<vmem>>, vector<1x20xf32>
    tpu.vector_store %arg15[%c0_75, %c0_76], %114 {strides = array<i32>} : memref<1x20xf32, #tpu.memory_space<vmem>>, vector<1x20xf32>,
    %116 = vector.extract_strided_slice %113 {offsets = [1, 0], sizes = [1, 20], strides = [1, 1]} : vector<2x20xf32> to vector<1x20xf32>
    %c0_77 = arith.constant 0 : index
    %c0_78 = arith.constant 0 : index
    %117 = vector.load %arg16[%c0_77, %c0_78] : memref<1x20xf32, #tpu.memory_space<vmem>>, vector<1x20xf32>
    tpu.vector_store %arg16[%c0_77, %c0_78], %116 {strides = array<i32>} : memref<1x20xf32, #tpu.memory_space<vmem>>, vector<1x20xf32>,
    %118 = vector.extract_strided_slice %113 {offsets = [0, 0], sizes = [1, 20], strides = [1, 1]} : vector<2x20xf32> to vector<1x20xf32>
    %cst_79 = arith.constant 0.000000e+00 : f32
    %119 = vector.broadcast %cst_79 : f32 to vector<4x180xf32>
    %c0_80 = arith.constant 0 : index
    %c0_81 = arith.constant 0 : index
    %120 = vector.load %arg21[%c0_80, %c0_81] : memref<4x180xf32, #tpu.memory_space<vmem>>, vector<4x180xf32>
    tpu.vector_store %arg21[%c0_80, %c0_81], %119 {strides = array<i32>} : memref<4x180xf32, #tpu.memory_space<vmem>>, vector<4x180xf32>,
    %c0_82 = arith.constant 0 : index
    %c0_83 = arith.constant 0 : index
    %c0_84 = arith.constant 0 : index
    %121 = vector.load %arg8[%c0_82, %c0_83, %c0_84] : memref<4x20x160xf32, #tpu.memory_space<vmem>>, vector<1x20x160xf32>
    %122 = vector.shape_cast %121 : vector<1x20x160xf32> to vector<20x160xf32>
    %cst_85 = arith.constant dense<0.000000e+00> : vector<1x160xf32>
    %123 = tpu.matmul %118, %122, %cst_85 {dimension_numbers = #tpu.dot_dimension_numbers<[1], [0], [0], [1], [0, 0, 1, 1], [], []>} : vector<1x20xf32>, vector<20x160xf32>, vector<1x160xf32> -> vector<1x160xf32>
    %c0_86 = arith.constant 0 : index
    %c0_87 = arith.constant 0 : index
    %124 = vector.load %arg9[%c0_86, %c0_87] : memref<4x160xf32, #tpu.memory_space<vmem>>, vector<1x160xf32>
    %125 = arith.addf %123, %124 : vector<1x160xf32>
    %cst_88 = arith.constant 0.000000e+00 : f32
    %126 = vector.broadcast %cst_88 : f32 to vector<1x160xf32>
    %127 = arith.maximumf %125, %126 : vector<1x160xf32>
    %c0_89 = arith.constant 0 : index
    %c10 = arith.constant 10 : index
    %128 = vector.load %arg21[%c0_89, %c10] : memref<4x180xf32, #tpu.memory_space<vmem>>, vector<1x160xf32>
    tpu.vector_store %arg21[%c0_89, %c10], %127 {strides = array<i32>} : memref<4x180xf32, #tpu.memory_space<vmem>>, vector<1x160xf32>,
    %c1_90 = arith.constant 1 : index
    %c0_91 = arith.constant 0 : index
    %c0_92 = arith.constant 0 : index
    %129 = vector.load %arg8[%c1_90, %c0_91, %c0_92] : memref<4x20x160xf32, #tpu.memory_space<vmem>>, vector<1x20x160xf32>
    %130 = vector.shape_cast %129 : vector<1x20x160xf32> to vector<20x160xf32>
    %cst_93 = arith.constant dense<0.000000e+00> : vector<1x160xf32>
    %131 = tpu.matmul %118, %130, %cst_93 {dimension_numbers = #tpu.dot_dimension_numbers<[1], [0], [0], [1], [0, 0, 1, 1], [], []>} : vector<1x20xf32>, vector<20x160xf32>, vector<1x160xf32> -> vector<1x160xf32>
    %c1_94 = arith.constant 1 : index
    %c0_95 = arith.constant 0 : index
    %132 = vector.load %arg9[%c1_94, %c0_95] : memref<4x160xf32, #tpu.memory_space<vmem>>, vector<1x160xf32>
    %133 = arith.addf %131, %132 : vector<1x160xf32>
    %cst_96 = arith.constant 0.000000e+00 : f32
    %134 = vector.broadcast %cst_96 : f32 to vector<1x160xf32>
    %135 = arith.maximumf %133, %134 : vector<1x160xf32>
    %c1_97 = arith.constant 1 : index
    %c10_98 = arith.constant 10 : index
    %136 = vector.load %arg21[%c1_97, %c10_98] : memref<4x180xf32, #tpu.memory_space<vmem>>, vector<1x160xf32>
    tpu.vector_store %arg21[%c1_97, %c10_98], %135 {strides = array<i32>} : memref<4x180xf32, #tpu.memory_space<vmem>>, vector<1x160xf32>,
    %c2_99 = arith.constant 2 : index
    %c0_100 = arith.constant 0 : index
    %c0_101 = arith.constant 0 : index
    %137 = vector.load %arg8[%c2_99, %c0_100, %c0_101] : memref<4x20x160xf32, #tpu.memory_space<vmem>>, vector<1x20x160xf32>
    %138 = vector.shape_cast %137 : vector<1x20x160xf32> to vector<20x160xf32>
    %cst_102 = arith.constant dense<0.000000e+00> : vector<1x160xf32>
    %139 = tpu.matmul %118, %138, %cst_102 {dimension_numbers = #tpu.dot_dimension_numbers<[1], [0], [0], [1], [0, 0, 1, 1], [], []>} : vector<1x20xf32>, vector<20x160xf32>, vector<1x160xf32> -> vector<1x160xf32>
    %c2_103 = arith.constant 2 : index
    %c0_104 = arith.constant 0 : index
    %140 = vector.load %arg9[%c2_103, %c0_104] : memref<4x160xf32, #tpu.memory_space<vmem>>, vector<1x160xf32>
    %141 = arith.addf %139, %140 : vector<1x160xf32>
    %cst_105 = arith.constant 0.000000e+00 : f32
    %142 = vector.broadcast %cst_105 : f32 to vector<1x160xf32>
    %143 = arith.maximumf %141, %142 : vector<1x160xf32>
    %c2_106 = arith.constant 2 : index
    %c10_107 = arith.constant 10 : index
    %144 = vector.load %arg21[%c2_106, %c10_107] : memref<4x180xf32, #tpu.memory_space<vmem>>, vector<1x160xf32>
    tpu.vector_store %arg21[%c2_106, %c10_107], %143 {strides = array<i32>} : memref<4x180xf32, #tpu.memory_space<vmem>>, vector<1x160xf32>,
    %c3_108 = arith.constant 3 : index
    %c0_109 = arith.constant 0 : index
    %c0_110 = arith.constant 0 : index
    %145 = vector.load %arg8[%c3_108, %c0_109, %c0_110] : memref<4x20x160xf32, #tpu.memory_space<vmem>>, vector<1x20x160xf32>
    %146 = vector.shape_cast %145 : vector<1x20x160xf32> to vector<20x160xf32>
    %cst_111 = arith.constant dense<0.000000e+00> : vector<1x160xf32>
    %147 = tpu.matmul %118, %146, %cst_111 {dimension_numbers = #tpu.dot_dimension_numbers<[1], [0], [0], [1], [0, 0, 1, 1], [], []>} : vector<1x20xf32>, vector<20x160xf32>, vector<1x160xf32> -> vector<1x160xf32>
    %c3_112 = arith.constant 3 : index
    %c0_113 = arith.constant 0 : index
    %148 = vector.load %arg9[%c3_112, %c0_113] : memref<4x160xf32, #tpu.memory_space<vmem>>, vector<1x160xf32>
    %149 = arith.addf %147, %148 : vector<1x160xf32>
    %cst_114 = arith.constant 0.000000e+00 : f32
    %150 = vector.broadcast %cst_114 : f32 to vector<1x160xf32>
    %151 = arith.maximumf %149, %150 : vector<1x160xf32>
    %c3_115 = arith.constant 3 : index
    %c10_116 = arith.constant 10 : index
    %152 = vector.load %arg21[%c3_115, %c10_116] : memref<4x180xf32, #tpu.memory_space<vmem>>, vector<1x160xf32>
    tpu.vector_store %arg21[%c3_115, %c10_116], %151 {strides = array<i32>} : memref<4x180xf32, #tpu.memory_space<vmem>>, vector<1x160xf32>,
    %c0_117 = arith.constant 0 : index
    %c0_118 = arith.constant 0 : index
    %153 = vector.load %arg21[%c0_117, %c0_118] : memref<4x180xf32, #tpu.memory_space<vmem>>, vector<4x180xf32>
    %154 = vector.extract_strided_slice %153 {offsets = [0, 0], sizes = [4, 170], strides = [1, 1]} : vector<4x180xf32> to vector<4x170xf32>
    %c0_119 = arith.constant 0 : index
    %c0_120 = arith.constant 0 : index
    %155 = vector.load %arg19[%c0_119, %c0_120] : memref<44x170xf32, #tpu.memory_space<vmem>>, vector<4x170xf32>
    tpu.vector_store %arg19[%c0_119, %c0_120], %154 {strides = array<i32>} : memref<44x170xf32, #tpu.memory_space<vmem>>, vector<4x170xf32>,
    %156 = vector.extract_strided_slice %153 {offsets = [0, 1], sizes = [4, 170], strides = [1, 1]} : vector<4x180xf32> to vector<4x170xf32>
    %c4_121 = arith.constant 4 : index
    %c0_122 = arith.constant 0 : index
    %157 = vector.load %arg19[%c4_121, %c0_122] : memref<44x170xf32, #tpu.memory_space<vmem>>, vector<4x170xf32>
    tpu.vector_store %arg19[%c4_121, %c0_122], %156 {strides = array<i32>} : memref<44x170xf32, #tpu.memory_space<vmem>>, vector<4x170xf32>,
    %158 = vector.extract_strided_slice %153 {offsets = [0, 2], sizes = [4, 170], strides = [1, 1]} : vector<4x180xf32> to vector<4x170xf32>
    %c8_123 = arith.constant 8 : index
    %c0_124 = arith.constant 0 : index
    %159 = vector.load %arg19[%c8_123, %c0_124] : memref<44x170xf32, #tpu.memory_space<vmem>>, vector<4x170xf32>
    tpu.vector_store %arg19[%c8_123, %c0_124], %158 {strides = array<i32>} : memref<44x170xf32, #tpu.memory_space<vmem>>, vector<4x170xf32>,
    %160 = vector.extract_strided_slice %153 {offsets = [0, 3], sizes = [4, 170], strides = [1, 1]} : vector<4x180xf32> to vector<4x170xf32>
    %c12_125 = arith.constant 12 : index
    %c0_126 = arith.constant 0 : index
    %161 = vector.load %arg19[%c12_125, %c0_126] : memref<44x170xf32, #tpu.memory_space<vmem>>, vector<4x170xf32>
    tpu.vector_store %arg19[%c12_125, %c0_126], %160 {strides = array<i32>} : memref<44x170xf32, #tpu.memory_space<vmem>>, vector<4x170xf32>,
    %162 = vector.extract_strided_slice %153 {offsets = [0, 4], sizes = [4, 170], strides = [1, 1]} : vector<4x180xf32> to vector<4x170xf32>
    %c16_127 = arith.constant 16 : index
    %c0_128 = arith.constant 0 : index
    %163 = vector.load %arg19[%c16_127, %c0_128] : memref<44x170xf32, #tpu.memory_space<vmem>>, vector<4x170xf32>
    tpu.vector_store %arg19[%c16_127, %c0_128], %162 {strides = array<i32>} : memref<44x170xf32, #tpu.memory_space<vmem>>, vector<4x170xf32>,
    %164 = vector.extract_strided_slice %153 {offsets = [0, 5], sizes = [4, 170], strides = [1, 1]} : vector<4x180xf32> to vector<4x170xf32>
    %c20_129 = arith.constant 20 : index
    %c0_130 = arith.constant 0 : index
    %165 = vector.load %arg19[%c20_129, %c0_130] : memref<44x170xf32, #tpu.memory_space<vmem>>, vector<4x170xf32>
    tpu.vector_store %arg19[%c20_129, %c0_130], %164 {strides = array<i32>} : memref<44x170xf32, #tpu.memory_space<vmem>>, vector<4x170xf32>,
    %166 = vector.extract_strided_slice %153 {offsets = [0, 6], sizes = [4, 170], strides = [1, 1]} : vector<4x180xf32> to vector<4x170xf32>
    %c24_131 = arith.constant 24 : index
    %c0_132 = arith.constant 0 : index
    %167 = vector.load %arg19[%c24_131, %c0_132] : memref<44x170xf32, #tpu.memory_space<vmem>>, vector<4x170xf32>
    tpu.vector_store %arg19[%c24_131, %c0_132], %166 {strides = array<i32>} : memref<44x170xf32, #tpu.memory_space<vmem>>, vector<4x170xf32>,
    %168 = vector.extract_strided_slice %153 {offsets = [0, 7], sizes = [4, 170], strides = [1, 1]} : vector<4x180xf32> to vector<4x170xf32>
    %c28_133 = arith.constant 28 : index
    %c0_134 = arith.constant 0 : index
    %169 = vector.load %arg19[%c28_133, %c0_134] : memref<44x170xf32, #tpu.memory_space<vmem>>, vector<4x170xf32>
    tpu.vector_store %arg19[%c28_133, %c0_134], %168 {strides = array<i32>} : memref<44x170xf32, #tpu.memory_space<vmem>>, vector<4x170xf32>,
    %170 = vector.extract_strided_slice %153 {offsets = [0, 8], sizes = [4, 170], strides = [1, 1]} : vector<4x180xf32> to vector<4x170xf32>
    %c32_135 = arith.constant 32 : index
    %c0_136 = arith.constant 0 : index
    %171 = vector.load %arg19[%c32_135, %c0_136] : memref<44x170xf32, #tpu.memory_space<vmem>>, vector<4x170xf32>
    tpu.vector_store %arg19[%c32_135, %c0_136], %170 {strides = array<i32>} : memref<44x170xf32, #tpu.memory_space<vmem>>, vector<4x170xf32>,
    %172 = vector.extract_strided_slice %153 {offsets = [0, 9], sizes = [4, 170], strides = [1, 1]} : vector<4x180xf32> to vector<4x170xf32>
    %c36_137 = arith.constant 36 : index
    %c0_138 = arith.constant 0 : index
    %173 = vector.load %arg19[%c36_137, %c0_138] : memref<44x170xf32, #tpu.memory_space<vmem>>, vector<4x170xf32>
    tpu.vector_store %arg19[%c36_137, %c0_138], %172 {strides = array<i32>} : memref<44x170xf32, #tpu.memory_space<vmem>>, vector<4x170xf32>,
    %174 = vector.extract_strided_slice %153 {offsets = [0, 10], sizes = [4, 170], strides = [1, 1]} : vector<4x180xf32> to vector<4x170xf32>
    %c40_139 = arith.constant 40 : index
    %c0_140 = arith.constant 0 : index
    %175 = vector.load %arg19[%c40_139, %c0_140] : memref<44x170xf32, #tpu.memory_space<vmem>>, vector<4x170xf32>
    tpu.vector_store %arg19[%c40_139, %c0_140], %174 {strides = array<i32>} : memref<44x170xf32, #tpu.memory_space<vmem>>, vector<4x170xf32>,
    %c0_141 = arith.constant 0 : index
    %c0_142 = arith.constant 0 : index
    %176 = vector.load %arg10[%c0_141, %c0_142] : memref<16x44xf32, #tpu.memory_space<vmem>>, vector<16x44xf32>
    %c0_143 = arith.constant 0 : index
    %c0_144 = arith.constant 0 : index
    %177 = vector.load %arg19[%c0_143, %c0_144] : memref<44x170xf32, #tpu.memory_space<vmem>>, vector<44x170xf32>
    %cst_145 = arith.constant dense<0.000000e+00> : vector<16x170xf32>
    %178 = tpu.matmul %176, %177, %cst_145 {dimension_numbers = #tpu.dot_dimension_numbers<[1], [0], [0], [1], [0, 0, 1, 1], [], []>} : vector<16x44xf32>, vector<44x170xf32>, vector<16x170xf32> -> vector<16x170xf32>
    %c0_146 = arith.constant 0 : index
    %c0_147 = arith.constant 0 : index
    %179 = vector.load %arg11[%c0_146, %c0_147] : memref<16x1xf32, #tpu.memory_space<vmem>>, vector<16x1xf32>
    %180 = vector.broadcast %179 : vector<16x1xf32> to vector<16x170xf32>
    %181 = arith.addf %178, %180 : vector<16x170xf32>
    %cst_148 = arith.constant 0.000000e+00 : f32
    %182 = vector.broadcast %cst_148 : f32 to vector<16x170xf32>
    %183 = arith.maximumf %181, %182 : vector<16x170xf32>
    %cst_149 = arith.constant 0.000000e+00 : f32
    %184 = vector.broadcast %cst_149 : f32 to vector<16x230xf32>
    %c0_150 = arith.constant 0 : index
    %c0_151 = arith.constant 0 : index
    %185 = vector.load %arg22[%c0_150, %c0_151] : memref<16x230xf32, #tpu.memory_space<vmem>>, vector<16x230xf32>
    tpu.vector_store %arg22[%c0_150, %c0_151], %184 {strides = array<i32>} : memref<16x230xf32, #tpu.memory_space<vmem>>, vector<16x230xf32>,
    %c0_152 = arith.constant 0 : index
    %c30 = arith.constant 30 : index
    %186 = vector.load %arg22[%c0_152, %c30] : memref<16x230xf32, #tpu.memory_space<vmem>>, vector<16x170xf32>
    tpu.vector_store %arg22[%c0_152, %c30], %183 {strides = array<i32>} : memref<16x230xf32, #tpu.memory_space<vmem>>, vector<16x170xf32>,
    %c0_153 = arith.constant 0 : index
    %c0_154 = arith.constant 0 : index
    %187 = vector.load %arg22[%c0_153, %c0_154] : memref<16x230xf32, #tpu.memory_space<vmem>>, vector<16x230xf32>
    %188 = vector.extract_strided_slice %187 {offsets = [0, 0], sizes = [16, 200], strides = [1, 1]} : vector<16x230xf32> to vector<16x200xf32>
    %c0_155 = arith.constant 0 : index
    %c0_156 = arith.constant 0 : index
    %189 = vector.load %arg20[%c0_155, %c0_156] : memref<496x200xf32, #tpu.memory_space<vmem>>, vector<16x200xf32>
    tpu.vector_store %arg20[%c0_155, %c0_156], %188 {strides = array<i32>} : memref<496x200xf32, #tpu.memory_space<vmem>>, vector<16x200xf32>,
    %190 = vector.extract_strided_slice %187 {offsets = [0, 1], sizes = [16, 200], strides = [1, 1]} : vector<16x230xf32> to vector<16x200xf32>
    %c16_157 = arith.constant 16 : index
    %c0_158 = arith.constant 0 : index
    %191 = vector.load %arg20[%c16_157, %c0_158] : memref<496x200xf32, #tpu.memory_space<vmem>>, vector<16x200xf32>
    tpu.vector_store %arg20[%c16_157, %c0_158], %190 {strides = array<i32>} : memref<496x200xf32, #tpu.memory_space<vmem>>, vector<16x200xf32>,
    %192 = vector.extract_strided_slice %187 {offsets = [0, 2], sizes = [16, 200], strides = [1, 1]} : vector<16x230xf32> to vector<16x200xf32>
    %c32_159 = arith.constant 32 : index
    %c0_160 = arith.constant 0 : index
    %193 = vector.load %arg20[%c32_159, %c0_160] : memref<496x200xf32, #tpu.memory_space<vmem>>, vector<16x200xf32>
    tpu.vector_store %arg20[%c32_159, %c0_160], %192 {strides = array<i32>} : memref<496x200xf32, #tpu.memory_space<vmem>>, vector<16x200xf32>,
    %194 = vector.extract_strided_slice %187 {offsets = [0, 3], sizes = [16, 200], strides = [1, 1]} : vector<16x230xf32> to vector<16x200xf32>
    %c48_161 = arith.constant 48 : index
    %c0_162 = arith.constant 0 : index
    %195 = vector.load %arg20[%c48_161, %c0_162] : memref<496x200xf32, #tpu.memory_space<vmem>>, vector<16x200xf32>
    tpu.vector_store %arg20[%c48_161, %c0_162], %194 {strides = array<i32>} : memref<496x200xf32, #tpu.memory_space<vmem>>, vector<16x200xf32>,
    %196 = vector.extract_strided_slice %187 {offsets = [0, 4], sizes = [16, 200], strides = [1, 1]} : vector<16x230xf32> to vector<16x200xf32>
    %c64_163 = arith.constant 64 : index
    %c0_164 = arith.constant 0 : index
    %197 = vector.load %arg20[%c64_163, %c0_164] : memref<496x200xf32, #tpu.memory_space<vmem>>, vector<16x200xf32>
    tpu.vector_store %arg20[%c64_163, %c0_164], %196 {strides = array<i32>} : memref<496x200xf32, #tpu.memory_space<vmem>>, vector<16x200xf32>,
    %198 = vector.extract_strided_slice %187 {offsets = [0, 5], sizes = [16, 200], strides = [1, 1]} : vector<16x230xf32> to vector<16x200xf32>
    %c80_165 = arith.constant 80 : index
    %c0_166 = arith.constant 0 : index
    %199 = vector.load %arg20[%c80_165, %c0_166] : memref<496x200xf32, #tpu.memory_space<vmem>>, vector<16x200xf32>
    tpu.vector_store %arg20[%c80_165, %c0_166], %198 {strides = array<i32>} : memref<496x200xf32, #tpu.memory_space<vmem>>, vector<16x200xf32>,
    %200 = vector.extract_strided_slice %187 {offsets = [0, 6], sizes = [16, 200], strides = [1, 1]} : vector<16x230xf32> to vector<16x200xf32>
    %c96_167 = arith.constant 96 : index
    %c0_168 = arith.constant 0 : index
    %201 = vector.load %arg20[%c96_167, %c0_168] : memref<496x200xf32, #tpu.memory_space<vmem>>, vector<16x200xf32>
    tpu.vector_store %arg20[%c96_167, %c0_168], %200 {strides = array<i32>} : memref<496x200xf32, #tpu.memory_space<vmem>>, vector<16x200xf32>,
    %202 = vector.extract_strided_slice %187 {offsets = [0, 7], sizes = [16, 200], strides = [1, 1]} : vector<16x230xf32> to vector<16x200xf32>
    %c112_169 = arith.constant 112 : index
    %c0_170 = arith.constant 0 : index
    %203 = vector.load %arg20[%c112_169, %c0_170] : memref<496x200xf32, #tpu.memory_space<vmem>>, vector<16x200xf32>
    tpu.vector_store %arg20[%c112_169, %c0_170], %202 {strides = array<i32>} : memref<496x200xf32, #tpu.memory_space<vmem>>, vector<16x200xf32>,
    %204 = vector.extract_strided_slice %187 {offsets = [0, 8], sizes = [16, 200], strides = [1, 1]} : vector<16x230xf32> to vector<16x200xf32>
    %c128_171 = arith.constant 128 : index
    %c0_172 = arith.constant 0 : index
    %205 = vector.load %arg20[%c128_171, %c0_172] : memref<496x200xf32, #tpu.memory_space<vmem>>, vector<16x200xf32>
    tpu.vector_store %arg20[%c128_171, %c0_172], %204 {strides = array<i32>} : memref<496x200xf32, #tpu.memory_space<vmem>>, vector<16x200xf32>,
    %206 = vector.extract_strided_slice %187 {offsets = [0, 9], sizes = [16, 200], strides = [1, 1]} : vector<16x230xf32> to vector<16x200xf32>
    %c144_173 = arith.constant 144 : index
    %c0_174 = arith.constant 0 : index
    %207 = vector.load %arg20[%c144_173, %c0_174] : memref<496x200xf32, #tpu.memory_space<vmem>>, vector<16x200xf32>
    tpu.vector_store %arg20[%c144_173, %c0_174], %206 {strides = array<i32>} : memref<496x200xf32, #tpu.memory_space<vmem>>, vector<16x200xf32>,
    %208 = vector.extract_strided_slice %187 {offsets = [0, 10], sizes = [16, 200], strides = [1, 1]} : vector<16x230xf32> to vector<16x200xf32>
    %c160_175 = arith.constant 160 : index
    %c0_176 = arith.constant 0 : index
    %209 = vector.load %arg20[%c160_175, %c0_176] : memref<496x200xf32, #tpu.memory_space<vmem>>, vector<16x200xf32>
    tpu.vector_store %arg20[%c160_175, %c0_176], %208 {strides = array<i32>} : memref<496x200xf32, #tpu.memory_space<vmem>>, vector<16x200xf32>,
    %210 = vector.extract_strided_slice %187 {offsets = [0, 11], sizes = [16, 200], strides = [1, 1]} : vector<16x230xf32> to vector<16x200xf32>
    %c176 = arith.constant 176 : index
    %c0_177 = arith.constant 0 : index
    %211 = vector.load %arg20[%c176, %c0_177] : memref<496x200xf32, #tpu.memory_space<vmem>>, vector<16x200xf32>
    tpu.vector_store %arg20[%c176, %c0_177], %210 {strides = array<i32>} : memref<496x200xf32, #tpu.memory_space<vmem>>, vector<16x200xf32>,
    %212 = vector.extract_strided_slice %187 {offsets = [0, 12], sizes = [16, 200], strides = [1, 1]} : vector<16x230xf32> to vector<16x200xf32>
    %c192 = arith.constant 192 : index
    %c0_178 = arith.constant 0 : index
    %213 = vector.load %arg20[%c192, %c0_178] : memref<496x200xf32, #tpu.memory_space<vmem>>, vector<16x200xf32>
    tpu.vector_store %arg20[%c192, %c0_178], %212 {strides = array<i32>} : memref<496x200xf32, #tpu.memory_space<vmem>>, vector<16x200xf32>,
    %214 = vector.extract_strided_slice %187 {offsets = [0, 13], sizes = [16, 200], strides = [1, 1]} : vector<16x230xf32> to vector<16x200xf32>
    %c208 = arith.constant 208 : index
    %c0_179 = arith.constant 0 : index
    %215 = vector.load %arg20[%c208, %c0_179] : memref<496x200xf32, #tpu.memory_space<vmem>>, vector<16x200xf32>
    tpu.vector_store %arg20[%c208, %c0_179], %214 {strides = array<i32>} : memref<496x200xf32, #tpu.memory_space<vmem>>, vector<16x200xf32>,
    %216 = vector.extract_strided_slice %187 {offsets = [0, 14], sizes = [16, 200], strides = [1, 1]} : vector<16x230xf32> to vector<16x200xf32>
    %c224 = arith.constant 224 : index
    %c0_180 = arith.constant 0 : index
    %217 = vector.load %arg20[%c224, %c0_180] : memref<496x200xf32, #tpu.memory_space<vmem>>, vector<16x200xf32>
    tpu.vector_store %arg20[%c224, %c0_180], %216 {strides = array<i32>} : memref<496x200xf32, #tpu.memory_space<vmem>>, vector<16x200xf32>,
    %218 = vector.extract_strided_slice %187 {offsets = [0, 15], sizes = [16, 200], strides = [1, 1]} : vector<16x230xf32> to vector<16x200xf32>
    %c240 = arith.constant 240 : index
    %c0_181 = arith.constant 0 : index
    %219 = vector.load %arg20[%c240, %c0_181] : memref<496x200xf32, #tpu.memory_space<vmem>>, vector<16x200xf32>
    tpu.vector_store %arg20[%c240, %c0_181], %218 {strides = array<i32>} : memref<496x200xf32, #tpu.memory_space<vmem>>, vector<16x200xf32>,
    %220 = vector.extract_strided_slice %187 {offsets = [0, 16], sizes = [16, 200], strides = [1, 1]} : vector<16x230xf32> to vector<16x200xf32>
    %c256 = arith.constant 256 : index
    %c0_182 = arith.constant 0 : index
    %221 = vector.load %arg20[%c256, %c0_182] : memref<496x200xf32, #tpu.memory_space<vmem>>, vector<16x200xf32>
    tpu.vector_store %arg20[%c256, %c0_182], %220 {strides = array<i32>} : memref<496x200xf32, #tpu.memory_space<vmem>>, vector<16x200xf32>,
    %222 = vector.extract_strided_slice %187 {offsets = [0, 17], sizes = [16, 200], strides = [1, 1]} : vector<16x230xf32> to vector<16x200xf32>
    %c272 = arith.constant 272 : index
    %c0_183 = arith.constant 0 : index
    %223 = vector.load %arg20[%c272, %c0_183] : memref<496x200xf32, #tpu.memory_space<vmem>>, vector<16x200xf32>
    tpu.vector_store %arg20[%c272, %c0_183], %222 {strides = array<i32>} : memref<496x200xf32, #tpu.memory_space<vmem>>, vector<16x200xf32>,
    %224 = vector.extract_strided_slice %187 {offsets = [0, 18], sizes = [16, 200], strides = [1, 1]} : vector<16x230xf32> to vector<16x200xf32>
    %c288 = arith.constant 288 : index
    %c0_184 = arith.constant 0 : index
    %225 = vector.load %arg20[%c288, %c0_184] : memref<496x200xf32, #tpu.memory_space<vmem>>, vector<16x200xf32>
    tpu.vector_store %arg20[%c288, %c0_184], %224 {strides = array<i32>} : memref<496x200xf32, #tpu.memory_space<vmem>>, vector<16x200xf32>,
    %226 = vector.extract_strided_slice %187 {offsets = [0, 19], sizes = [16, 200], strides = [1, 1]} : vector<16x230xf32> to vector<16x200xf32>
    %c304 = arith.constant 304 : index
    %c0_185 = arith.constant 0 : index
    %227 = vector.load %arg20[%c304, %c0_185] : memref<496x200xf32, #tpu.memory_space<vmem>>, vector<16x200xf32>
    tpu.vector_store %arg20[%c304, %c0_185], %226 {strides = array<i32>} : memref<496x200xf32, #tpu.memory_space<vmem>>, vector<16x200xf32>,
    %228 = vector.extract_strided_slice %187 {offsets = [0, 20], sizes = [16, 200], strides = [1, 1]} : vector<16x230xf32> to vector<16x200xf32>
    %c320 = arith.constant 320 : index
    %c0_186 = arith.constant 0 : index
    %229 = vector.load %arg20[%c320, %c0_186] : memref<496x200xf32, #tpu.memory_space<vmem>>, vector<16x200xf32>
    tpu.vector_store %arg20[%c320, %c0_186], %228 {strides = array<i32>} : memref<496x200xf32, #tpu.memory_space<vmem>>, vector<16x200xf32>,
    %230 = vector.extract_strided_slice %187 {offsets = [0, 21], sizes = [16, 200], strides = [1, 1]} : vector<16x230xf32> to vector<16x200xf32>
    %c336 = arith.constant 336 : index
    %c0_187 = arith.constant 0 : index
    %231 = vector.load %arg20[%c336, %c0_187] : memref<496x200xf32, #tpu.memory_space<vmem>>, vector<16x200xf32>
    tpu.vector_store %arg20[%c336, %c0_187], %230 {strides = array<i32>} : memref<496x200xf32, #tpu.memory_space<vmem>>, vector<16x200xf32>,
    %232 = vector.extract_strided_slice %187 {offsets = [0, 22], sizes = [16, 200], strides = [1, 1]} : vector<16x230xf32> to vector<16x200xf32>
    %c352 = arith.constant 352 : index
    %c0_188 = arith.constant 0 : index
    %233 = vector.load %arg20[%c352, %c0_188] : memref<496x200xf32, #tpu.memory_space<vmem>>, vector<16x200xf32>
    tpu.vector_store %arg20[%c352, %c0_188], %232 {strides = array<i32>} : memref<496x200xf32, #tpu.memory_space<vmem>>, vector<16x200xf32>,
    %234 = vector.extract_strided_slice %187 {offsets = [0, 23], sizes = [16, 200], strides = [1, 1]} : vector<16x230xf32> to vector<16x200xf32>
    %c368 = arith.constant 368 : index
    %c0_189 = arith.constant 0 : index
    %235 = vector.load %arg20[%c368, %c0_189] : memref<496x200xf32, #tpu.memory_space<vmem>>, vector<16x200xf32>
    tpu.vector_store %arg20[%c368, %c0_189], %234 {strides = array<i32>} : memref<496x200xf32, #tpu.memory_space<vmem>>, vector<16x200xf32>,
    %236 = vector.extract_strided_slice %187 {offsets = [0, 24], sizes = [16, 200], strides = [1, 1]} : vector<16x230xf32> to vector<16x200xf32>
    %c384 = arith.constant 384 : index
    %c0_190 = arith.constant 0 : index
    %237 = vector.load %arg20[%c384, %c0_190] : memref<496x200xf32, #tpu.memory_space<vmem>>, vector<16x200xf32>
    tpu.vector_store %arg20[%c384, %c0_190], %236 {strides = array<i32>} : memref<496x200xf32, #tpu.memory_space<vmem>>, vector<16x200xf32>,
    %238 = vector.extract_strided_slice %187 {offsets = [0, 25], sizes = [16, 200], strides = [1, 1]} : vector<16x230xf32> to vector<16x200xf32>
    %c400 = arith.constant 400 : index
    %c0_191 = arith.constant 0 : index
    %239 = vector.load %arg20[%c400, %c0_191] : memref<496x200xf32, #tpu.memory_space<vmem>>, vector<16x200xf32>
    tpu.vector_store %arg20[%c400, %c0_191], %238 {strides = array<i32>} : memref<496x200xf32, #tpu.memory_space<vmem>>, vector<16x200xf32>,
    %240 = vector.extract_strided_slice %187 {offsets = [0, 26], sizes = [16, 200], strides = [1, 1]} : vector<16x230xf32> to vector<16x200xf32>
    %c416 = arith.constant 416 : index
    %c0_192 = arith.constant 0 : index
    %241 = vector.load %arg20[%c416, %c0_192] : memref<496x200xf32, #tpu.memory_space<vmem>>, vector<16x200xf32>
    tpu.vector_store %arg20[%c416, %c0_192], %240 {strides = array<i32>} : memref<496x200xf32, #tpu.memory_space<vmem>>, vector<16x200xf32>,
    %242 = vector.extract_strided_slice %187 {offsets = [0, 27], sizes = [16, 200], strides = [1, 1]} : vector<16x230xf32> to vector<16x200xf32>
    %c432 = arith.constant 432 : index
    %c0_193 = arith.constant 0 : index
    %243 = vector.load %arg20[%c432, %c0_193] : memref<496x200xf32, #tpu.memory_space<vmem>>, vector<16x200xf32>
    tpu.vector_store %arg20[%c432, %c0_193], %242 {strides = array<i32>} : memref<496x200xf32, #tpu.memory_space<vmem>>, vector<16x200xf32>,
    %244 = vector.extract_strided_slice %187 {offsets = [0, 28], sizes = [16, 200], strides = [1, 1]} : vector<16x230xf32> to vector<16x200xf32>
    %c448 = arith.constant 448 : index
    %c0_194 = arith.constant 0 : index
    %245 = vector.load %arg20[%c448, %c0_194] : memref<496x200xf32, #tpu.memory_space<vmem>>, vector<16x200xf32>
    tpu.vector_store %arg20[%c448, %c0_194], %244 {strides = array<i32>} : memref<496x200xf32, #tpu.memory_space<vmem>>, vector<16x200xf32>,
    %246 = vector.extract_strided_slice %187 {offsets = [0, 29], sizes = [16, 200], strides = [1, 1]} : vector<16x230xf32> to vector<16x200xf32>
    %c464 = arith.constant 464 : index
    %c0_195 = arith.constant 0 : index
    %247 = vector.load %arg20[%c464, %c0_195] : memref<496x200xf32, #tpu.memory_space<vmem>>, vector<16x200xf32>
    tpu.vector_store %arg20[%c464, %c0_195], %246 {strides = array<i32>} : memref<496x200xf32, #tpu.memory_space<vmem>>, vector<16x200xf32>,
    %248 = vector.extract_strided_slice %187 {offsets = [0, 30], sizes = [16, 200], strides = [1, 1]} : vector<16x230xf32> to vector<16x200xf32>
    %c480 = arith.constant 480 : index
    %c0_196 = arith.constant 0 : index
    %249 = vector.load %arg20[%c480, %c0_196] : memref<496x200xf32, #tpu.memory_space<vmem>>, vector<16x200xf32>
    tpu.vector_store %arg20[%c480, %c0_196], %248 {strides = array<i32>} : memref<496x200xf32, #tpu.memory_space<vmem>>, vector<16x200xf32>,
    %c0_197 = arith.constant 0 : index
    %c0_198 = arith.constant 0 : index
    %250 = vector.load %arg12[%c0_197, %c0_198] : memref<4x496xf32, #tpu.memory_space<vmem>>, vector<4x496xf32>
    %c0_199 = arith.constant 0 : index
    %c0_200 = arith.constant 0 : index
    %251 = vector.load %arg20[%c0_199, %c0_200] : memref<496x200xf32, #tpu.memory_space<vmem>>, vector<496x200xf32>
    %cst_201 = arith.constant dense<0.000000e+00> : vector<4x200xf32>
    %252 = tpu.matmul %250, %251, %cst_201 {dimension_numbers = #tpu.dot_dimension_numbers<[1], [0], [0], [1], [0, 0, 1, 1], [], []>} : vector<4x496xf32>, vector<496x200xf32>, vector<4x200xf32> -> vector<4x200xf32>
    %c0_202 = arith.constant 0 : index
    %c0_203 = arith.constant 0 : index
    %253 = vector.load %arg13[%c0_202, %c0_203] : memref<4x1xf32, #tpu.memory_space<vmem>>, vector<4x1xf32>
    %254 = vector.broadcast %253 : vector<4x1xf32> to vector<4x200xf32>
    %255 = arith.addf %252, %254 : vector<4x200xf32>
    %c0_204 = arith.constant 0 : index
    %c0_205 = arith.constant 0 : index
    %c0_206 = arith.constant 0 : index
    %256 = vector.load %arg14[%c0_204, %c0_205, %c0_206] : memref<1x4x200xf32, #tpu.memory_space<vmem>>, vector<1x4x200xf32>
    %257 = vector.shape_cast %256 : vector<1x4x200xf32> to vector<4x200xf32>
    %258 = vector.shape_cast %255 : vector<4x200xf32> to vector<1x4x200xf32>
    tpu.vector_store %arg14[%c0_204, %c0_205, %c0_206], %258 {strides = array<i32>} : memref<1x4x200xf32, #tpu.memory_space<vmem>>, vector<1x4x200xf32>,
    return
  }
}

</mosaic_0001>

<bundles_post_ra>
// kernel: forward.1
= control target key start
LH: loop header
LB: loop body
LE: loop exit
PB: predicated region body
PF: predicated region fallthrough
CT: control target
= control target key end

     0   :  { %s4645_s0 = inlined_call_operand.vmem [shape: f32[1,4,200], index: 0, kind: input, shape index: {}]   ;;  %s4646_s1 = inlined_call_operand.vmem [shape: f32[16,84], index: 1, kind: input, shape index: {}]   ;;  %s4647_s2 = inlined_call_operand.vmem [shape: f32[16,1], index: 2, kind: input, shape index: {}]   ;;  %s4648_s3 = inlined_call_operand.vmem [shape: f32[179,90], index: 3, kind: input, shape index: {}]   ;;  %s4649_s4 = inlined_call_operand.vmem [shape: f32[8,176], index: 4, kind: input, shape index: {}]   ;;  %s4650_s5 = inlined_call_operand.vmem [shape: f32[8,1], index: 5, kind: input, shape index: {}]   ;;  %s4651_s6 = inlined_call_operand.vmem [shape: f32[4,79,20], index: 6, kind: input, shape index: {}]   ;;  %s4652_s7 = inlined_call_operand.vmem [shape: f32[1,20], index: 7, kind: input, shape index: {}]   ;;  %s4653_s8 = inlined_call_operand.vmem [shape: f32[4,20,160], index: 8, kind: input, shape index: {}]   ;;  %s4654_s9 = inlined_call_operand.vmem [shape: f32[4,160], index: 9, kind: input, shape index: {}]   ;;  %s4655_s10 = inlined_call_operand.vmem [shape: f32[16,44], index: 10, kind: input, shape index: {}]   ;;  %s4656_s11 = inlined_call_operand.vmem [shape: f32[16,1], index: 11, kind: input, shape index: {}]   ;;  %s4657_s12 = inlined_call_operand.vmem [shape: f32[4,496], index: 12, kind: input, shape index: {}]   ;;  %s4658_s13 = inlined_call_operand.vmem [shape: f32[4,1], index: 13, kind: input, shape index: {}]   ;;  %s4659_s14 = inlined_call_operand.hbm [shape: f32[1,4,200], index: 14, kind: output, shape index: {0}]   ;;  %s4660_s15 = inlined_call_operand.hbm [shape: f32[1,20], index: 15, kind: output, shape index: {1}]   ;;  %s4661_s16 = inlined_call_operand.hbm [shape: f32[1,20], index: 16, kind: output, shape index: {2}]  }
   0x1   :  { %4712 = sst [smem:[#allocation15_spill]] %s4645_s0 }
   0x2   :  { %22 = vsyncpa [#allocation9], 0  ;;  %s4713_s23 = sld [smem:[#allocation15_spill]]  ;;  %vm57_vm0 = vcmask 420864   ;;  %s3378_s24 = smov 126  }
   0x8   :  { %v3507_v0 = vld [vmem:[%s4713_s23] sm:$0xff] }
   0x9   :  { %71 = vrot.lane.b32.xlu1 %v3507_v0, %s3378_s24  ;;  %56 = vst [vmem:[#allocation2] sm:$0xf] %v3507_v0  ;;  %v59_v1 = vcombine.low %v3507_v0, %v3507_v0  ;;  %v54_v2 = vcombine.high %v3507_v0, %v3507_v0 }
   0xa   :  { %23 = vsyncpa [#allocation11], 0  ;;  %s3379_s25 = smov 127   ;;  %s3380_s26 = smov 125   ;;  %v3398_v3 = vmov 0.0   ;;  %v285_v4 = vld [vmem:[%s4647_s2] sm:$0xff] }
   0xb   :  { %60 = vrot.lane.b32.xlu0 %v59_v1, %s3379_s25  ;;  %58 = vst.msk [vmem:[#allocation2 + $0x8] sm:$0xf] %vm57_vm0, %v54_v2  ;;  %s3381_s27 = smov 124   ;;  %s3382_s28 = smov 123   ;;  %375 = vmatprep.mubr.f32.mxu0 %v3398_v3  ;;  %1802 = vst [vmem:[#allocation7] sm:$0xff] %v3398_v3  ;;  %v286_v5 = vld [vmem:[%s4647_s2 + $0x8] sm:$0xff] }
   0xc   :  { %s3383_s29 = smov 122   ;;  %s4694_s30 = smov 121   ;;  %1805 = vst [vmem:[#allocation7 + $0x10] sm:$0xff] %v3398_v3  ;;  %v3399_v6 = vmov 0   ;;  %vm75_vm1 = vcmask 1031168   ;;  %vm64_vm2 = vcmask 1039360  }
   0xd   :  { %73 = vrot.lane.b32.xlu1 %v54_v2, %s3378_s24  ;;  %s3385_s0 = smov 120   ;;  %s4691_s17 = smov 119   ;;  %3299 = vset.pattern.permute.xlu0 %v3399_v6  ;;  %vm69_vm3 = vcmask 424964   ;;  %vm85_vm4 = vcmask 1022976   ;;  %vm95_vm5 = vcmask 1014784   ;;  %vm105_vm6 = vcmask 1006592  }
   0xe   :  { %s4678_s18 = smov 118   ;;  %s4662_s19 = smov 117   ;;  %3300 = vset.pattern.permute.xlu1 %v3399_v6  ;;  %vm115_vm7 = vcmask 998400   ;;  %vm125_vm8 = vcmask 990208   ;;  %vm135_vm9 = vcmask 982016   ;;  %vm145_vm10 = vcmask 973824  }
   0xf   :  { %62 = vrot.lane.b32.xlu0 %v3507_v0, %s3379_s25  ;;  %s4664_s20 = smov 116   ;;  %s4666_s21 = smov 115   ;;  %vm155_vm11 = vcmask 965632   ;;  %vm4682_vm12 = vcmask 957440   ;;  %vm4680_vm13 = vcmask 949248   ;;  %vm4681_vm14 = vcmask 941056  }
  0x10   :  { %s4668_s22 = smov 114   ;;  %s4670_s23 = smov 113   ;;  %vm4697_vm15 = vcmask 932864  }
  0x11   :  { %83 = vrot.lane.b32.xlu1 %v3507_v0, %s3380_s26  ;;  %s4702_s2 = smov 103  }
  0x13   :  { %81 = vrot.lane.b32.xlu0 %v59_v1, %s3380_s26 }
  0x15   :  { %93 = vrot.lane.b32.xlu1 %v54_v2, %s3381_s27 }
  0x17   :  { %91 = vrot.lane.b32.xlu0 %v3507_v0, %s3381_s27 }
  0x19   :  { %103 = vrot.lane.b32.xlu1 %v3507_v0, %s3382_s28 }
  0x1b   :  { %101 = vrot.lane.b32.xlu0 %v59_v1, %s3382_s28 }
  0x1d   :  { %113 = vrot.lane.b32.xlu1 %v54_v2, %s3383_s29 }
  0x1f   :  { %111 = vrot.lane.b32.xlu0 %v3507_v0, %s3383_s29 }
  0x21   :  { %123 = vrot.lane.b32.xlu1 %v3507_v0, %s4694_s30 }
  0x23   :  { %121 = vrot.lane.b32.xlu0 %v59_v1, %s4694_s30 }
  0x25   :  { %133 = vrot.lane.b32.xlu1 %v54_v2, %s3385_s0 }
  0x27   :  { %131 = vrot.lane.b32.xlu0 %v3507_v0, %s3385_s0 }
  0x29   :  { %143 = vrot.lane.b32.xlu1 %v3507_v0, %s4691_s17 }
  0x2b   :  { %141 = vrot.lane.b32.xlu0 %v59_v1, %s4691_s17  ;;  %s4700_s17 = smov 104  }
  0x2d   :  { %153 = vrot.lane.b32.xlu1 %v54_v2, %s4678_s18 }
  0x2f   :  { %151 = vrot.lane.b32.xlu0 %v3507_v0, %s4678_s18  ;;  %s4719_s18 = smov 117  }
  0x31   :  { %163 = vrot.lane.b32.xlu1 %v3507_v0, %s4662_s19 }
  0x33   :  { %161 = vrot.lane.b32.xlu0 %v59_v1, %s4662_s19  ;;  %s4676_s19 = smov 112  }
  0x35   :  { %173 = vrot.lane.b32.xlu1 %v54_v2, %s4664_s20 }
  0x37   :  { %171 = vrot.lane.b32.xlu0 %v3507_v0, %s4664_s20  ;;  %s4674_s20 = smov 111  }
  0x39   :  { %183 = vrot.lane.b32.xlu1 %v3507_v0, %s4666_s21 }
  0x3b   :  { %181 = vrot.lane.b32.xlu0 %v59_v1, %s4666_s21  ;;  %s4672_s21 = smov 110  }
  0x3d   :  { %193 = vrot.lane.b32.xlu1 %v54_v2, %s4668_s22 }
  0x3f   :  { %191 = vrot.lane.b32.xlu0 %v3507_v0, %s4668_s22  ;;  %s4689_s22 = smov 109  }
  0x41   :  { %203 = vrot.lane.b32.xlu1 %v3507_v0, %s4670_s23 }
  0x43   :  { %201 = vrot.lane.b32.xlu0 %v59_v1, %s4670_s23  ;;  %s4687_s23 = smov 108  }
  0x45   :  { %213 = vrot.lane.b32.xlu1 %v54_v2, %s4676_s19 }
  0x47   :  { %211 = vrot.lane.b32.xlu0 %v3507_v0, %s4676_s19  ;;  %s4726_s19 = smov 110  }
  0x49   :  { %223 = vrot.lane.b32.xlu1 %v3507_v0, %s4674_s20 }
  0x4b   :  { %221 = vrot.lane.b32.xlu0 %v59_v1, %s4674_s20  ;;  %s4728_s20 = smov 108  }
  0x4d   :  { %233 = vrot.lane.b32.xlu1 %v54_v2, %s4672_s21 }
  0x4f   :  { %231 = vrot.lane.b32.xlu0 %v3507_v0, %s4672_s21  ;;  %s4698_s21 = smov 105  }
  0x51   :  { %243 = vrot.lane.b32.xlu1 %v3507_v0, %s4689_s22 }
  0x53   :  { %241 = vrot.lane.b32.xlu0 %v59_v1, %s4689_s22  ;;  %s4715_s22 = smov 118  }
  0x55   :  { %253 = vrot.lane.b32.xlu1 %v54_v2, %s4687_s23 }
  0x57   :  { %251 = vrot.lane.b32.xlu0 %v3507_v0, %s4687_s23  ;;  %s4727_s23 = smov 109  }
  0x59   :  { %294 = vperm.xlu1 %3300, %v286_v5  }
  0x5b   :  { %289 = vperm.xlu0 %3299, %v285_v4  }
  0x7b   :  { %v72_v7 = vpop.permute.xlu1 %71 }
  0x7d   :  { %v61_v8 = vpop.permute.xlu0 %60 }
  0x7f   :  { %v74_v9 = vpop.permute.xlu1 %73 }
  0x80   :  { %v76_v10 = vsel %vm75_vm1, %v72_v7, %v74_v9  ;;  %80 = vst.msk [vmem:[#allocation2 + $0x18] sm:$0xf] %vm57_vm0, %v74_v9 }
  0x81   :  { %79 = vst [vmem:[#allocation2 + $0x10] sm:$0xf] %v76_v10  ;;  %v63_v11 = vpop.permute.xlu0 %62 }
  0x82   :  { %v65_v12 = vsel %vm64_vm2, %v61_v8, %v63_v11  ;;  %70 = vst.msk [vmem:[#allocation2 + $0x8] sm:$0xf0] %vm69_vm3, %v63_v11 }
  0x83   :  { %68 = vst [vmem:[#allocation2] sm:$0xf0] %v65_v12  ;;  %v84_v13 = vpop.permute.xlu1 %83 }
  0x84   :  { %90 = vst.msk [vmem:[#allocation2 + $0x18] sm:$0xf0] %vm69_vm3, %v84_v13 }
  0x85   :  { %v82_v14 = vpop.permute.xlu0 %81 }
  0x86   :  { %v86_v15 = vsel %vm85_vm4, %v82_v14, %v84_v13 }
  0x87   :  { %89 = vst [vmem:[#allocation2 + $0x10] sm:$0xf0] %v86_v15  ;;  %v94_v16 = vpop.permute.xlu1 %93 }
  0x88   :  { %100 = vst.msk [vmem:[#allocation2 + $0x28] sm:$0xf] %vm57_vm0, %v94_v16 }
  0x89   :  { %v92_v17 = vpop.permute.xlu0 %91  ;;  %v264_v20 = vld [vmem:[#allocation2 + $0x8] sm:$0xff] }
  0x8a   :  { %v96_v18 = vsel %vm95_vm5, %v92_v17, %v94_v16  ;;  %v263_v25 = vld [vmem:[#allocation2] sm:$0xff] }
  0x8b   :  { %99 = vst [vmem:[#allocation2 + $0x20] sm:$0xf] %v96_v18  ;;  %v104_v19 = vpop.permute.xlu1 %103  ;;  %v266_v21 = vld [vmem:[#allocation2 + $0x18] sm:$0xff] }
  0x8c   :  { %110 = vst.msk [vmem:[#allocation2 + $0x28] sm:$0xf0] %vm69_vm3, %v104_v19  ;;  %v2943_v22 = vpack.c.bf16 %v266_v21, %v264_v20 }
  0x8d   :  { %v102_v23 = vpop.permute.xlu0 %101 }
  0x8e   :  { %v106_v24 = vsel %vm105_vm6, %v102_v23, %v104_v19  ;;  %2944 = vmatprep.subr.bf16.mxu0 %v2943_v22  ;;  %v265_v26 = vld [vmem:[#allocation2 + $0x10] sm:$0xff] }
  0x8f   :  { %109 = vst [vmem:[#allocation2 + $0x20] sm:$0xf0] %v106_v24  ;;  %v114_v27 = vpop.permute.xlu1 %113  ;;  %v2945_v28 = vpack.c.bf16 %v265_v26, %v263_v25 }
  0x90   :  { %120 = vst.msk [vmem:[#allocation2 + $0x38] sm:$0xf] %vm57_vm0, %v114_v27 }
  0x91   :  { %v112_v29 = vpop.permute.xlu0 %111  ;;  %2946 = vmatpush1.bf16.msra.mxu0 %v2945_v28 }
  0x92   :  { %v116_v30 = vsel %vm115_vm7, %v112_v29, %v114_v27 }
  0x93   :  { %119 = vst [vmem:[#allocation2 + $0x30] sm:$0xf] %v116_v30  ;;  %v124_v31 = vpop.permute.xlu1 %123  ;;  %v268_v38 = vld [vmem:[#allocation2 + $0x28] sm:$0xff] }
  0x94   :  { %130 = vst.msk [vmem:[#allocation2 + $0x38] sm:$0xf0] %vm69_vm3, %v124_v31 }
  0x95   :  { %v122_v32 = vpop.permute.xlu0 %121 }
  0x96   :  { %v126_v33 = vsel %vm125_vm8, %v122_v32, %v124_v31  ;;  %v267_v43 = vld [vmem:[#allocation2 + $0x20] sm:$0xff] }
  0x97   :  { %129 = vst [vmem:[#allocation2 + $0x30] sm:$0xf0] %v126_v33  ;;  %v134_v34 = vpop.permute.xlu1 %133 }
  0x98   :  { %140 = vst.msk [vmem:[#allocation2 + $0x48] sm:$0xf] %vm57_vm0, %v134_v34 }
  0x99   :  { %v132_v35 = vpop.permute.xlu0 %131 }
  0x9a   :  { %v136_v36 = vsel %vm135_vm9, %v132_v35, %v134_v34 }
  0x9b   :  { %139 = vst [vmem:[#allocation2 + $0x40] sm:$0xf] %v136_v36  ;;  %v144_v37 = vpop.permute.xlu1 %143  ;;  %v270_v39 = vld [vmem:[#allocation2 + $0x38] sm:$0xff]  ;;  %v261_v36 = vld [vmem:[%s4646_s1] sm:$0xff] }
  0x9c   :  { %150 = vst.msk [vmem:[#allocation2 + $0x48] sm:$0xf0] %vm69_vm3, %v144_v37  ;;  %v2947_v40 = vpack.c.bf16 %v270_v39, %v268_v38  ;;  %v414_v38 = vld [vmem:[%s4648_s3] sm:$0xff]  ;;  %v415_v39 = vld [vmem:[%s4648_s3 + $0x8] sm:$0xff] }
  0x9d   :  { %v142_v41 = vpop.permute.xlu0 %141 }
  0x9e   :  { %v146_v42 = vsel %vm145_vm10, %v142_v41, %v144_v37  ;;  %2948 = vmatprep.subr.bf16.mxu0 %v2947_v40  ;;  %v269_v44 = vld [vmem:[#allocation2 + $0x30] sm:$0xff]  ;;  %v262_v37 = vld [vmem:[%s4646_s1 + $0x8] sm:$0xff]  ;;  %v3400_v41 = vmov 0.0|0.0   ;;  %s3404_s1 = smov 10  }
  0x9f   :  { %149 = vst [vmem:[#allocation2 + $0x40] sm:$0xf0] %v146_v42  ;;  %v154_v45 = vpop.permute.xlu1 %153  ;;  %v2949_v46 = vpack.c.bf16 %v269_v44, %v267_v43  ;;  %v416_v40 = vld [vmem:[%s4648_s3 + $0x10] sm:$0xff]  ;;  %2963 = vmatprep.subr.bf16.mxu1 %v3400_v41  ;;  %v2964_v42 = vpack.c.bf16 %v415_v39, %v414_v38  ;;  %v417_v43 = vld [vmem:[%s4648_s3 + $0x18] sm:$0xff] }
  0xa0   :  { %160 = vst.msk [vmem:[#allocation2 + $0x58] sm:$0xf] %vm57_vm0, %v154_v45  ;;  %v2967_v44 = vpack.c.bf16 %v417_v43, %v416_v40  ;;  %v609_v43 = vld [vmem:[%s4649_s4 + $0x8] sm:$0xff] }
  0xa1   :  { %v152_v47 = vpop.permute.xlu0 %151  ;;  %2950 = vmatpush1.bf16.msra.mxu0 %v2949_v46  ;;  %2965 = vmatpush1.bf16.msra.mxu1 %v2964_v42  ;;  %v419_v46 = vld [vmem:[%s4648_s3 + $0x28] sm:$0xff]  ;;  %v632_v42 = vld [vmem:[%s4650_s5] sm:$0xff]  ;;  %s4723_s5 = smov 113  }
  0xa2   :  { %v156_v48 = vsel %vm155_vm11, %v152_v47, %v154_v45  ;;  %2966 = vmatprep.subr.bf16.mxu1 %v3400_v41  ;;  %v418_v45 = vld [vmem:[%s4648_s3 + $0x20] sm:$0xff] }
  0xa3   :  { %159 = vst [vmem:[#allocation2 + $0x50] sm:$0xf] %v156_v48  ;;  %v164_v49 = vpop.permute.xlu1 %163  ;;  %v272_v56 = vld [vmem:[#allocation2 + $0x48] sm:$0xff]  ;;  %v2970_v47 = vpack.c.bf16 %v419_v46, %v418_v45  ;;  %v420_v48 = vld [vmem:[%s4648_s3 + $0x30] sm:$0xff] }
  0xa4   :  { %170 = vst.msk [vmem:[#allocation2 + $0x58] sm:$0xf0] %vm69_vm3, %v164_v49 }
  0xa5   :  { %v162_v50 = vpop.permute.xlu0 %161  ;;  %2968 = vmatpush1.bf16.msra.mxu1 %v2967_v44 }
  0xa6   :  { %v166_v51 = vsel %vm4682_vm12, %v162_v50, %v164_v49  ;;  %v271_v61 = vld [vmem:[#allocation2 + $0x40] sm:$0xff]  ;;  %vm4685_vm12 = vcmask 908288   ;;  %2969 = vmatprep.subr.bf16.mxu1 %v3400_v41  ;;  %v421_v49 = vld [vmem:[%s4648_s3 + $0x38] sm:$0xff] }
  0xa7   :  { %169 = vst [vmem:[#allocation2 + $0x50] sm:$0xf0] %v166_v51  ;;  %v174_v52 = vpop.permute.xlu1 %173  ;;  %v2973_v50 = vpack.c.bf16 %v421_v49, %v420_v48  ;;  %v422_v51 = vld [vmem:[%s4648_s3 + $0x40] sm:$0xff] }
  0xa8   :  { %180 = vst.msk [vmem:[#allocation2 + $0x68] sm:$0xf] %vm57_vm0, %v174_v52 }
  0xa9   :  { %v172_v53 = vpop.permute.xlu0 %171  ;;  %2971 = vmatpush1.bf16.msra.mxu1 %v2970_v47 }
  0xaa   :  { %v176_v54 = vsel %vm4680_vm13, %v172_v53, %v174_v52  ;;  %vm4683_vm13 = vcmask 924672   ;;  %2972 = vmatprep.subr.bf16.mxu1 %v3400_v41  ;;  %v423_v52 = vld [vmem:[%s4648_s3 + $0x48] sm:$0xff] }
  0xab   :  { %179 = vst [vmem:[#allocation2 + $0x60] sm:$0xf] %v176_v54  ;;  %v184_v55 = vpop.permute.xlu1 %183  ;;  %v274_v57 = vld [vmem:[#allocation2 + $0x58] sm:$0xff]  ;;  %v2976_v53 = vpack.c.bf16 %v423_v52, %v422_v51  ;;  %v424_v54 = vld [vmem:[%s4648_s3 + $0x50] sm:$0xff] }
  0xac   :  { %190 = vst.msk [vmem:[#allocation2 + $0x68] sm:$0xf0] %vm69_vm3, %v184_v55  ;;  %v2951_v58 = vpack.c.bf16 %v274_v57, %v272_v56  ;;  %v426_v57 = vld [vmem:[%s4648_s3 + $0x60] sm:$0xff] }
  0xad   :  { %v182_v59 = vpop.permute.xlu0 %181  ;;  %2974 = vmatpush1.bf16.msra.mxu1 %v2973_v50 }
  0xae   :  { %v186_v60 = vsel %vm4681_vm14, %v182_v59, %v184_v55  ;;  %2952 = vmatprep.subr.bf16.mxu0 %v2951_v58  ;;  %v273_v62 = vld [vmem:[#allocation2 + $0x50] sm:$0xff]  ;;  %vm4684_vm14 = vcmask 916480   ;;  %2975 = vmatprep.subr.bf16.mxu1 %v3400_v41  ;;  %v425_v55 = vld [vmem:[%s4648_s3 + $0x58] sm:$0xff]  ;;  %v427_v58 = vld [vmem:[%s4648_s3 + $0x68] sm:$0xff] }
  0xaf   :  { %189 = vst [vmem:[#allocation2 + $0x60] sm:$0xf0] %v186_v60  ;;  %v194_v63 = vpop.permute.xlu1 %193  ;;  %v2953_v0 = vpack.c.bf16 %v273_v62, %v271_v61  ;;  %v2979_v56 = vpack.c.bf16 %v425_v55, %v424_v54  ;;  %v2982_v59 = vpack.c.bf16 %v427_v58, %v426_v57  ;;  %v428_v60 = vld [vmem:[%s4648_s3 + $0x70] sm:$0xff]  ;;  %v429_v61 = vld [vmem:[%s4648_s3 + $0x78] sm:$0xff] }
  0xb0   :  { %200 = vst.msk [vmem:[#allocation2 + $0x78] sm:$0xf] %vm57_vm0, %v194_v63  ;;  %v2985_v62 = vpack.c.bf16 %v429_v61, %v428_v60 }
  0xb1   :  { %v192_v1 = vpop.permute.xlu0 %191  ;;  %2954 = vmatpush1.bf16.msra.mxu0 %v2953_v0  ;;  %2977 = vmatpush1.bf16.msra.mxu1 %v2976_v53  ;;  %v431_v0 = vld [vmem:[%s4648_s3 + $0x88] sm:$0xff] }
  0xb2   :  { %v196_v2 = vsel %vm4697_vm15, %v192_v1, %v194_v63  ;;  %2978 = vmatprep.subr.bf16.mxu1 %v3400_v41  ;;  %v430_v63 = vld [vmem:[%s4648_s3 + $0x80] sm:$0xff]  ;;  %vm3402_vm15 = vmmov 0  }
  0xb3   :  { %199 = vst [vmem:[#allocation2 + $0x70] sm:$0xf] %v196_v2  ;;  %v204_v4 = vpop.permute.xlu1 %203  ;;  %v276_v11 = vld [vmem:[#allocation2 + $0x68] sm:$0xff]  ;;  %v2988_v1 = vpack.c.bf16 %v431_v0, %v430_v63  ;;  %v432_v2 = vld [vmem:[%s4648_s3 + $0x90] sm:$0xff] }
  0xb4   :  { %210 = vst.msk [vmem:[#allocation2 + $0x78] sm:$0xf0] %vm69_vm3, %v204_v4 }
  0xb5   :  { %v202_v5 = vpop.permute.xlu0 %201  ;;  %2980 = vmatpush1.bf16.msra.mxu1 %v2979_v56 }
  0xb6   :  { %v206_v6 = vsel %vm4683_vm13, %v202_v5, %v204_v4  ;;  %v275_v16 = vld [vmem:[#allocation2 + $0x60] sm:$0xff]  ;;  %vm4686_vm13 = vcmask 900096   ;;  %2981 = vmatprep.subr.bf16.mxu1 %v3400_v41  ;;  %v433_v4 = vld [vmem:[%s4648_s3 + $0x98] sm:$0xff] }
  0xb7   :  { %209 = vst [vmem:[#allocation2 + $0x70] sm:$0xf0] %v206_v6  ;;  %v214_v7 = vpop.permute.xlu1 %213  ;;  %v2991_v5 = vpack.c.bf16 %v433_v4, %v432_v2  ;;  %v434_v6 = vld [vmem:[%s4648_s3 + $0xa0] sm:$0xff] }
  0xb8   :  { %220 = vst.msk [vmem:[#allocation2 + $0x88] sm:$0xf] %vm57_vm0, %v214_v7 }
  0xb9   :  { %v212_v8 = vpop.permute.xlu0 %211  ;;  %2983 = vmatpush1.bf16.msra.mxu1 %v2982_v59 }
  0xba   :  { %v216_v9 = vsel %vm4684_vm14, %v212_v8, %v214_v7  ;;  %vm4696_vm14 = vcmask 891904   ;;  %2984 = vmatprep.subr.bf16.mxu1 %v3400_v41  ;;  %v435_v7 = vld [vmem:[%s4648_s3 + $0xa8] sm:$0xff] }
  0xbb   :  { %219 = vst [vmem:[#allocation2 + $0x80] sm:$0xf] %v216_v9  ;;  %v224_v10 = vpop.permute.xlu1 %223  ;;  %v278_v12 = vld [vmem:[#allocation2 + $0x78] sm:$0xff]  ;;  %v2994_v8 = vpack.c.bf16 %v435_v7, %v434_v6  ;;  %v436_v9 = vld [vmem:[%s4648_s3 + $0xb0] sm:$0x7]  ;;  %s4714_s3 = smov 119  }
  0xbc   :  { %230 = vst.msk [vmem:[#allocation2 + $0x88] sm:$0xf0] %vm69_vm3, %v224_v10  ;;  %v2955_v13 = vpack.c.bf16 %v278_v12, %v276_v11 }
  0xbd   :  { %v222_v14 = vpop.permute.xlu0 %221  ;;  %2986 = vmatpush1.bf16.msra.mxu1 %v2985_v62 }
  0xbe   :  { %v226_v15 = vsel %vm4685_vm12, %v222_v14, %v224_v10  ;;  %2956 = vmatprep.subr.bf16.mxu0 %v2955_v13  ;;  %v277_v17 = vld [vmem:[#allocation2 + $0x70] sm:$0xff]  ;;  %vm4693_vm12 = vcmask 883712   ;;  %2987 = vmatprep.subr.bf16.mxu1 %v3400_v41 }
  0xbf   :  { %229 = vst [vmem:[#allocation2 + $0x80] sm:$0xf0] %v226_v15  ;;  %v234_v18 = vpop.permute.xlu1 %233  ;;  %v2957_v19 = vpack.c.bf16 %v277_v17, %v275_v16 }
  0xc0   :  { %240 = vst.msk [vmem:[#allocation2 + $0x98] sm:$0xf] %vm57_vm0, %v234_v18 }
  0xc1   :  { %v232_v20 = vpop.permute.xlu0 %231  ;;  %2958 = vmatpush1.bf16.msra.mxu0 %v2957_v19  ;;  %2989 = vmatpush1.bf16.msra.mxu1 %v2988_v1 }
  0xc2   :  { %v236_v21 = vsel %vm4686_vm13, %v232_v20, %v234_v18  ;;  %vm4706_vm13 = vcmask 1043456   ;;  %2990 = vmatprep.subr.bf16.mxu1 %v3400_v41 }
  0xc3   :  { %239 = vst [vmem:[#allocation2 + $0x90] sm:$0xf] %v236_v21  ;;  %v244_v22 = vpop.permute.xlu1 %243  ;;  %v280_v28 = vld [vmem:[#allocation2 + $0x88] sm:$0xff] }
  0xc4   :  { %250 = vst.msk [vmem:[#allocation2 + $0x98] sm:$0xf0] %vm69_vm3, %v244_v22 }
  0xc5   :  { %v242_v23 = vpop.permute.xlu0 %241  ;;  %2992 = vmatpush1.bf16.msra.mxu1 %v2991_v5 }
  0xc6   :  { %v246_v24 = vsel %vm4696_vm14, %v242_v23, %v244_v22  ;;  %v279_v31 = vld [vmem:[#allocation2 + $0x80] sm:$0xff]  ;;  %2993 = vmatprep.subr.bf16.mxu1 %v3400_v41 }
  0xc7   :  { %249 = vst [vmem:[#allocation2 + $0x90] sm:$0xf0] %v246_v24  ;;  %v254_v25 = vpop.permute.xlu1 %253 }
  0xc8   :  { %260 = vst.msk [vmem:[#allocation2 + $0xa8] sm:$0xf] %vm57_vm0, %v254_v25  ;;  %vm297_vm0 = vcmask 687104  }
  0xc9   :  { %v252_v26 = vpop.permute.xlu0 %251  ;;  %2995 = vmatpush1.bf16.msra.mxu1 %v2994_v8 }
  0xca   :  { %v256_v27 = vsel %vm4693_vm12, %v252_v26, %v254_v25  ;;  %492 = vmatprep.subr.mxu1 %v3398_v3  ;;  %vm523_vm12 = vcmask 654336  }
  0xcb   :  { %259 = vst [vmem:[#allocation2 + $0xa0] sm:$0xf] %v256_v27  ;;  %v282_v29 = vld [vmem:[#allocation2 + $0x98] sm:$0xff] }
  0xcc   :  { %v2959_v30 = vpack.c.bf16 %v282_v29, %v280_v28 }
  0xce   :  { %2960 = vmatprep.subr.bf16.mxu0 %v2959_v30  ;;  %v281_v32 = vld [vmem:[#allocation2 + $0x90] sm:$0xff] }
  0xcf   :  { %v2961_v33 = vpack.c.bf16 %v281_v32, %v279_v31  ;;  %v284_v34 = vld [vmem:[#allocation2 + $0xa8] sm:$0xf] }
  0xd1   :  { %2962 = vmatpush1.bf16.msra.mxu0 %v2961_v33 }
  0xd2   :  { %2722 = vmatprep.subr.msk.mxu0 %vm4706_vm13, %v284_v34  ;;  %v283_v35 = vld [vmem:[#allocation2 + $0xa0] sm:$0xf] }
  0xd5   :  { %2723 = vmatpush1.msk.msra.mxu0 %vm4706_vm13, %v283_v35 }
  0xd6   :  { %2724 = vmatmul.mubr.msk.f32.vlgmr.msra.gmra.mrb[0].mxu0 %vm297_vm0, %v261_v36 }
  0xd7   :  { %381 = vmatprep.mubr.f32.mxu0 %v3398_v3 }
  0xd8   :  { %v295_v15 = vpop.permute.xlu1 %294 }
  0xda   :  { %2725 = vmatmul.mubr.msk.f32.gmra.mrb[2].mxu0 %vm297_vm0, %v262_v37  ;;  %vm444_vm0 = vcmask 1042432   ;;  %v290_v10 = vpop.permute.xlu0 %289 }
  0xdb   :  { %1304 = vmatprep.mubr.f32.mxu0 %v3398_v3  ;;  %2726 = vmatpush1.msk.msra.mxu1 %vm444_vm0, %v436_v9  ;;  %vm437_vm0 = vcmask 416768  }
  0xdc   :  { %2996 = vmatprep.subr.bf16.mxu1 %v3400_v41 }
 0x1a9   :  { %v377_v11 = vpop.f32.mrb[0].mxu0 }
 0x1aa   :  { %v378_v12 = vadd.f32 %v377_v11, %v290_v10  ;;  %v379_v13 = vpop.f32.mrb[1].mxu0 }
 0x1ab   :  { %v380_v14 = vadd.f32 %v379_v13, %v290_v10 }
 0x1ac   :  { %v388_v16 = vmax.f32 %v378_v12, 0.0 }
 0x1ad   :  { %v389_v17 = vmax.f32 %v380_v14, 0.0  ;;  %v383_v18 = vpop.f32.mrb[2].mxu0 }
 0x1ae   :  { %v384_v19 = vadd.f32 %v383_v18, %v295_v15  ;;  %v385_v20 = vpop.f32.mrb[3].mxu0  ;;  %396 = vrot.lane.b32.xlu1 %v388_v16, %s3379_s25 }
 0x1af   :  { %v386_v21 = vadd.f32 %v385_v20, %v295_v15  ;;  %398 = vrot.lane.b32.xlu0 %v389_v17, %s3379_s25 }
 0x1b0   :  { %v390_v22 = vmax.f32 %v384_v19, 0.0 }
 0x1b1   :  { %v391_v23 = vmax.f32 %v386_v21, 0.0 }
 0x1b2   :  { %400 = vrot.lane.b32.xlu1 %v390_v22, %s3379_s25 }
 0x1b3   :  { %402 = vrot.lane.b32.xlu0 %v391_v23, %s3379_s25 }
 0x220   :  { %v397_v24 = vpop.permute.xlu1 %396 }
 0x221   :  { %v399_v25 = vpop.permute.xlu0 %398 }
 0x222   :  { %v404_v26 = vsel %vm64_vm2, %v397_v24, %v399_v25  ;;  %v411_v27 = vmax.f32 %v389_v17, %v399_v25 }
 0x223   :  { %v410_v28 = vmax.f32 %v388_v16, %v404_v26 }
 0x224   :  { %2727 = vmatprep.mubr.msk.f32.mxu1 %vm437_vm0, %v411_v27  ;;  %v401_v29 = vpop.permute.xlu1 %400 }
 0x225   :  { %v403_v30 = vpop.permute.xlu0 %402  ;;  %513 = vmatmul.mubr.f32.vlgmr.msra.gmra.mrb[0].mxu1 %v410_v28 }
 0x226   :  { %v405_v31 = vsel %vm64_vm2, %v401_v29, %v403_v30  ;;  %v413_v32 = vmax.f32 %v391_v23, %v403_v30 }
 0x227   :  { %v412_v33 = vmax.f32 %v390_v22, %v405_v31  ;;  %v608_v31 = vld [vmem:[%s4649_s4] sm:$0xff]  ;;  %s4722_s4 = smov 114  }
 0x228   :  { %2728 = vmatprep.mubr.msk.f32.mxu1 %vm437_vm0, %v413_v32  ;;  %vm638_vm0 = vcmask 392192   ;;  %v726_v32 = vld [vmem:[%s4651_s6] sm:$0xff] }
 0x229   :  { %518 = vmatmul.mubr.f32.gmra.mrb[2].mxu1 %v412_v33  ;;  %v727_v33 = vld [vmem:[%s4651_s6 + $0x8] sm:$0xff] }
 0x22a   :  { %2729 = vmatprep.mubr.msk.f32.mxu1 %vm638_vm0, %v609_v43  ;;  %v733_v43 = vld [vmem:[%s4651_s6 + $0x38] sm:$0xff]  ;;  %vm3401_vm0 = vmmov 1  }
 0x2f8   :  { %v514_v34 = vpop.f32.mrb[0].mxu1 }
 0x2f9   :  { %524 = vst.msk [vmem:[#allocation3] sm:$0xff] %vm523_vm12, %v514_v34  ;;  %528 = vrot.lane.b32.xlu1 %v514_v34, %s3379_s25  ;;  %v516_v35 = vpop.f32.mrb[1].mxu1 }
 0x2fa   :  { %v3030_v35 = vpack.c.bf16 %v727_v33, %v726_v32 }
 0x2fc   :  { %v519_v36 = vpop.f32.mrb[2].mxu1 }
 0x2fd   :  { %525 = vst.msk [vmem:[#allocation3 + $0x8] sm:$0xff] %vm523_vm12, %v519_v36  ;;  %536 = vrot.lane.b32.xlu1 %v514_v34, %s3378_s24  ;;  %530 = vrot.lane.b32.xlu0 %v519_v36, %s3379_s25  ;;  %v521_v37 = vpop.f32.mrb[3].mxu1 }
 0x300   :  { %v610_v38 = vld [vmem:[#allocation3] sm:$0xff] }
 0x301   :  { %544 = vrot.lane.b32.xlu1 %v514_v34, %s3380_s26  ;;  %538 = vrot.lane.b32.xlu0 %v519_v36, %s3378_s24 }
 0x304   :  { %v611_v39 = vld [vmem:[#allocation3 + $0x8] sm:$0xff] }
 0x305   :  { %552 = vrot.lane.b32.xlu1 %v514_v34, %s3381_s27  ;;  %546 = vrot.lane.b32.xlu0 %v519_v36, %s3380_s26  ;;  %v2997_v40 = vpack.c.bf16 %v611_v39, %v610_v38  ;;  %v730_v38 = vld [vmem:[%s4651_s6 + $0x20] sm:$0xff]  ;;  %v731_v39 = vld [vmem:[%s4651_s6 + $0x28] sm:$0xff] }
 0x307   :  { %2998 = vmatpush1.bf16.msra.mxu1 %v2997_v40  ;;  %v3036_v40 = vpack.c.bf16 %v731_v39, %v730_v38  ;;  %v2761_v38 = vld [vmem:[%s4651_s6 + $0x110] sm:$0xff]  ;;  %v2762_v39 = vld [vmem:[%s4651_s6 + $0x118] sm:$0xff] }
 0x308   :  { %2999 = vmatprep.subr.bf16.mxu1 %v3400_v41 }
 0x309   :  { %560 = vrot.lane.b32.xlu1 %v514_v34, %s3382_s28  ;;  %554 = vrot.lane.b32.xlu0 %v519_v36, %s3381_s27 }
 0x30d   :  { %568 = vrot.lane.b32.xlu1 %v514_v34, %s3383_s29  ;;  %562 = vrot.lane.b32.xlu0 %v519_v36, %s3382_s28 }
 0x311   :  { %576 = vrot.lane.b32.xlu1 %v514_v34, %s4694_s30  ;;  %570 = vrot.lane.b32.xlu0 %v519_v36, %s3383_s29 }
 0x315   :  { %584 = vrot.lane.b32.xlu1 %v514_v34, %s3385_s0  ;;  %578 = vrot.lane.b32.xlu0 %v519_v36, %s4694_s30  ;;  %s3406_s30 = smov 107  }
 0x319   :  { %592 = vrot.lane.b32.xlu1 %v514_v34, %s4714_s3  ;;  %586 = vrot.lane.b32.xlu0 %v519_v36, %s3385_s0 }
 0x31d   :  { %600 = vrot.lane.b32.xlu1 %v514_v34, %s4715_s22  ;;  %594 = vrot.lane.b32.xlu0 %v519_v36, %s4714_s3  ;;  %v728_v34 = vld [vmem:[%s4651_s6 + $0x10] sm:$0xff] }
 0x321   :  { %635 = vperm.xlu1 %3300, %v632_v42   ;;  %602 = vrot.lane.b32.xlu0 %v519_v36, %s4715_s22  ;;  %v729_v36 = vld [vmem:[%s4651_s6 + $0x18] sm:$0xff]  ;;  %v732_v42 = vld [vmem:[%s4651_s6 + $0x30] sm:$0xff] }
 0x322   :  { %v3033_v37 = vpack.c.bf16 %v729_v36, %v728_v34  ;;  %v2759_v34 = vld [vmem:[%s4651_s6 + $0x100] sm:$0xff] }
 0x36b   :  { %v529_v44 = vpop.permute.xlu1 %528 }
 0x36c   :  { %534 = vst.msk [vmem:[#allocation3 + $0x10] sm:$0xff] %vm523_vm12, %v529_v44  ;;  %v3039_v44 = vpack.c.bf16 %v733_v43, %v732_v42  ;;  %v2763_v42 = vld [vmem:[%s4651_s6 + $0x120] sm:$0xff]  ;;  %v2764_v43 = vld [vmem:[%s4651_s6 + $0x128] sm:$0xff] }
 0x36f   :  { %v531_v45 = vpop.permute.xlu0 %530  ;;  %v537_v46 = vpop.permute.xlu1 %536 }
 0x370   :  { %535 = vst.msk [vmem:[#allocation3 + $0x18] sm:$0xff] %vm523_vm12, %v531_v45  ;;  %542 = vst.msk [vmem:[#allocation3 + $0x20] sm:$0xff] %vm523_vm12, %v537_v46  ;;  %v734_v45 = vld [vmem:[%s4651_s6 + $0x40] sm:$0xff]  ;;  %v735_v46 = vld [vmem:[%s4651_s6 + $0x48] sm:$0x7f] }
 0x373   :  { %v539_v47 = vpop.permute.xlu0 %538  ;;  %v545_v48 = vpop.permute.xlu1 %544  ;;  %v612_v51 = vld [vmem:[#allocation3 + $0x10] sm:$0xff] }
 0x374   :  { %543 = vst.msk [vmem:[#allocation3 + $0x28] sm:$0xff] %vm523_vm12, %v539_v47  ;;  %550 = vst.msk [vmem:[#allocation3 + $0x30] sm:$0xff] %vm523_vm12, %v545_v48  ;;  %v3042_v47 = vpack.c.bf16 %v735_v46, %v734_v45  ;;  %v2765_v45 = vld [vmem:[%s4651_s6 + $0x130] sm:$0xff]  ;;  %v2766_v46 = vld [vmem:[%s4651_s6 + $0x138] sm:$0x7f] }
 0x375   :  { %v2776_v48 = vld [vmem:[%s4653_s8 + $0x50] sm:$0xf] }
 0x377   :  { %v547_v49 = vpop.permute.xlu0 %546  ;;  %v553_v50 = vpop.permute.xlu1 %552  ;;  %v613_v52 = vld [vmem:[#allocation3 + $0x18] sm:$0xff]  ;;  %v614_v56 = vld [vmem:[#allocation3 + $0x20] sm:$0xff] }
 0x378   :  { %551 = vst.msk [vmem:[#allocation3 + $0x38] sm:$0xff] %vm523_vm12, %v547_v49  ;;  %558 = vst.msk [vmem:[#allocation3 + $0x40] sm:$0xff] %vm523_vm12, %v553_v50  ;;  %v3000_v53 = vpack.c.bf16 %v613_v52, %v612_v51 }
 0x37a   :  { %3001 = vmatpush1.bf16.msra.mxu1 %v3000_v53 }
 0x37b   :  { %v555_v54 = vpop.permute.xlu0 %554  ;;  %v561_v55 = vpop.permute.xlu1 %560  ;;  %3002 = vmatprep.subr.bf16.mxu1 %v3400_v41  ;;  %v615_v57 = vld [vmem:[#allocation3 + $0x28] sm:$0xff]  ;;  %v616_v61 = vld [vmem:[#allocation3 + $0x30] sm:$0xff] }
 0x37c   :  { %559 = vst.msk [vmem:[#allocation3 + $0x48] sm:$0xff] %vm523_vm12, %v555_v54  ;;  %566 = vst.msk [vmem:[#allocation3 + $0x50] sm:$0xff] %vm523_vm12, %v561_v55  ;;  %v3003_v58 = vpack.c.bf16 %v615_v57, %v614_v56  ;;  %v2773_v54 = vld [vmem:[%s4653_s8 + $0x38] sm:$0xff]  ;;  %v2775_v55 = vld [vmem:[%s4653_s8 + $0x48] sm:$0xff] }
 0x37d   :  { %v2772_v56 = vld [vmem:[%s4653_s8 + $0x30] sm:$0xff]  ;;  %v3097_v57 = vpack.c.bf16 %v2775_v55, %v2773_v54 }
 0x37e   :  { %3004 = vmatpush1.bf16.msra.mxu1 %v3003_v58  ;;  %v2774_v58 = vld [vmem:[%s4653_s8 + $0x40] sm:$0xff] }
 0x37f   :  { %v563_v59 = vpop.permute.xlu0 %562  ;;  %v569_v60 = vpop.permute.xlu1 %568  ;;  %3005 = vmatprep.subr.bf16.mxu1 %v3400_v41  ;;  %v617_v62 = vld [vmem:[#allocation3 + $0x38] sm:$0xff]  ;;  %v618_v2 = vld [vmem:[#allocation3 + $0x40] sm:$0xff]  ;;  %3098 = vmatprep.subr.bf16.mxu0 %v3097_v57 }
 0x380   :  { %567 = vst.msk [vmem:[#allocation3 + $0x58] sm:$0xff] %vm523_vm12, %v563_v59  ;;  %574 = vst.msk [vmem:[#allocation3 + $0x60] sm:$0xff] %vm523_vm12, %v569_v60  ;;  %v3006_v63 = vpack.c.bf16 %v617_v62, %v616_v61  ;;  %v3099_v59 = vpack.c.bf16 %v2774_v58, %v2772_v56  ;;  %v2777_v60 = vld [vmem:[%s4653_s8 + $0x58] sm:$0xf]  ;;  %v2733_v61 = vld [vmem:[%s4651_s6 + $0x50] sm:$0xff] }
 0x381   :  { %v2734_v62 = vld [vmem:[%s4651_s6 + $0x58] sm:$0xff]  ;;  %v1090_v57 = vld [vmem:[%s4653_s8 + $0x28] sm:$0xf] }
 0x382   :  { %3007 = vmatpush1.bf16.msra.mxu1 %v3006_v63  ;;  %3100 = vmatpush1.bf16.msra.mxu0 %v3099_v59  ;;  %v2785_v56 = vld [vmem:[%s4653_s8 + $0x78] sm:$0xff]  ;;  %v1089_v59 = vld [vmem:[%s4653_s8 + $0x20] sm:$0xf] }
 0x383   :  { %v571_v0 = vpop.permute.xlu0 %570  ;;  %v577_v1 = vpop.permute.xlu1 %576  ;;  %3008 = vmatprep.subr.bf16.mxu1 %v3400_v41  ;;  %v619_v4 = vld [vmem:[#allocation3 + $0x48] sm:$0xff]  ;;  %v620_v8 = vld [vmem:[#allocation3 + $0x50] sm:$0xff]  ;;  %2779 = vmatprep.subr.msk.mxu0 %vm4706_vm13, %v2777_v60 }
 0x384   :  { %575 = vst.msk [vmem:[#allocation3 + $0x68] sm:$0xff] %vm523_vm12, %v571_v0  ;;  %582 = vst.msk [vmem:[#allocation3 + $0x70] sm:$0xff] %vm523_vm12, %v577_v1  ;;  %v3009_v5 = vpack.c.bf16 %v619_v4, %v618_v2  ;;  %v3046_v0 = vpack.c.bf16 %v2734_v62, %v2733_v61  ;;  %v2735_v2 = vld [vmem:[%s4651_s6 + $0x60] sm:$0xff]  ;;  %v2736_v4 = vld [vmem:[%s4651_s6 + $0x68] sm:$0xff] }
 0x385   :  { %v2782_v60 = vld [vmem:[%s4653_s8 + $0x60] sm:$0xff]  ;;  %v2784_v61 = vld [vmem:[%s4653_s8 + $0x70] sm:$0xff] }
 0x386   :  { %3010 = vmatpush1.bf16.msra.mxu1 %v3009_v5  ;;  %v3049_v5 = vpack.c.bf16 %v2736_v4, %v2735_v2  ;;  %2780 = vmatpush1.msk.msra.mxu0 %vm4706_vm13, %v2776_v48  ;;  %v2730_v62 = vld [vmem:[%s4652_s7] ss:$0 sm:$0xff]  ;;  %v2787_v4 = vld [vmem:[%s4653_s8 + $0x88] sm:$0xf]  ;;  %s4721_s7 = smov 115  }
 0x387   :  { %v579_v6 = vpop.permute.xlu0 %578  ;;  %v585_v7 = vpop.permute.xlu1 %584  ;;  %3011 = vmatprep.subr.bf16.mxu1 %v3400_v41  ;;  %v621_v9 = vld [vmem:[#allocation3 + $0x58] sm:$0xff]  ;;  %v622_v13 = vld [vmem:[#allocation3 + $0x60] sm:$0xff] }
 0x388   :  { %583 = vst.msk [vmem:[#allocation3 + $0x78] sm:$0xff] %vm523_vm12, %v579_v6  ;;  %590 = vst.msk [vmem:[#allocation3 + $0x80] sm:$0xff] %vm523_vm12, %v585_v7  ;;  %v3012_v10 = vpack.c.bf16 %v621_v9, %v620_v8  ;;  %v2737_v6 = vld [vmem:[%s4651_s6 + $0x70] sm:$0xff]  ;;  %v2738_v7 = vld [vmem:[%s4651_s6 + $0x78] sm:$0xff] }
 0x389   :  { %v3052_v8 = vpack.c.bf16 %v2738_v7, %v2737_v6  ;;  %v2739_v9 = vld [vmem:[%s4651_s6 + $0x80] sm:$0xff]  ;;  %v2795_v6 = vld [vmem:[%s4653_s8 + $0xa8] sm:$0xff]  ;;  %v2792_v7 = vld [vmem:[%s4653_s8 + $0x90] sm:$0xff] }
 0x38a   :  { %3013 = vmatpush1.bf16.msra.mxu1 %v3012_v10  ;;  %v2740_v10 = vld [vmem:[%s4651_s6 + $0x88] sm:$0xff] }
 0x38b   :  { %v587_v11 = vpop.permute.xlu0 %586  ;;  %v593_v12 = vpop.permute.xlu1 %592  ;;  %3014 = vmatprep.subr.bf16.mxu1 %v3400_v41  ;;  %v623_v14 = vld [vmem:[#allocation3 + $0x68] sm:$0xff]  ;;  %v624_v18 = vld [vmem:[#allocation3 + $0x70] sm:$0xff] }
 0x38c   :  { %591 = vst.msk [vmem:[#allocation3 + $0x88] sm:$0xff] %vm523_vm12, %v587_v11  ;;  %598 = vst.msk [vmem:[#allocation3 + $0x90] sm:$0xff] %vm523_vm12, %v593_v12  ;;  %v3015_v15 = vpack.c.bf16 %v623_v14, %v622_v13  ;;  %v3055_v11 = vpack.c.bf16 %v2740_v10, %v2739_v9  ;;  %v2741_v12 = vld [vmem:[%s4651_s6 + $0x90] sm:$0xff]  ;;  %v2742_v13 = vld [vmem:[%s4651_s6 + $0x98] sm:$0x7f] }
 0x38d   :  { %v3058_v14 = vpack.c.bf16 %v2742_v13, %v2741_v12  ;;  %v2786_v9 = vld [vmem:[%s4653_s8 + $0x80] sm:$0xf]  ;;  %v2797_v12 = vld [vmem:[%s4653_s8 + $0xb8] sm:$0xf]  ;;  %v2796_v13 = vld [vmem:[%s4653_s8 + $0xb0] sm:$0xf] }
 0x38e   :  { %3016 = vmatpush1.bf16.msra.mxu1 %v3015_v15  ;;  %v2745_v15 = vld [vmem:[%s4651_s6 + $0xa0] sm:$0xff] }
 0x38f   :  { %v595_v16 = vpop.permute.xlu0 %594  ;;  %v601_v17 = vpop.permute.xlu1 %600  ;;  %3017 = vmatprep.subr.bf16.mxu1 %v3400_v41  ;;  %v625_v19 = vld [vmem:[#allocation3 + $0x78] sm:$0xff]  ;;  %v626_v22 = vld [vmem:[#allocation3 + $0x80] sm:$0xff] }
 0x390   :  { %599 = vst.msk [vmem:[#allocation3 + $0x98] sm:$0xff] %vm523_vm12, %v595_v16  ;;  %606 = vst.msk [vmem:[#allocation3 + $0xa0] sm:$0xff] %vm523_vm12, %v601_v17  ;;  %v3018_v20 = vpack.c.bf16 %v625_v19, %v624_v18  ;;  %v2746_v16 = vld [vmem:[%s4651_s6 + $0xa8] sm:$0xff]  ;;  %v2747_v19 = vld [vmem:[%s4651_s6 + $0xb0] sm:$0xff] }
 0x391   :  { %v3062_v17 = vpack.c.bf16 %v2746_v16, %v2745_v15  ;;  %v1091_v16 = vld [vmem:[%s4654_s9] ss:$4 sm:$0x3] }
 0x392   :  { %3019 = vmatpush1.bf16.msra.mxu1 %v3018_v20  ;;  %v2748_v20 = vld [vmem:[%s4651_s6 + $0xb8] sm:$0xff] }
 0x393   :  { %v603_v21 = vpop.permute.xlu0 %602  ;;  %3020 = vmatprep.subr.bf16.mxu1 %v3400_v41  ;;  %v627_v23 = vld [vmem:[#allocation3 + $0x88] sm:$0xff]  ;;  %v628_v25 = vld [vmem:[#allocation3 + $0x90] sm:$0xff] }
 0x394   :  { %607 = vst.msk [vmem:[#allocation3 + $0xa8] sm:$0xff] %vm523_vm12, %v603_v21  ;;  %v3021_v24 = vpack.c.bf16 %v627_v23, %v626_v22  ;;  %vm740_vm12 = vcmask 1046528   ;;  %v3065_v21 = vpack.c.bf16 %v2748_v20, %v2747_v19  ;;  %v2749_v22 = vld [vmem:[%s4651_s6 + $0xc0] sm:$0xff]  ;;  %v2750_v23 = vld [vmem:[%s4651_s6 + $0xc8] sm:$0xff]  ;;  %v3403_v20 = vmov 1966171168  }
 0x395   :  { %vm3819_vm14 = vmpackc.low %vm740_vm12, %vm3401_vm0  ;;  %vm736_vm12 = vcmask 646144  }
 0x396   :  { %3022 = vmatpush1.bf16.msra.mxu1 %v3021_v24  ;;  %v3068_v24 = vpack.c.bf16 %v2750_v23, %v2749_v22 }
 0x397   :  { %3023 = vmatprep.subr.bf16.mxu1 %v3400_v41  ;;  %v629_v26 = vld [vmem:[#allocation3 + $0x98] sm:$0xff]  ;;  %v630_v28 = vld [vmem:[#allocation3 + $0xa0] sm:$0xff] }
 0x398   :  { %v3024_v27 = vpack.c.bf16 %v629_v26, %v628_v25  ;;  %v2751_v25 = vld [vmem:[%s4651_s6 + $0xd0] sm:$0xff] }
 0x39a   :  { %3025 = vmatpush1.bf16.msra.mxu1 %v3024_v27  ;;  %v2753_v27 = vld [vmem:[%s4651_s6 + $0xe0] sm:$0xff] }
 0x39b   :  { %3026 = vmatprep.subr.bf16.mxu1 %v3400_v41  ;;  %v631_v29 = vld [vmem:[#allocation3 + $0xa8] sm:$0xff] }
 0x39c   :  { %v3027_v30 = vpack.c.bf16 %v631_v29, %v630_v28  ;;  %v2754_v28 = vld [vmem:[%s4651_s6 + $0xe8] sm:$0x7f] }
 0x39d   :  { %v3074_v29 = vpack.c.bf16 %v2754_v28, %v2753_v27  ;;  %v2788_v28 = vld [vmem:[%s4654_s9 + $0x2] ss:$4 sm:$0x3] }
 0x39e   :  { %3028 = vmatpush1.bf16.msra.mxu1 %v3027_v30  ;;  %v2757_v30 = vld [vmem:[%s4651_s6 + $0xf0] sm:$0xff] }
 0x39f   :  { %3029 = vmatprep.subr.bf16.mxu1 %v3400_v41 }
 0x3a0   :  { %v636_v49 = vpop.permute.xlu1 %635 }
 0x3a1   :  { %707 = vmatmul.mubr.f32.vlgmr.msra.gmra.mrb[4].mxu1 %v608_v31  ;;  %v2758_v31 = vld [vmem:[%s4651_s6 + $0xf8] sm:$0xff] }
 0x3a2   :  { %3031 = vmatpush3.bf16.msra.mxu1 %v3030_v35  ;;  %2871 = vmatprep.mubr.msk.f32.mxu1 %vm3402_vm15, %v3398_v3  ;;  %v3078_v32 = vpack.c.bf16 %v2758_v31, %v2757_v30  ;;  %v2760_v35 = vld [vmem:[%s4651_s6 + $0x108] sm:$0xff] }
 0x3a3   :  { %3032 = vmatprep.subr.bf16.mxu1 %v3400_v41  ;;  %v3081_v36 = vpack.c.bf16 %v2760_v35, %v2759_v34 }
 0x3a6   :  { %3034 = vmatpush3.bf16.msra.mxu1 %v3033_v37  ;;  %v3943_v37 = vld [vmem:[#allocation7] sm:$0xff] }
 0x3a7   :  { %3035 = vmatprep.subr.bf16.mxu1 %v3400_v41 }
 0x3aa   :  { %3037 = vmatpush3.bf16.msra.mxu1 %v3036_v40  ;;  %v3084_v40 = vpack.c.bf16 %v2762_v39, %v2761_v38 }
 0x3ab   :  { %3038 = vmatprep.subr.bf16.mxu1 %v3400_v41 }
 0x3ae   :  { %3040 = vmatpush3.bf16.msra.mxu1 %v3039_v44  ;;  %v3087_v44 = vpack.c.bf16 %v2764_v43, %v2763_v42 }
 0x3af   :  { %3041 = vmatprep.subr.bf16.mxu1 %v3400_v41 }
 0x3b2   :  { %3044 = vmatpush3.bf16.msk.msra.mxu1 %vm3819_vm14, %v3042_v47  ;;  %v1086_v47 = vld [vmem:[%s4653_s8 + $0x8] sm:$0xff] }
 0x3b3   :  { %3045 = vmatprep.subr.bf16.mxu1 %v3400_v41 }
 0x474   :  { %v708_v50 = vpop.f32.mrb[4].mxu1 }
 0x475   :  { %v709_v51 = vadd.f32 %v708_v50, %v636_v49  ;;  %v710_v52 = vpop.f32.mrb[5].mxu1  ;;  %v1088_v49 = vld [vmem:[%s4653_s8 + $0x18] sm:$0xff]  ;;  %v3090_v50 = vpack.c.bf16 %v2766_v46, %v2765_v45 }
 0x476   :  { %v1085_v52 = vld [vmem:[%s4653_s8] sm:$0xff] }
 0x477   :  { %v712_v53 = vmax.f32 %v709_v51, 0.0  ;;  %v3093_v51 = vpack.c.bf16 %v1088_v49, %v1086_v47  ;;  %v2798_v47 = vld [vmem:[%s4654_s9 + $0x3] ss:$4 sm:$0x3] }
 0x479   :  { %714 = vrot.lane.b32.xlu0 %v712_v53, %s3379_s25 }
 0x4eb   :  { %v715_v63 = vpop.permute.xlu0 %714 }
 0x4ec   :  { %v3851_v1 = vmax.f32 %v712_v53, %v715_v63  ;;  %v1087_v53 = vld [vmem:[%s4653_s8 + $0x10] sm:$0xff] }
 0x4ed   :  { %v3095_v54 = vpack.c.bf16 %v1087_v53, %v1085_v52 }
 0x4ee   :  { %2872 = vmatmul.mubr.msk.f32.vlgmr.msra.gmra.mrb[6].mxu1 %vm736_vm12, %v3851_v1  ;;  %v826_v18 = vrot.slane %v3851_v1, 2  ;;  %v914_v33 = vrot.slane %v3851_v1, 4  ;;  %v1002_v55 = vrot.slane %v3851_v1, 6 }
 0x4ef   :  { %3047 = vmatpush3.bf16.msra.mxu1 %v3046_v0  ;;  %2894 = vmatprep.mubr.msk.f32.mxu1 %vm3402_vm15, %v3398_v3  ;;  %v3103_v0 = vpack.c.bf16 %v2784_v61, %v2782_v60 }
 0x4f0   :  { %3048 = vmatprep.subr.bf16.mxu1 %v3400_v41 }
 0x4f3   :  { %3050 = vmatpush3.bf16.msra.mxu1 %v3049_v5  ;;  %v2793_v5 = vld [vmem:[%s4653_s8 + $0x98] sm:$0xff] }
 0x4f4   :  { %3051 = vmatprep.subr.bf16.mxu1 %v3400_v41  ;;  %v3105_v10 = vpack.c.bf16 %v2795_v6, %v2793_v5 }
 0x4f7   :  { %3053 = vmatpush3.bf16.msra.mxu1 %v3052_v8  ;;  %v2794_v8 = vld [vmem:[%s4653_s8 + $0xa0] sm:$0xff] }
 0x4f8   :  { %3054 = vmatprep.subr.bf16.mxu1 %v3400_v41 }
 0x4fb   :  { %3056 = vmatpush3.bf16.msra.mxu1 %v3055_v11  ;;  %v3107_v11 = vpack.c.bf16 %v2794_v8, %v2792_v7 }
 0x4fc   :  { %3057 = vmatprep.subr.bf16.mxu1 %v3400_v41 }
 0x4ff   :  { %3060 = vmatpush3.bf16.msk.msra.mxu1 %vm3819_vm14, %v3058_v14  ;;  %v1093_v14 = vlaneseq }
 0x500   :  { %3061 = vmatprep.subr.bf16.mxu1 %v3400_v41 }
 0x501   :  { %v1094_v15 = vshrl.u32 %v1093_v14, 7 }
 0x502   :  { %2895 = vmatmul.mubr.msk.f32.vlgmr.msra.gmra.mrb[6].mxu1 %vm736_vm12, %v826_v18  ;;  %v2778_v18 = vld [vmem:[%s4654_s9 + $0x1] ss:$4 sm:$0x3]  ;;  %s4718_s9 = smov 121  }
 0x503   :  { %3063 = vmatpush3.bf16.msra.mxu1 %v3062_v17  ;;  %2917 = vmatprep.mubr.msk.f32.mxu1 %vm3402_vm15, %v3398_v3  ;;  %v2752_v3 = vld [vmem:[%s4651_s6 + $0xd8] sm:$0xff]  ;;  %v1095_v17 = vsub.s32 0, %v1094_v15  ;;  %v1099_v19 = vsub.s32 1, %v1094_v15  ;;  %s4724_s6 = smov 112  }
 0x504   :  { %3064 = vmatprep.subr.bf16.mxu1 %v3400_v41  ;;  %v3071_v26 = vpack.c.bf16 %v2752_v3, %v2751_v25 }
 0x505   :  { %v1096_v22 = vrot.slane %v1091_v16, %v1095_v17  ;;  %v1227_v23 = vrot.slane %v2778_v18, %v1095_v17  ;;  %v1231_v25 = vrot.slane %v2778_v18, %v1099_v19  ;;  %v1350_v38 = vrot.slane %v2788_v28, %v1095_v17 }
 0x506   :  { %v1354_v43 = vrot.slane %v2788_v28, %v1099_v19 }
 0x507   :  { %3066 = vmatpush3.bf16.msra.mxu1 %v3065_v21  ;;  %v1190_v21 = vunpack.c.l.s4 %v3403_v20 }
 0x508   :  { %3067 = vmatprep.subr.bf16.mxu1 %v3400_v41 }
 0x50b   :  { %3069 = vmatpush3.bf16.msra.mxu1 %v3068_v24  ;;  %v1100_v24 = vrot.slane %v1091_v16, %v1099_v19 }
 0x50c   :  { %3070 = vmatprep.subr.bf16.mxu1 %v3400_v41 }
 0x50f   :  { %3072 = vmatpush3.bf16.msra.mxu1 %v3071_v26  ;;  %v1191_v26 = vunpack.c.0.s8 %v1190_v21 }
 0x510   :  { %3073 = vmatprep.subr.bf16.mxu1 %v3400_v41 }
 0x511   :  { %v1194_v39 = vsub.s32 %v1191_v26, %v1094_v15 }
 0x513   :  { %3076 = vmatpush3.bf16.msk.msra.mxu1 %vm3819_vm14, %v3074_v29 }
 0x514   :  { %3077 = vmatprep.subr.bf16.mxu1 %v3400_v41 }
 0x516   :  { %2918 = vmatmul.mubr.msk.f32.vlgmr.msra.gmra.mrb[6].mxu1 %vm736_vm12, %v914_v33 }
 0x517   :  { %3079 = vmatpush3.bf16.msra.mxu1 %v3078_v32  ;;  %2940 = vmatprep.mubr.msk.f32.mxu1 %vm3402_vm15, %v3943_v37  ;;  %vm1079_vm15 = vcmask 155648  }
 0x518   :  { %3080 = vmatprep.subr.bf16.mxu1 %v3400_v41 }
 0x51b   :  { %3082 = vmatpush3.bf16.msra.mxu1 %v3081_v36 }
 0x51c   :  { %3083 = vmatprep.subr.bf16.mxu1 %v3400_v41 }
 0x51f   :  { %3085 = vmatpush3.bf16.msra.mxu1 %v3084_v40 }
 0x520   :  { %3086 = vmatprep.subr.bf16.mxu1 %v3400_v41 }
 0x523   :  { %3088 = vmatpush3.bf16.msra.mxu1 %v3087_v44 }
 0x524   :  { %3089 = vmatprep.subr.bf16.mxu1 %v3400_v41  ;;  %v2783_v41 = vld [vmem:[%s4653_s8 + $0x68] sm:$0xff]  ;;  %s4720_s8 = smov 116  }
 0x525   :  { %v3101_v58 = vpack.c.bf16 %v2785_v56, %v2783_v41  ;;  %v1477_v56 = vrot.slane %v2798_v47, %v1099_v19 }
 0x527   :  { %3092 = vmatpush3.bf16.msk.msra.mxu1 %vm3819_vm14, %v3090_v50  ;;  %3102 = vmatprep.subr.bf16.mxu0 %v3101_v58  ;;  %vm1103_vm14 = vcmask 162816  }
 0x528   :  { %3094 = vmatprep.subr.bf16.mxu1 %v3093_v51 }
 0x52a   :  { %2941 = vmatmul.mubr.msk.f32.vlgmr.msra.gmra.mrb[6].mxu1 %vm736_vm12, %v1002_v55  ;;  %vm1081_vm12 = vcmask 156673   ;;  %v1473_v55 = vrot.slane %v2798_v47, %v1095_v17 }
 0x52b   :  { %3096 = vmatpush1.bf16.msra.mxu1 %v3095_v54  ;;  %1177 = vmatprep.mubr.f32.mxu1 %v3943_v37 }
 0x52c   :  { %2769 = vmatprep.subr.msk.mxu1 %vm4706_vm13, %v1090_v57 }
 0x52f   :  { %2770 = vmatpush1.msk.msra.mxu1 %vm4706_vm13, %v1089_v59 }
 0x5fd   :  { %v1074_v63 = vpop.f32.mrb[6].mxu1 }
 0x5fe   :  { %v3247_v1 = vadd.f32 %v2730_v62, %v1074_v63  ;;  %v2942_v2 = vpop.f32.mrb[7].mxu1 }
 0x600   :  { %2771 = vmatmul.mubr.msk.f32.vlgmr.msra.gmra.mrb[8].mxu1 %vm1103_vm14, %v3247_v1  ;;  %2781 = vmatmul.mubr.msk.f32.vlgmr.msra.gmra.mrb[4].mxu0 %vm1103_vm14, %v3247_v1  ;;  %1080 = vst.msk [vmem:[#allocation10] sm:$0x1] %vm1079_vm15, %v3247_v1  ;;  %vm1083_vm15 = vmor %vm69_vm3, %vm4706_vm13  ;;  %vm1210_vm3 = vcmp.ge.s32.totalorder %v1093_v14, 10 }
 0x601   :  { %1082 = vst.msk [vmem:[#allocation12 - $0x1] sm:$0x2] %vm1081_vm12, %v3247_v1  ;;  %3104 = vmatpush1.bf16.msra.mxu0 %v3103_v0  ;;  %1427 = vmatprep.mubr.f32.mxu0 %v3943_v37  ;;  %vm1206_vm12 = vcmask 80896  }
 0x602   :  { %2789 = vmatprep.subr.msk.mxu0 %vm4706_vm13, %v2787_v4  ;;  %1084 = vst.msk [vmem:[#allocation6] sm:$0xff] %vm1083_vm15, %v3943_v37 }
 0x605   :  { %2790 = vmatpush1.msk.msra.mxu0 %vm4706_vm13, %v2786_v9 }
 0x606   :  { %2791 = vmatmul.mubr.msk.f32.vlgmr.msra.gmra.mrb[6].mxu0 %vm1103_vm14, %v3247_v1  ;;  %3106 = vmatprep.subr.bf16.mxu0 %v3105_v10 }
 0x607   :  { %3108 = vmatpush1.bf16.msra.mxu0 %v3107_v11  ;;  %1550 = vmatprep.mubr.f32.mxu0 %v3943_v37 }
 0x608   :  { %2799 = vmatprep.subr.msk.mxu0 %vm4706_vm13, %v2797_v12 }
 0x60b   :  { %2800 = vmatpush1.msk.msra.mxu0 %vm4706_vm13, %v2796_v13 }
 0x60c   :  { %2801 = vmatmul.mubr.msk.f32.vlgmr.msra.gmra.mrb[8].mxu0 %vm1103_vm14, %v3247_v1  ;;  %vm1211_vm14 = vcmp.lt.s32.totalorder %v1093_v14, 170 }
 0x60d   :  { %1785 = vmatprep.mubr.f32.mxu0 %v3943_v37  ;;  %vm1212_vm15 = vmand %vm1210_vm3, %vm1211_vm14  ;;  %vm1588_vm3 = vcmask 338944   ;;  %vm1599_vm14 = vcmask 343044  }
 0x6d3   :  { %v1179_v3 = vpop.f32.mrb[8].mxu1  ;;  %v1306_v27 = vpop.f32.mrb[4].mxu0 }
 0x6d4   :  { %v1180_v29 = vadd.f32 %v1179_v3, %v1096_v22  ;;  %v1307_v30 = vadd.f32 %v1306_v27, %v1227_v23  ;;  %v1181_v31 = vpop.f32.mrb[9].mxu1  ;;  %v1308_v32 = vpop.f32.mrb[5].mxu0  ;;  %v1696_v22 = vld [vmem:[%s4656_s11] sm:$0xff]  ;;  %v1697_v23 = vld [vmem:[%s4656_s11 + $0x8] sm:$0xff]  ;;  %s3407_s11 = smov 106  }
 0x6d5   :  { %v1182_v33 = vadd.f32 %v1181_v31, %v1100_v24  ;;  %v1309_v34 = vadd.f32 %v1308_v32, %v1231_v25 }
 0x6d6   :  { %v1184_v35 = vmax.f32 %v1180_v29, 0.0  ;;  %v1311_v36 = vmax.f32 %v1307_v30, 0.0 }
 0x6d7   :  { %v1185_v40 = vmax.f32 %v1182_v33, 0.0  ;;  %v1312_v42 = vmax.f32 %v1309_v34, 0.0 }
 0x6d9   :  { %v1188_v44 = vcombine.low %v1184_v35, %v1185_v40  ;;  %v1315_v45 = vcombine.low %v1311_v36, %v1312_v42  ;;  %v1429_v46 = vpop.f32.mrb[6].mxu0 }
 0x6da   :  { %v1430_v49 = vadd.f32 %v1429_v46, %v1350_v38  ;;  %v1431_v50 = vpop.f32.mrb[7].mxu0 }
 0x6db   :  { %v1195_v51 = vrot.slane %v1188_v44, %v1194_v39  ;;  %v1322_v52 = vrot.slane %v1315_v45, %v1194_v39  ;;  %v1432_v53 = vadd.f32 %v1431_v50, %v1354_v43 }
 0x6dc   :  { %v1434_v54 = vmax.f32 %v1430_v49, 0.0 }
 0x6dd   :  { %v1435_v41 = vmax.f32 %v1432_v53, 0.0  ;;  %v1329_v48 = vrot.slane %v1322_v52, %v1194_v39  ;;  %v1202_v57 = vrot.slane %v1195_v51, %v1194_v39 }
 0x6df   :  { %v1438_v58 = vcombine.low %v1434_v54, %v1435_v41  ;;  %v1552_v59 = vpop.f32.mrb[8].mxu0  ;;  %1330 = vrot.lane.b32.xlu0 %v1329_v48, %s3404_s1  ;;  %1203 = vrot.lane.b32.xlu1 %v1202_v57, %s3404_s1 }
 0x6e0   :  { %v1553_v60 = vadd.f32 %v1552_v59, %v1473_v55  ;;  %v1554_v61 = vpop.f32.mrb[9].mxu0 }
 0x6e1   :  { %v1445_v62 = vrot.slane %v1438_v58, %v1194_v39  ;;  %v1555_v63 = vadd.f32 %v1554_v61, %v1477_v56 }
 0x6e2   :  { %v1557_v0 = vmax.f32 %v1553_v60, 0.0 }
 0x6e3   :  { %v1558_v1 = vmax.f32 %v1555_v63, 0.0  ;;  %v1452_v2 = vrot.slane %v1445_v62, %v1194_v39 }
 0x6e5   :  { %v1561_v4 = vcombine.low %v1557_v0, %v1558_v1  ;;  %1453 = vrot.lane.b32.xlu1 %v1452_v2, %s3404_s1 }
 0x6e7   :  { %v1568_v5 = vrot.slane %v1561_v4, %v1194_v39 }
 0x6e9   :  { %v1575_v6 = vrot.slane %v1568_v5, %v1194_v39 }
 0x6eb   :  { %1576 = vrot.lane.b32.xlu0 %v1575_v6, %s3404_s1  ;;  %s4725_s1 = smov 111  }
 0x751   :  { %v1331_v7 = vpop.permute.xlu0 %1330  ;;  %v1204_v8 = vpop.permute.xlu1 %1203 }
 0x752   :  { %v1332_v9 = vrot.slane %v1331_v7, 7  ;;  %v1205_v10 = vrot.slane %v1204_v8, 7 }
 0x754   :  { %v1333_v11 = vsel %vm1206_vm12, %v1332_v9, %v1331_v7  ;;  %v1207_v12 = vsel %vm1206_vm12, %v1205_v10, %v1204_v8  ;;  %v1682_v9 = vld [vmem:[%s4655_s10] sm:$0xff]  ;;  %v1683_v10 = vld [vmem:[%s4655_s10 + $0x8] sm:$0xff]  ;;  %s3405_s10 = smov 30  }
 0x755   :  { %1336 = vst.msk [vmem:[#allocation6 + $0x1] ss:$4 sm:$0x3] %vm1212_vm15, %v1333_v11  ;;  %1213 = vst.msk [vmem:[#allocation6] ss:$4 sm:$0x3] %vm1212_vm15, %v1207_v12 }
 0x757   :  { %v1454_v13 = vpop.permute.xlu1 %1453 }
 0x758   :  { %v1455_v15 = vrot.slane %v1454_v13, 7 }
 0x75a   :  { %v1456_v16 = vsel %vm1206_vm12, %v1455_v15, %v1454_v13 }
 0x75b   :  { %1459 = vst.msk [vmem:[#allocation6 + $0x2] ss:$4 sm:$0x3] %vm1212_vm15, %v1456_v16 }
 0x75d   :  { %v1577_v17 = vpop.permute.xlu0 %1576 }
 0x75e   :  { %v1578_v18 = vrot.slane %v1577_v17, 7 }
 0x760   :  { %v1579_v14 = vsel %vm1206_vm12, %v1578_v18, %v1577_v17  ;;  %vm3118_vm12 = vmpackc.low %vm4706_vm13, %vm3401_vm0  ;;  %vm4709_vm0 = vcmask 834560   ;;  %vm2269_vm13 = vcmask 850944  }
 0x761   :  { %1582 = vst.msk [vmem:[#allocation6 + $0x3] ss:$4 sm:$0x3] %vm1212_vm15, %v1579_v14  ;;  %vm1708_vm15 = vcmask 359424  }
 0x762   :  { %1804 = vst.msk [vmem:[#allocation7 + $0x8] sm:$0xff] %vm4709_vm0, %v3943_v37  ;;  %1806 = vst.msk [vmem:[#allocation7 + $0x18] sm:$0xff] %vm4709_vm0, %v3943_v37 }
 0x768   :  { %v1583_v19 = vld [vmem:[#allocation6] sm:$0xff] }
 0x769   :  { %1587 = vst [vmem:[#allocation4] sm:$0xf] %v1583_v19  ;;  %1601 = vrot.lane.b32.xlu1 %v1583_v19, %s3378_s24  ;;  %1593 = vrot.lane.b32.xlu0 %v1583_v19, %s3379_s25  ;;  %v1585_v20 = vcombine.high %v1583_v19, %v1583_v19  ;;  %v1590_v21 = vcombine.low %v1583_v19, %v1583_v19 }
 0x76b   :  { %1589 = vst.msk [vmem:[#allocation4 + $0x8] sm:$0xf] %vm1588_vm3, %v1585_v20 }
 0x76d   :  { %1619 = vrot.lane.b32.xlu1 %v1583_v19, %s3381_s27  ;;  %1612 = vrot.lane.b32.xlu0 %v1583_v19, %s3380_s26 }
 0x771   :  { %1637 = vrot.lane.b32.xlu1 %v1583_v19, %s3383_s29  ;;  %1630 = vrot.lane.b32.xlu0 %v1583_v19, %s3382_s28 }
 0x775   :  { %1655 = vrot.lane.b32.xlu1 %v1583_v19, %s3385_s0  ;;  %1648 = vrot.lane.b32.xlu0 %v1583_v19, %s4718_s9 }
 0x779   :  { %1666 = vrot.lane.b32.xlu0 %v1583_v19, %s4714_s3  ;;  %1591 = vrot.lane.b32.xlu1 %v1590_v21, %s3379_s25 }
 0x77d   :  { %1610 = vrot.lane.b32.xlu1 %v1590_v21, %s3380_s26  ;;  %1603 = vrot.lane.b32.xlu0 %v1585_v20, %s3378_s24 }
 0x781   :  { %1628 = vrot.lane.b32.xlu1 %v1590_v21, %s3382_s28  ;;  %1621 = vrot.lane.b32.xlu0 %v1585_v20, %s3381_s27 }
 0x785   :  { %1646 = vrot.lane.b32.xlu1 %v1590_v21, %s4718_s9  ;;  %1639 = vrot.lane.b32.xlu0 %v1585_v20, %s3383_s29 }
 0x789   :  { %1664 = vrot.lane.b32.xlu1 %v1590_v21, %s4714_s3  ;;  %1657 = vrot.lane.b32.xlu0 %v1585_v20, %s3385_s0 }
 0x78d   :  { %1673 = vrot.lane.b32.xlu1 %v1583_v19, %s4715_s22  ;;  %1675 = vrot.lane.b32.xlu0 %v1585_v20, %s4715_s22 }
 0x791   :  { %1700 = vperm.xlu1 %3300, %v1696_v22   ;;  %1705 = vperm.xlu0 %3299, %v1697_v23  }
 0x7db   :  { %v1602_v24 = vpop.permute.xlu1 %1601  ;;  %v1594_v25 = vpop.permute.xlu0 %1593 }
 0x7dc   :  { %1600 = vst.msk [vmem:[#allocation4 + $0x8] sm:$0xf0] %vm1599_vm14, %v1594_v25 }
 0x7df   :  { %v1620_v3 = vpop.permute.xlu1 %1619  ;;  %v1613_v26 = vpop.permute.xlu0 %1612 }
 0x7e0   :  { %1618 = vst.msk [vmem:[#allocation4 + $0x18] sm:$0xf0] %vm1599_vm14, %v1613_v26 }
 0x7e3   :  { %v1638_v27 = vpop.permute.xlu1 %1637  ;;  %v1631_v28 = vpop.permute.xlu0 %1630  ;;  %v1685_v46 = vld [vmem:[#allocation4 + $0x8] sm:$0xff] }
 0x7e4   :  { %1636 = vst.msk [vmem:[#allocation4 + $0x28] sm:$0xf0] %vm1599_vm14, %v1631_v28 }
 0x7e7   :  { %v1656_v29 = vpop.permute.xlu1 %1655  ;;  %v1649_v30 = vpop.permute.xlu0 %1648 }
 0x7e8   :  { %1654 = vst.msk [vmem:[#allocation4 + $0x38] sm:$0xf0] %vm1599_vm14, %v1649_v30 }
 0x7eb   :  { %v1667_v31 = vpop.permute.xlu0 %1666  ;;  %v1592_v32 = vpop.permute.xlu1 %1591 }
 0x7ec   :  { %1672 = vst.msk [vmem:[#allocation4 + $0x48] sm:$0xf0] %vm1599_vm14, %v1667_v31  ;;  %v1595_v33 = vsel %vm64_vm2, %v1592_v32, %v1594_v25  ;;  %vm1819_vm14 = vcmask 244736  }
 0x7ed   :  { %1598 = vst [vmem:[#allocation4] sm:$0xf0] %v1595_v33 }
 0x7ef   :  { %v1611_v34 = vpop.permute.xlu1 %1610  ;;  %v1604_v35 = vpop.permute.xlu0 %1603 }
 0x7f0   :  { %v1614_v36 = vsel %vm85_vm4, %v1611_v34, %v1613_v26  ;;  %v1605_v38 = vsel %vm75_vm1, %v1602_v24, %v1604_v35  ;;  %1609 = vst.msk [vmem:[#allocation4 + $0x18] sm:$0xf] %vm1588_vm3, %v1604_v35 }
 0x7f1   :  { %1617 = vst [vmem:[#allocation4 + $0x10] sm:$0xf0] %v1614_v36  ;;  %1608 = vst [vmem:[#allocation4 + $0x10] sm:$0xf] %v1605_v38 }
 0x7f3   :  { %v1629_v39 = vpop.permute.xlu1 %1628  ;;  %v1622_v40 = vpop.permute.xlu0 %1621 }
 0x7f4   :  { %v1632_v42 = vsel %vm105_vm6, %v1629_v39, %v1631_v28  ;;  %v1623_v43 = vsel %vm95_vm5, %v1620_v3, %v1622_v40  ;;  %1627 = vst.msk [vmem:[#allocation4 + $0x28] sm:$0xf] %vm1588_vm3, %v1622_v40  ;;  %v1684_v52 = vld [vmem:[#allocation4] sm:$0xff] }
 0x7f5   :  { %1635 = vst [vmem:[#allocation4 + $0x20] sm:$0xf0] %v1632_v42  ;;  %1626 = vst [vmem:[#allocation4 + $0x20] sm:$0xf] %v1623_v43 }
 0x7f7   :  { %v1647_v44 = vpop.permute.xlu1 %1646  ;;  %v1640_v45 = vpop.permute.xlu0 %1639  ;;  %v1687_v47 = vld [vmem:[#allocation4 + $0x18] sm:$0xff] }
 0x7f8   :  { %v1650_v49 = vsel %vm125_vm8, %v1647_v44, %v1649_v30  ;;  %v1641_v50 = vsel %vm115_vm7, %v1638_v27, %v1640_v45  ;;  %1645 = vst.msk [vmem:[#allocation4 + $0x38] sm:$0xf] %vm1588_vm3, %v1640_v45  ;;  %v3109_v51 = vpack.c.bf16 %v1687_v47, %v1685_v46  ;;  %v1686_v53 = vld [vmem:[#allocation4 + $0x10] sm:$0xff] }
 0x7f9   :  { %1653 = vst [vmem:[#allocation4 + $0x30] sm:$0xf0] %v1650_v49  ;;  %1644 = vst [vmem:[#allocation4 + $0x30] sm:$0xf] %v1641_v50  ;;  %v3111_v54 = vpack.c.bf16 %v1686_v53, %v1684_v52 }
 0x7fa   :  { %3110 = vmatprep.subr.bf16.mxu0 %v3109_v51 }
 0x7fb   :  { %v1665_v55 = vpop.permute.xlu1 %1664  ;;  %v1658_v41 = vpop.permute.xlu0 %1657  ;;  %3112 = vmatpush1.bf16.msra.mxu0 %v3111_v54  ;;  %v1689_v59 = vld [vmem:[#allocation4 + $0x28] sm:$0xff] }
 0x7fc   :  { %v1668_v56 = vsel %vm145_vm10, %v1665_v55, %v1667_v31  ;;  %v1659_v48 = vsel %vm135_vm9, %v1656_v29, %v1658_v41  ;;  %1663 = vst.msk [vmem:[#allocation4 + $0x48] sm:$0xf] %vm1588_vm3, %v1658_v41  ;;  %v1688_v63 = vld [vmem:[#allocation4 + $0x20] sm:$0xff] }
 0x7fd   :  { %1671 = vst [vmem:[#allocation4 + $0x40] sm:$0xf0] %v1668_v56  ;;  %1662 = vst [vmem:[#allocation4 + $0x40] sm:$0xf] %v1659_v48 }
 0x7ff   :  { %v1674_v57 = vpop.permute.xlu1 %1673  ;;  %v1676_v58 = vpop.permute.xlu0 %1675  ;;  %v1691_v60 = vld [vmem:[#allocation4 + $0x38] sm:$0xff] }
 0x800   :  { %v1677_v61 = vsel %vm155_vm11, %v1674_v57, %v1676_v58  ;;  %1681 = vst.msk [vmem:[#allocation4 + $0x58] sm:$0xf] %vm1588_vm3, %v1676_v58  ;;  %v3113_v62 = vpack.c.bf16 %v1691_v60, %v1689_v59  ;;  %v1690_v0 = vld [vmem:[#allocation4 + $0x30] sm:$0xff]  ;;  %vm1826_vm3 = vcmask 1047792  }
 0x801   :  { %1680 = vst [vmem:[#allocation4 + $0x50] sm:$0xf] %v1677_v61  ;;  %v3115_v1 = vpack.c.bf16 %v1690_v0, %v1688_v63 }
 0x802   :  { %3114 = vmatprep.subr.bf16.mxu0 %v3113_v62 }
 0x803   :  { %3116 = vmatpush1.bf16.msra.mxu0 %v3115_v1  ;;  %v1693_v2 = vld [vmem:[#allocation4 + $0x48] sm:$0xff] }
 0x804   :  { %v1692_v6 = vld [vmem:[#allocation4 + $0x40] sm:$0xff] }
 0x807   :  { %v1695_v4 = vld [vmem:[#allocation4 + $0x58] sm:$0xf] }
 0x808   :  { %v3117_v5 = vpack.c.bf16 %v1695_v4, %v1693_v2  ;;  %v1694_v7 = vld [vmem:[#allocation4 + $0x50] sm:$0xf] }
 0x809   :  { %v3120_v8 = vpack.c.bf16 %v1694_v7, %v1692_v6 }
 0x80a   :  { %3119 = vmatprep.subr.msk.bf16.mxu0 %vm3118_vm12, %v3117_v5 }
 0x80b   :  { %3122 = vmatpush1.bf16.msk.msra.mxu0 %vm3118_vm12, %v3120_v8  ;;  %vm1828_vm12 = vcmask 588800  }
 0x80e   :  { %2804 = vmatmul.mubr.msk.f32.vlgmr.msra.gmra.mrb[10].mxu0 %vm1708_vm15, %v1682_v9 }
 0x80f   :  { %1791 = vmatprep.mubr.f32.mxu0 %v3943_v37 }
 0x810   :  { %v1701_v11 = vpop.permute.xlu1 %1700  ;;  %v1706_v18 = vpop.permute.xlu0 %1705 }
 0x812   :  { %2805 = vmatmul.mubr.msk.f32.gmra.mrb[12].mxu0 %vm1708_vm15, %v1683_v10  ;;  %vm4729_vm15 = vcmask 957440  }
 0x8e1   :  { %v1787_v12 = vpop.f32.mrb[10].mxu0 }
 0x8e2   :  { %v1788_v13 = vadd.f32 %v1787_v12, %v1701_v11  ;;  %v1789_v15 = vpop.f32.mrb[11].mxu0 }
 0x8e3   :  { %v1790_v16 = vadd.f32 %v1789_v15, %v1701_v11 }
 0x8e4   :  { %v1798_v17 = vmax.f32 %v1788_v13, 0.0 }
 0x8e5   :  { %v1799_v14 = vmax.f32 %v1790_v16, 0.0  ;;  %v1793_v19 = vpop.f32.mrb[12].mxu0 }
 0x8e6   :  { %v1794_v20 = vadd.f32 %v1793_v19, %v1706_v18  ;;  %v1795_v21 = vpop.f32.mrb[13].mxu0  ;;  %1811 = vrot.lane.b32.xlu1 %v1798_v17, %s3405_s10 }
 0x8e7   :  { %v1796_v22 = vadd.f32 %v1795_v21, %v1706_v18  ;;  %1813 = vrot.lane.b32.xlu0 %v1799_v14, %s3405_s10 }
 0x8e8   :  { %v1800_v23 = vmax.f32 %v1794_v20, 0.0 }
 0x8e9   :  { %v1801_v24 = vmax.f32 %v1796_v22, 0.0  ;;  %v4379_v22 = vld [vmem:[%s4657_s12] sm:$0xff] }
 0x8ea   :  { %1815 = vrot.lane.b32.xlu1 %v1800_v23, %s3405_s10 }
 0x8eb   :  { %1817 = vrot.lane.b32.xlu0 %v1801_v24, %s3405_s10  ;;  %s4704_s10 = smov 102   ;;  %v2527_v24 = vcombine.high %v4379_v22, %v4379_v22 }
 0x8ed   :  { %2596 = vmatprep.mubr.f32.mxu0 %v2527_v24 }
 0x958   :  { %v1812_v37 = vpop.permute.xlu1 %1811 }
 0x959   :  { %1827 = vst.msk [vmem:[#allocation7] sm:$0xff] %vm1826_vm3, %v1812_v37  ;;  %v1814_v25 = vpop.permute.xlu0 %1813 }
 0x95a   :  { %v1820_v3 = vsel %vm1819_vm14, %v1812_v37, %v1814_v25 }
 0x95b   :  { %1829 = vst.msk [vmem:[#allocation7 + $0x8] sm:$0xff] %vm1828_vm12, %v1820_v3 }
 0x95c   :  { %v1816_v26 = vpop.permute.xlu1 %1815 }
 0x95d   :  { %1830 = vst.msk [vmem:[#allocation7 + $0x10] sm:$0xff] %vm1826_vm3, %v1816_v26  ;;  %v1818_v27 = vpop.permute.xlu0 %1817  ;;  %vm4730_vm3 = vcmask 949248  }
 0x95e   :  { %v1821_v28 = vsel %vm1819_vm14, %v1816_v26, %v1818_v27  ;;  %vm4731_vm14 = vcmask 941056  }
 0x95f   :  { %1831 = vst.msk [vmem:[#allocation7 + $0x18] sm:$0xff] %vm1828_vm12, %v1821_v28 }
 0x960   :  { %v4124_v29 = vld [vmem:[#allocation7] sm:$0xff] }
 0x961   :  { %1844 = vrot.lane.b32.xlu1 %v4124_v29, %s3379_s25 }
 0x962   :  { %v4128_v30 = vld [vmem:[#allocation7 + $0x8] sm:$0xff] }
 0x963   :  { %1837 = vst.msk [vmem:[#allocation5 + $0x8] sm:$0xff] %vm1828_vm12, %v4128_v30  ;;  %1846 = vrot.lane.b32.xlu0 %v4128_v30, %s3379_s25 }
 0x964   :  { %v4134_v31 = vld [vmem:[#allocation7 + $0x10] sm:$0xff] }
 0x965   :  { %1862 = vrot.lane.b32.xlu1 %v4124_v29, %s3378_s24  ;;  %v3125_v36 = vpack.c.bf16 %v4134_v31, %v4124_v29 }
 0x966   :  { %v4138_v32 = vld [vmem:[#allocation7 + $0x18] sm:$0xff] }
 0x967   :  { %1839 = vst.msk [vmem:[#allocation5 + $0x18] sm:$0xff] %vm1828_vm12, %v4138_v32  ;;  %1864 = vrot.lane.b32.xlu0 %v4128_v30, %s3378_s24 }
 0x969   :  { %1880 = vrot.lane.b32.xlu1 %v4124_v29, %s3380_s26 }
 0x96a   :  { %v2396_v33 = vld [vmem:[#allocation5 + $0x8] sm:$0xff] }
 0x96b   :  { %1882 = vrot.lane.b32.xlu0 %v4128_v30, %s3380_s26 }
 0x96d   :  { %1898 = vrot.lane.b32.xlu1 %v4124_v29, %s3381_s27 }
 0x96e   :  { %v2398_v34 = vld [vmem:[#allocation5 + $0x18] sm:$0xff] }
 0x96f   :  { %1900 = vrot.lane.b32.xlu0 %v4128_v30, %s3381_s27  ;;  %v3123_v35 = vpack.c.bf16 %v2398_v34, %v2396_v33 }
 0x971   :  { %1916 = vrot.lane.b32.xlu1 %v4124_v29, %s3382_s28  ;;  %3124 = vmatprep.subr.bf16.mxu0 %v3123_v35 }
 0x972   :  { %3126 = vmatpush1.bf16.msra.mxu0 %v3125_v36 }
 0x973   :  { %1918 = vrot.lane.b32.xlu0 %v4128_v30, %s3382_s28 }
 0x975   :  { %1934 = vrot.lane.b32.xlu1 %v4124_v29, %s3383_s29 }
 0x977   :  { %1936 = vrot.lane.b32.xlu0 %v4128_v30, %s3383_s29 }
 0x979   :  { %1952 = vrot.lane.b32.xlu1 %v4124_v29, %s4718_s9 }
 0x97b   :  { %1954 = vrot.lane.b32.xlu0 %v4128_v30, %s4718_s9 }
 0x97d   :  { %1970 = vrot.lane.b32.xlu1 %v4124_v29, %s3385_s0 }
 0x97f   :  { %1972 = vrot.lane.b32.xlu0 %v4128_v30, %s3385_s0 }
 0x981   :  { %1988 = vrot.lane.b32.xlu1 %v4124_v29, %s4714_s3 }
 0x983   :  { %1990 = vrot.lane.b32.xlu0 %v4128_v30, %s4714_s3 }
 0x985   :  { %2006 = vrot.lane.b32.xlu1 %v4124_v29, %s4715_s22 }
 0x987   :  { %2008 = vrot.lane.b32.xlu0 %v4128_v30, %s4715_s22 }
 0x989   :  { %2024 = vrot.lane.b32.xlu1 %v4124_v29, %s4719_s18 }
 0x98b   :  { %2026 = vrot.lane.b32.xlu0 %v4128_v30, %s4719_s18 }
 0x98d   :  { %2042 = vrot.lane.b32.xlu1 %v4124_v29, %s4720_s8 }
 0x98f   :  { %2044 = vrot.lane.b32.xlu0 %v4128_v30, %s4720_s8 }
 0x991   :  { %2060 = vrot.lane.b32.xlu1 %v4124_v29, %s4721_s7 }
 0x993   :  { %2062 = vrot.lane.b32.xlu0 %v4128_v30, %s4721_s7 }
 0x995   :  { %2078 = vrot.lane.b32.xlu1 %v4124_v29, %s4722_s4 }
 0x997   :  { %2080 = vrot.lane.b32.xlu0 %v4128_v30, %s4722_s4 }
 0x999   :  { %2096 = vrot.lane.b32.xlu1 %v4124_v29, %s4723_s5 }
 0x99b   :  { %2098 = vrot.lane.b32.xlu0 %v4128_v30, %s4723_s5 }
 0x99d   :  { %2114 = vrot.lane.b32.xlu1 %v4124_v29, %s4724_s6 }
 0x99f   :  { %2116 = vrot.lane.b32.xlu0 %v4128_v30, %s4724_s6 }
 0x9a1   :  { %2132 = vrot.lane.b32.xlu1 %v4124_v29, %s4725_s1 }
 0x9a3   :  { %2134 = vrot.lane.b32.xlu0 %v4128_v30, %s4725_s1 }
 0x9a5   :  { %2150 = vrot.lane.b32.xlu1 %v4124_v29, %s4726_s19 }
 0x9a7   :  { %2152 = vrot.lane.b32.xlu0 %v4128_v30, %s4726_s19 }
 0x9a9   :  { %2168 = vrot.lane.b32.xlu1 %v4124_v29, %s4727_s23 }
 0x9ab   :  { %2170 = vrot.lane.b32.xlu0 %v4128_v30, %s4727_s23 }
 0x9ad   :  { %2186 = vrot.lane.b32.xlu1 %v4124_v29, %s4728_s20 }
 0x9af   :  { %2188 = vrot.lane.b32.xlu0 %v4128_v30, %s4728_s20 }
 0x9b1   :  { %2204 = vrot.lane.b32.xlu1 %v4124_v29, %s3406_s30 }
 0x9b3   :  { %2206 = vrot.lane.b32.xlu0 %v4128_v30, %s3406_s30 }
 0x9b5   :  { %2223 = vrot.lane.b32.xlu1 %v4124_v29, %s3407_s11 }
 0x9b7   :  { %2225 = vrot.lane.b32.xlu0 %v4128_v30, %s3407_s11 }
 0x9b9   :  { %2242 = vrot.lane.b32.xlu1 %v4124_v29, %s4698_s21 }
 0x9bb   :  { %2244 = vrot.lane.b32.xlu0 %v4128_v30, %s4698_s21  ;;  %s3412_s21 = smov 101  }
 0x9bd   :  { %2261 = vrot.lane.b32.xlu1 %v4124_v29, %s4700_s17 }
 0x9bf   :  { %2263 = vrot.lane.b32.xlu0 %v4128_v30, %s4700_s17  ;;  %s3413_s17 = smov 100  }
 0x9c1   :  { %2280 = vrot.lane.b32.xlu1 %v4124_v29, %s4702_s2 }
 0x9c3   :  { %2282 = vrot.lane.b32.xlu0 %v4128_v30, %s4702_s2  ;;  %s3414_s2 = smov 99  }
 0x9c5   :  { %2299 = vrot.lane.b32.xlu1 %v4124_v29, %s4704_s10 }
 0x9c7   :  { %2301 = vrot.lane.b32.xlu0 %v4128_v30, %s4704_s10  ;;  %s3415_s10 = smov 98  }
 0x9c9   :  { %2317 = vrot.lane.b32.xlu1 %v4124_v29, %s3412_s21 }
 0x9cb   :  { %2319 = vrot.lane.b32.xlu0 %v4128_v30, %s3412_s21 }
 0x9cd   :  { %2336 = vrot.lane.b32.xlu1 %v4124_v29, %s3413_s17 }
 0x9cf   :  { %2338 = vrot.lane.b32.xlu0 %v4128_v30, %s3413_s17 }
 0x9d1   :  { %2355 = vrot.lane.b32.xlu1 %v4124_v29, %s3414_s2 }
 0x9d3   :  { %2357 = vrot.lane.b32.xlu0 %v4128_v30, %s3414_s2  ;;  %v1845_v38 = vpop.permute.xlu1 %1844 }
 0x9d5   :  { %2374 = vrot.lane.b32.xlu1 %v4124_v29, %s3415_s10  ;;  %v1847_v39 = vpop.permute.xlu0 %1846 }
 0x9d6   :  { %v4257_v40 = vsel %vm64_vm2, %v1845_v38, %v1847_v39  ;;  %1859 = vst.msk [vmem:[#allocation5 + $0x28] sm:$0xff] %vm1828_vm12, %v1847_v39 }
 0x9d7   :  { %2376 = vrot.lane.b32.xlu0 %v4128_v30, %s3415_s10  ;;  %v1863_v42 = vpop.permute.xlu1 %1862 }
 0x9d9   :  { %v1865_v43 = vpop.permute.xlu0 %1864  ;;  %1848 = vrot.lane.b32.xlu1 %v4134_v31, %s3379_s25 }
 0x9da   :  { %v4265_v44 = vsel %vm75_vm1, %v1863_v42, %v1865_v43  ;;  %1877 = vst.msk [vmem:[#allocation5 + $0x48] sm:$0xff] %vm1828_vm12, %v1865_v43 }
 0x9db   :  { %1850 = vrot.lane.b32.xlu0 %v4138_v32, %s3379_s25  ;;  %v1881_v45 = vpop.permute.xlu1 %1880 }
 0x9dd   :  { %v1883_v46 = vpop.permute.xlu0 %1882  ;;  %1866 = vrot.lane.b32.xlu1 %v4134_v31, %s3378_s24 }
 0x9de   :  { %v4273_v47 = vsel %vm85_vm4, %v1881_v45, %v1883_v46  ;;  %1895 = vst.msk [vmem:[#allocation5 + $0x68] sm:$0xff] %vm1828_vm12, %v1883_v46 }
 0x9df   :  { %1868 = vrot.lane.b32.xlu0 %v4138_v32, %s3378_s24  ;;  %v1899_v49 = vpop.permute.xlu1 %1898 }
 0x9e1   :  { %v1901_v50 = vpop.permute.xlu0 %1900  ;;  %1884 = vrot.lane.b32.xlu1 %v4134_v31, %s3380_s26 }
 0x9e2   :  { %v4281_v51 = vsel %vm95_vm5, %v1899_v49, %v1901_v50  ;;  %1913 = vst.msk [vmem:[#allocation5 + $0x88] sm:$0xff] %vm1828_vm12, %v1901_v50 }
 0x9e3   :  { %1886 = vrot.lane.b32.xlu0 %v4138_v32, %s3380_s26  ;;  %v1917_v52 = vpop.permute.xlu1 %1916  ;;  %s4739_s26 = smov 105  }
 0x9e5   :  { %v1919_v53 = vpop.permute.xlu0 %1918  ;;  %1902 = vrot.lane.b32.xlu1 %v4134_v31, %s3381_s27 }
 0x9e6   :  { %v4289_v54 = vsel %vm105_vm6, %v1917_v52, %v1919_v53  ;;  %1931 = vst.msk [vmem:[#allocation5 + $0xa8] sm:$0xff] %vm1828_vm12, %v1919_v53 }
 0x9e7   :  { %1904 = vrot.lane.b32.xlu0 %v4138_v32, %s3381_s27  ;;  %v1935_v55 = vpop.permute.xlu1 %1934  ;;  %s4740_s27 = smov 104  }
 0x9e9   :  { %v1937_v41 = vpop.permute.xlu0 %1936  ;;  %1920 = vrot.lane.b32.xlu1 %v4134_v31, %s3382_s28 }
 0x9ea   :  { %v4297_v56 = vsel %vm115_vm7, %v1935_v55, %v1937_v41  ;;  %1949 = vst.msk [vmem:[#allocation5 + $0xc8] sm:$0xff] %vm1828_vm12, %v1937_v41 }
 0x9eb   :  { %1922 = vrot.lane.b32.xlu0 %v4138_v32, %s3382_s28  ;;  %v1953_v48 = vpop.permute.xlu1 %1952  ;;  %s4741_s28 = smov 103  }
 0x9ed   :  { %v1955_v57 = vpop.permute.xlu0 %1954  ;;  %1938 = vrot.lane.b32.xlu1 %v4134_v31, %s3383_s29 }
 0x9ee   :  { %v4305_v58 = vsel %vm125_vm8, %v1953_v48, %v1955_v57  ;;  %1967 = vst.msk [vmem:[#allocation5 + $0xe8] sm:$0xff] %vm1828_vm12, %v1955_v57 }
 0x9ef   :  { %1940 = vrot.lane.b32.xlu0 %v4138_v32, %s3383_s29  ;;  %v1971_v59 = vpop.permute.xlu1 %1970  ;;  %s4742_s29 = smov 102  }
 0x9f1   :  { %v1973_v60 = vpop.permute.xlu0 %1972  ;;  %1956 = vrot.lane.b32.xlu1 %v4134_v31, %s4718_s9 }
 0x9f2   :  { %v4313_v61 = vsel %vm135_vm9, %v1971_v59, %v1973_v60  ;;  %1985 = vst.msk [vmem:[#allocation5 + $0x108] sm:$0xff] %vm1828_vm12, %v1973_v60 }
 0x9f3   :  { %1958 = vrot.lane.b32.xlu0 %v4138_v32, %s4718_s9  ;;  %v1989_v62 = vpop.permute.xlu1 %1988 }
 0x9f5   :  { %v1991_v63 = vpop.permute.xlu0 %1990  ;;  %1974 = vrot.lane.b32.xlu1 %v4134_v31, %s3385_s0 }
 0x9f6   :  { %v4321_v0 = vsel %vm145_vm10, %v1989_v62, %v1991_v63  ;;  %2003 = vst.msk [vmem:[#allocation5 + $0x128] sm:$0xff] %vm1828_vm12, %v1991_v63 }
 0x9f7   :  { %1976 = vrot.lane.b32.xlu0 %v4138_v32, %s3385_s0  ;;  %v2007_v1 = vpop.permute.xlu1 %2006 }
 0x9f9   :  { %v2009_v2 = vpop.permute.xlu0 %2008  ;;  %1992 = vrot.lane.b32.xlu1 %v4134_v31, %s4714_s3 }
 0x9fa   :  { %v4329_v4 = vsel %vm155_vm11, %v2007_v1, %v2009_v2  ;;  %2021 = vst.msk [vmem:[#allocation5 + $0x148] sm:$0xff] %vm1828_vm12, %v2009_v2 }
 0x9fb   :  { %1994 = vrot.lane.b32.xlu0 %v4138_v32, %s4714_s3  ;;  %v2025_v5 = vpop.permute.xlu1 %2024 }
 0x9fd   :  { %v2027_v6 = vpop.permute.xlu0 %2026  ;;  %2010 = vrot.lane.b32.xlu1 %v4134_v31, %s4715_s22 }
 0x9fe   :  { %v4337_v7 = vsel %vm4729_vm15, %v2025_v5, %v2027_v6  ;;  %2039 = vst.msk [vmem:[#allocation5 + $0x168] sm:$0xff] %vm1828_vm12, %v2027_v6  ;;  %vm4732_vm15 = vcmask 932864  }
 0x9ff   :  { %2012 = vrot.lane.b32.xlu0 %v4138_v32, %s4715_s22  ;;  %v2043_v8 = vpop.permute.xlu1 %2042 }
 0xa01   :  { %v2045_v9 = vpop.permute.xlu0 %2044  ;;  %2028 = vrot.lane.b32.xlu1 %v4134_v31, %s4719_s18 }
 0xa02   :  { %v4345_v10 = vsel %vm4730_vm3, %v2043_v8, %v2045_v9  ;;  %2057 = vst.msk [vmem:[#allocation5 + $0x188] sm:$0xff] %vm1828_vm12, %v2045_v9  ;;  %vm4733_vm3 = vcmask 924672  }
 0xa03   :  { %2030 = vrot.lane.b32.xlu0 %v4138_v32, %s4719_s18  ;;  %v2061_v11 = vpop.permute.xlu1 %2060 }
 0xa05   :  { %v2063_v12 = vpop.permute.xlu0 %2062  ;;  %2046 = vrot.lane.b32.xlu1 %v4134_v31, %s4720_s8 }
 0xa06   :  { %v4353_v13 = vsel %vm4731_vm14, %v2061_v11, %v2063_v12  ;;  %2075 = vst.msk [vmem:[#allocation5 + $0x1a8] sm:$0xff] %vm1828_vm12, %v2063_v12  ;;  %vm4734_vm14 = vcmask 916480  }
 0xa07   :  { %2048 = vrot.lane.b32.xlu0 %v4138_v32, %s4720_s8  ;;  %v2079_v15 = vpop.permute.xlu1 %2078 }
 0xa09   :  { %v2081_v16 = vpop.permute.xlu0 %2080  ;;  %2064 = vrot.lane.b32.xlu1 %v4134_v31, %s4721_s7 }
 0xa0a   :  { %v4361_v17 = vsel %vm4732_vm15, %v2079_v15, %v2081_v16  ;;  %2093 = vst.msk [vmem:[#allocation5 + $0x1c8] sm:$0xff] %vm1828_vm12, %v2081_v16  ;;  %vm4735_vm15 = vcmask 908288  }
 0xa0b   :  { %2066 = vrot.lane.b32.xlu0 %v4138_v32, %s4721_s7  ;;  %v2097_v18 = vpop.permute.xlu1 %2096 }
 0xa0d   :  { %v2099_v14 = vpop.permute.xlu0 %2098  ;;  %2082 = vrot.lane.b32.xlu1 %v4134_v31, %s4722_s4 }
 0xa0e   :  { %v4369_v19 = vsel %vm4733_vm3, %v2097_v18, %v2099_v14  ;;  %2111 = vst.msk [vmem:[#allocation5 + $0x1e8] sm:$0xff] %vm1828_vm12, %v2099_v14  ;;  %vm4736_vm3 = vcmask 900096  }
 0xa0f   :  { %2084 = vrot.lane.b32.xlu0 %v4138_v32, %s4722_s4  ;;  %v2115_v20 = vpop.permute.xlu1 %2114 }
 0xa11   :  { %v2117_v21 = vpop.permute.xlu0 %2116  ;;  %2100 = vrot.lane.b32.xlu1 %v4134_v31, %s4723_s5 }
 0xa12   :  { %v4382_v23 = vsel %vm4734_vm14, %v2115_v20, %v2117_v21  ;;  %2129 = vst.msk [vmem:[#allocation5 + $0x208] sm:$0xff] %vm1828_vm12, %v2117_v21  ;;  %vm4737_vm14 = vcmask 891904  }
 0xa13   :  { %2102 = vrot.lane.b32.xlu0 %v4138_v32, %s4723_s5  ;;  %v2133_v37 = vpop.permute.xlu1 %2132 }
 0xa15   :  { %v2135_v25 = vpop.permute.xlu0 %2134  ;;  %2118 = vrot.lane.b32.xlu1 %v4134_v31, %s4724_s6 }
 0xa16   :  { %v4392_v3 = vsel %vm4735_vm15, %v2133_v37, %v2135_v25  ;;  %2147 = vst.msk [vmem:[#allocation5 + $0x228] sm:$0xff] %vm1828_vm12, %v2135_v25  ;;  %vm4738_vm15 = vcmask 883712   ;;  %v2519_v37 = vld [vmem:[%s4658_s13] sm:$0xf] }
 0xa17   :  { %2120 = vrot.lane.b32.xlu0 %v4138_v32, %s4724_s6  ;;  %v2151_v26 = vpop.permute.xlu1 %2150 }
 0xa19   :  { %v2153_v27 = vpop.permute.xlu0 %2152  ;;  %2136 = vrot.lane.b32.xlu1 %v4134_v31, %s4725_s1 }
 0xa1a   :  { %v4400_v28 = vsel %vm4736_vm3, %v2151_v26, %v2153_v27  ;;  %2165 = vst.msk [vmem:[#allocation5 + $0x248] sm:$0xff] %vm1828_vm12, %v2153_v27  ;;  %vm2212_vm3 = vcmask 875520  }
 0xa1b   :  { %2138 = vrot.lane.b32.xlu0 %v4138_v32, %s4725_s1  ;;  %v2169_v29 = vpop.permute.xlu1 %2168 }
 0xa1d   :  { %v2171_v30 = vpop.permute.xlu0 %2170  ;;  %2154 = vrot.lane.b32.xlu1 %v4134_v31, %s4726_s19 }
 0xa1e   :  { %v4408_v33 = vsel %vm4737_vm14, %v2169_v29, %v2171_v30  ;;  %2183 = vst.msk [vmem:[#allocation5 + $0x268] sm:$0xff] %vm1828_vm12, %v2171_v30  ;;  %vm2231_vm14 = vcmask 867328   ;;  %v2400_v30 = vld [vmem:[#allocation5 + $0x28] sm:$0xff] }
 0xa1f   :  { %2156 = vrot.lane.b32.xlu0 %v4138_v32, %s4726_s19  ;;  %v2187_v34 = vpop.permute.xlu1 %2186 }
 0xa21   :  { %v2189_v35 = vpop.permute.xlu0 %2188  ;;  %2172 = vrot.lane.b32.xlu1 %v4134_v31, %s4727_s23 }
 0xa22   :  { %v4416_v36 = vsel %vm4738_vm15, %v2187_v34, %v2189_v35  ;;  %2201 = vst.msk [vmem:[#allocation5 + $0x288] sm:$0xff] %vm1828_vm12, %v2189_v35  ;;  %vm4707_vm15 = vcmask 859136  }
 0xa23   :  { %2174 = vrot.lane.b32.xlu0 %v4138_v32, %s4727_s23  ;;  %v2205_v38 = vpop.permute.xlu1 %2204 }
 0xa25   :  { %v2207_v39 = vpop.permute.xlu0 %2206  ;;  %2190 = vrot.lane.b32.xlu1 %v4134_v31, %s4728_s20 }
 0xa26   :  { %v4424_v42 = vsel %vm2212_vm3, %v2205_v38, %v2207_v39  ;;  %2220 = vst.msk [vmem:[#allocation5 + $0x2a8] sm:$0xff] %vm1828_vm12, %v2207_v39 }
 0xa27   :  { %2192 = vrot.lane.b32.xlu0 %v4138_v32, %s4728_s20  ;;  %v2224_v43 = vpop.permute.xlu1 %2223 }
 0xa29   :  { %v2226_v45 = vpop.permute.xlu0 %2225  ;;  %2208 = vrot.lane.b32.xlu1 %v4134_v31, %s3406_s30 }
 0xa2a   :  { %v4432_v46 = vsel %vm2231_vm14, %v2224_v43, %v2226_v45  ;;  %2239 = vst.msk [vmem:[#allocation5 + $0x2c8] sm:$0xff] %vm1828_vm12, %v2226_v45  ;;  %v2404_v45 = vld [vmem:[#allocation5 + $0x48] sm:$0xff] }
 0xa2b   :  { %2210 = vrot.lane.b32.xlu0 %v4138_v32, %s3406_s30  ;;  %v2243_v49 = vpop.permute.xlu1 %2242 }
 0xa2d   :  { %v2245_v50 = vpop.permute.xlu0 %2244  ;;  %2227 = vrot.lane.b32.xlu1 %v4134_v31, %s3407_s11 }
 0xa2e   :  { %v4440_v52 = vsel %vm4707_vm15, %v2243_v49, %v2245_v50  ;;  %2258 = vst.msk [vmem:[#allocation5 + $0x2e8] sm:$0xff] %vm1828_vm12, %v2245_v50  ;;  %vm4708_vm15 = vcmask 842752  }
 0xa2f   :  { %2229 = vrot.lane.b32.xlu0 %v4138_v32, %s3407_s11  ;;  %v2262_v53 = vpop.permute.xlu1 %2261 }
 0xa31   :  { %v2264_v55 = vpop.permute.xlu0 %2263  ;;  %2246 = vrot.lane.b32.xlu1 %v4134_v31, %s4739_s26 }
 0xa32   :  { %v4448_v41 = vsel %vm2269_vm13, %v2262_v53, %v2264_v55  ;;  %2277 = vst.msk [vmem:[#allocation5 + $0x308] sm:$0xff] %vm1828_vm12, %v2264_v55 }
 0xa33   :  { %2248 = vrot.lane.b32.xlu0 %v4138_v32, %s4739_s26  ;;  %v2281_v48 = vpop.permute.xlu1 %2280 }
 0xa35   :  { %v2283_v57 = vpop.permute.xlu0 %2282  ;;  %2265 = vrot.lane.b32.xlu1 %v4134_v31, %s4740_s27 }
 0xa36   :  { %v4456_v59 = vsel %vm4708_vm15, %v2281_v48, %v2283_v57  ;;  %2296 = vst.msk [vmem:[#allocation5 + $0x328] sm:$0xff] %vm1828_vm12, %v2283_v57  ;;  %vm4710_vm15 = vcmask 826368  }
 0xa37   :  { %2267 = vrot.lane.b32.xlu0 %v4138_v32, %s4740_s27  ;;  %v2300_v60 = vpop.permute.xlu1 %2299 }
 0xa39   :  { %v2302_v62 = vpop.permute.xlu0 %2301  ;;  %2284 = vrot.lane.b32.xlu1 %v4134_v31, %s4741_s28 }
 0xa3a   :  { %v4464_v63 = vsel %vm4709_vm0, %v2300_v60, %v2302_v62  ;;  %2314 = vst.msk [vmem:[#allocation5 + $0x348] sm:$0xff] %vm1828_vm12, %v2302_v62  ;;  %vm4711_vm0 = vcmask 818176   ;;  %v2408_v60 = vld [vmem:[#allocation5 + $0x68] sm:$0xff] }
 0xa3b   :  { %2286 = vrot.lane.b32.xlu0 %v4138_v32, %s4741_s28  ;;  %v2318_v1 = vpop.permute.xlu1 %2317 }
 0xa3d   :  { %v2320_v2 = vpop.permute.xlu0 %2319  ;;  %2303 = vrot.lane.b32.xlu1 %v4134_v31, %s4742_s29 }
 0xa3e   :  { %v4472_v5 = vsel %vm4710_vm15, %v2318_v1, %v2320_v2  ;;  %2333 = vst.msk [vmem:[#allocation5 + $0x368] sm:$0xff] %vm1828_vm12, %v2320_v2  ;;  %vm2363_vm15 = vcmask 809984  }
 0xa3f   :  { %2305 = vrot.lane.b32.xlu0 %v4138_v32, %s4742_s29  ;;  %v2337_v6 = vpop.permute.xlu1 %2336 }
 0xa41   :  { %v2339_v8 = vpop.permute.xlu0 %2338  ;;  %2321 = vrot.lane.b32.xlu1 %v4134_v31, %s3412_s21 }
 0xa42   :  { %v4480_v9 = vsel %vm4711_vm0, %v2337_v6, %v2339_v8  ;;  %2352 = vst.msk [vmem:[#allocation5 + $0x388] sm:$0xff] %vm1828_vm12, %v2339_v8  ;;  %vm2382_vm0 = vcmask 801792  }
 0xa43   :  { %2323 = vrot.lane.b32.xlu0 %v4138_v32, %s3412_s21  ;;  %v2356_v11 = vpop.permute.xlu1 %2355 }
 0xa45   :  { %v2358_v12 = vpop.permute.xlu0 %2357  ;;  %2340 = vrot.lane.b32.xlu1 %v4134_v31, %s3413_s17 }
 0xa46   :  { %v4488_v15 = vsel %vm2363_vm15, %v2356_v11, %v2358_v12  ;;  %2371 = vst.msk [vmem:[#allocation5 + $0x3a8] sm:$0xff] %vm1828_vm12, %v2358_v12  ;;  %v2412_v11 = vld [vmem:[#allocation5 + $0x88] sm:$0xff] }
 0xa47   :  { %2342 = vrot.lane.b32.xlu0 %v4138_v32, %s3413_s17  ;;  %v2375_v16 = vpop.permute.xlu1 %2374 }
 0xa49   :  { %v2377_v18 = vpop.permute.xlu0 %2376  ;;  %2359 = vrot.lane.b32.xlu1 %v4134_v31, %s3414_s2 }
 0xa4a   :  { %v4496_v14 = vsel %vm2382_vm0, %v2375_v16, %v2377_v18  ;;  %2390 = vst.msk [vmem:[#allocation5 + $0x3c8] sm:$0xff] %vm1828_vm12, %v2377_v18 }
 0xa4b   :  { %2361 = vrot.lane.b32.xlu0 %v4138_v32, %s3414_s2  ;;  %v1849_v20 = vpop.permute.xlu1 %1848 }
 0xa4d   :  { %v1851_v21 = vpop.permute.xlu0 %1850  ;;  %2378 = vrot.lane.b32.xlu1 %v4134_v31, %s3415_s10 }
 0xa4e   :  { %v1853_v24 = vsel %vm64_vm2, %v1849_v20, %v1851_v21  ;;  %1861 = vst.msk [vmem:[#allocation5 + $0x38] sm:$0xff] %vm1828_vm12, %v1851_v21  ;;  %vm4744_vm2 = vcmask 949248  }
 0xa4f   :  { %2380 = vrot.lane.b32.xlu0 %v4138_v32, %s3415_s10  ;;  %v1867_v25 = vpop.permute.xlu1 %1866  ;;  %v3129_v43 = vpack.c.bf16 %v1853_v24, %v4257_v40  ;;  %v2416_v24 = vld [vmem:[#allocation5 + $0xa8] sm:$0xff] }
 0xa51   :  { %v1869_v26 = vpop.permute.xlu0 %1868  ;;  %2522 = vperm.xlu1 %3300, %v2519_v37  }
 0xa52   :  { %v1871_v27 = vsel %vm75_vm1, %v1867_v25, %v1869_v26  ;;  %1879 = vst.msk [vmem:[#allocation5 + $0x58] sm:$0xff] %vm1828_vm12, %v1869_v26  ;;  %vm4743_vm1 = vcmask 957440  }
 0xa53   :  { %v1885_v29 = vpop.permute.xlu1 %1884  ;;  %v3133_v48 = vpack.c.bf16 %v1871_v27, %v4265_v44 }
 0xa55   :  { %v1887_v31 = vpop.permute.xlu0 %1886  ;;  %v2402_v34 = vld [vmem:[#allocation5 + $0x38] sm:$0xff] }
 0xa56   :  { %v1889_v35 = vsel %vm85_vm4, %v1885_v29, %v1887_v31  ;;  %1897 = vst.msk [vmem:[#allocation5 + $0x78] sm:$0xff] %vm1828_vm12, %v1887_v31  ;;  %v3127_v38 = vpack.c.bf16 %v2402_v34, %v2400_v30  ;;  %v2420_v31 = vld [vmem:[#allocation5 + $0xc8] sm:$0xff]  ;;  %vm4745_vm4 = vcmask 941056  }
 0xa57   :  { %v1903_v39 = vpop.permute.xlu1 %1902  ;;  %v3137_v6 = vpack.c.bf16 %v1889_v35, %v4273_v47 }
 0xa58   :  { %3128 = vmatprep.subr.bf16.mxu0 %v3127_v38 }
 0xa59   :  { %v1905_v32 = vpop.permute.xlu0 %1904  ;;  %3130 = vmatpush1.bf16.msra.mxu0 %v3129_v43  ;;  %v2406_v49 = vld [vmem:[#allocation5 + $0x58] sm:$0xff]  ;;  %v2424_v43 = vld [vmem:[#allocation5 + $0xe8] sm:$0xff] }
 0xa5a   :  { %v1907_v50 = vsel %vm95_vm5, %v1903_v39, %v1905_v32  ;;  %1915 = vst.msk [vmem:[#allocation5 + $0x98] sm:$0xff] %vm1828_vm12, %v1905_v32  ;;  %v3131_v53 = vpack.c.bf16 %v2406_v49, %v2404_v45  ;;  %vm4746_vm5 = vcmask 932864  }
 0xa5b   :  { %v1921_v55 = vpop.permute.xlu1 %1920  ;;  %v3141_v20 = vpack.c.bf16 %v1907_v50, %v4281_v51 }
 0xa5c   :  { %3132 = vmatprep.subr.bf16.mxu0 %v3131_v53 }
 0xa5d   :  { %v1923_v57 = vpop.permute.xlu0 %1922  ;;  %3134 = vmatpush1.bf16.msra.mxu0 %v3133_v48  ;;  %v2410_v62 = vld [vmem:[#allocation5 + $0x78] sm:$0xff] }
 0xa5e   :  { %v1925_v40 = vsel %vm105_vm6, %v1921_v55, %v1923_v57  ;;  %1933 = vst.msk [vmem:[#allocation5 + $0xb8] sm:$0xff] %vm1828_vm12, %v1923_v57  ;;  %v3135_v1 = vpack.c.bf16 %v2410_v62, %v2408_v60  ;;  %v2428_v55 = vld [vmem:[#allocation5 + $0x108] sm:$0xff]  ;;  %vm4747_vm6 = vcmask 924672  }
 0xa5f   :  { %v1939_v2 = vpop.permute.xlu1 %1938  ;;  %v3145_v27 = vpack.c.bf16 %v1925_v40, %v4289_v54 }
 0xa60   :  { %3136 = vmatprep.subr.bf16.mxu0 %v3135_v1  ;;  %v2432_v1 = vld [vmem:[#allocation5 + $0x128] sm:$0xff] }
 0xa61   :  { %v1941_v8 = vpop.permute.xlu0 %1940  ;;  %3138 = vmatpush1.bf16.msra.mxu0 %v3137_v6  ;;  %v2414_v12 = vld [vmem:[#allocation5 + $0x98] sm:$0xff] }
 0xa62   :  { %v1943_v44 = vsel %vm115_vm7, %v1939_v2, %v1941_v8  ;;  %1951 = vst.msk [vmem:[#allocation5 + $0xd8] sm:$0xff] %vm1828_vm12, %v1941_v8  ;;  %v3139_v16 = vpack.c.bf16 %v2414_v12, %v2412_v11  ;;  %vm4748_vm7 = vcmask 916480  }
 0xa63   :  { %v1957_v18 = vpop.permute.xlu1 %1956  ;;  %v3149_v38 = vpack.c.bf16 %v1943_v44, %v4297_v56  ;;  %v2436_v44 = vld [vmem:[#allocation5 + $0x148] sm:$0xff] }
 0xa64   :  { %3140 = vmatprep.subr.bf16.mxu0 %v3139_v16 }
 0xa65   :  { %v1959_v21 = vpop.permute.xlu0 %1958  ;;  %3142 = vmatpush1.bf16.msra.mxu0 %v3141_v20  ;;  %v2418_v37 = vld [vmem:[#allocation5 + $0xb8] sm:$0xff] }
 0xa66   :  { %v1961_v47 = vsel %vm125_vm8, %v1957_v18, %v1959_v21  ;;  %1969 = vst.msk [vmem:[#allocation5 + $0xf8] sm:$0xff] %vm1828_vm12, %v1959_v21  ;;  %v3143_v25 = vpack.c.bf16 %v2418_v37, %v2416_v24  ;;  %v2440_v37 = vld [vmem:[#allocation5 + $0x168] sm:$0xff]  ;;  %vm4749_vm8 = vcmask 908288  }
 0xa67   :  { %v1975_v26 = vpop.permute.xlu1 %1974  ;;  %v3153_v50 = vpack.c.bf16 %v1961_v47, %v4305_v58 }
 0xa68   :  { %3144 = vmatprep.subr.bf16.mxu0 %v3143_v25 }
 0xa69   :  { %v1977_v29 = vpop.permute.xlu0 %1976  ;;  %3146 = vmatpush1.bf16.msra.mxu0 %v3145_v27  ;;  %v2422_v30 = vld [vmem:[#allocation5 + $0xd8] sm:$0xff] }
 0xa6a   :  { %v1979_v51 = vsel %vm135_vm9, %v1975_v26, %v1977_v29  ;;  %1987 = vst.msk [vmem:[#allocation5 + $0x118] sm:$0xff] %vm1828_vm12, %v1977_v29  ;;  %v3147_v34 = vpack.c.bf16 %v2422_v30, %v2420_v31  ;;  %v2444_v31 = vld [vmem:[#allocation5 + $0x188] sm:$0xff]  ;;  %vm4750_vm9 = vcmask 900096  }
 0xa6b   :  { %v1993_v35 = vpop.permute.xlu1 %1992  ;;  %v3157_v62 = vpack.c.bf16 %v1979_v51, %v4313_v61 }
 0xa6c   :  { %3148 = vmatprep.subr.bf16.mxu0 %v3147_v34 }
 0xa6d   :  { %v1995_v39 = vpop.permute.xlu0 %1994  ;;  %3150 = vmatpush1.bf16.msra.mxu0 %v3149_v38  ;;  %v2426_v32 = vld [vmem:[#allocation5 + $0xf8] sm:$0xff] }
 0xa6e   :  { %v1997_v54 = vsel %vm145_vm10, %v1993_v35, %v1995_v39  ;;  %2005 = vst.msk [vmem:[#allocation5 + $0x138] sm:$0xff] %vm1828_vm12, %v1995_v39  ;;  %v3151_v45 = vpack.c.bf16 %v2426_v32, %v2424_v43  ;;  %v2448_v39 = vld [vmem:[#allocation5 + $0x1a8] sm:$0xff]  ;;  %vm4751_vm10 = vmmov %vm4748_vm7 }
 0xa6f   :  { %v2011_v49 = vpop.permute.xlu1 %2010  ;;  %v3161_v11 = vpack.c.bf16 %v1997_v54, %v4321_v0 }
 0xa70   :  { %3152 = vmatprep.subr.bf16.mxu0 %v3151_v45 }
 0xa71   :  { %v2013_v53 = vpop.permute.xlu0 %2012  ;;  %3154 = vmatpush1.bf16.msra.mxu0 %v3153_v50  ;;  %v2430_v48 = vld [vmem:[#allocation5 + $0x118] sm:$0xff]  ;;  %v2452_v50 = vld [vmem:[#allocation5 + $0x1c8] sm:$0xff] }
 0xa72   :  { %v2015_v56 = vsel %vm155_vm11, %v2011_v49, %v2013_v53  ;;  %2023 = vst.msk [vmem:[#allocation5 + $0x158] sm:$0xff] %vm1828_vm12, %v2013_v53  ;;  %v3155_v57 = vpack.c.bf16 %v2430_v48, %v2428_v55  ;;  %vm4752_vm11 = vcmask 891904  }
 0xa73   :  { %v2029_v60 = vpop.permute.xlu1 %2028  ;;  %v3165_v21 = vpack.c.bf16 %v2015_v56, %v4329_v4 }
 0xa74   :  { %3156 = vmatprep.subr.bf16.mxu0 %v3155_v57 }
 0xa75   :  { %v2031_v40 = vpop.permute.xlu0 %2030  ;;  %3158 = vmatpush1.bf16.msra.mxu0 %v3157_v62  ;;  %v2434_v2 = vld [vmem:[#allocation5 + $0x138] sm:$0xff] }
 0xa76   :  { %v2033_v58 = vsel %vm4743_vm1, %v2029_v60, %v2031_v40  ;;  %2041 = vst.msk [vmem:[#allocation5 + $0x178] sm:$0xff] %vm1828_vm12, %v2031_v40  ;;  %v3159_v6 = vpack.c.bf16 %v2434_v2, %v2432_v1  ;;  %v2456_v60 = vld [vmem:[#allocation5 + $0x1e8] sm:$0xff]  ;;  %vm4753_vm1 = vcmask 883712  }
 0xa77   :  { %v2047_v8 = vpop.permute.xlu1 %2046  ;;  %v3169_v27 = vpack.c.bf16 %v2033_v58, %v4337_v7  ;;  %v4559_v1 = vld [vmem:[%s4657_s12 + $0x8] sm:$0xff]  ;;  %s3416_s12 = smov [#allocation10]  }
 0xa78   :  { %3160 = vmatprep.subr.bf16.mxu0 %v3159_v6  ;;  %v2460_v6 = vld [vmem:[#allocation5 + $0x208] sm:$0xff]  ;;  %s2697_s9 = sshll.u32 %s3416_s12, 4  ;;  %s2698_s9 = int_to_ptr.vmem [resolvable:$true] %s2697_s9 }
 0xa79   :  { %v2049_v12 = vpop.permute.xlu0 %2048  ;;  %3162 = vmatpush1.bf16.msra.mxu0 %v3161_v11  ;;  %v2438_v16 = vld [vmem:[#allocation5 + $0x158] sm:$0xff]  ;;  %v2528_v11 = vcombine.high %v4559_v1, %v4559_v1  ;;  %s3308_s18 = scalar_lea.vmem %s2698_s9, 16  ;;  %s3312_s8 = scalar_lea.vmem %s2698_s9, 32 }
 0xa7a   :  { %v2051_v61 = vsel %vm4744_vm2, %v2047_v8, %v2049_v12  ;;  %2059 = vst.msk [vmem:[#allocation5 + $0x198] sm:$0xff] %vm1828_vm12, %v2049_v12  ;;  %v3163_v18 = vpack.c.bf16 %v2438_v16, %v2436_v44  ;;  %vm4757_vm2 = vcmask 826368   ;;  %p3309_p0 = scmp.ne.s32.totalorder %s2698_s9, %s3308_s18  ;;  %p3313_p1 = scmp.lt.s32.totalorder %s2698_s9, %s2698_s9 }
 0xa7b   :  { %v2065_v20 = vpop.permute.xlu1 %2064  ;;  %v3173_v35 = vpack.c.bf16 %v2051_v61, %v4345_v10  ;;  %p3314_p2 = scmp.lt.s32.totalorder %s3312_s8, %s3308_s18 }
 0xa7c   :  { %3164 = vmatprep.subr.bf16.mxu0 %v3163_v18  ;;  %v2464_v18 = vld [vmem:[#allocation5 + $0x228] sm:$0xff] }
 0xa7d   :  { %v2067_v24 = vpop.permute.xlu0 %2066  ;;  %3166 = vmatpush1.bf16.msra.mxu0 %v3165_v21  ;;  %v2442_v47 = vld [vmem:[#allocation5 + $0x178] sm:$0xff]  ;;  %p3315_p3 = por %p3314_p2, %p3313_p1 }
 0xa7e   :  { %v2069_v0 = vsel %vm4745_vm4, %v2065_v20, %v2067_v24  ;;  %2077 = vst.msk [vmem:[#allocation5 + $0x1b8] sm:$0xff] %vm1828_vm12, %v2067_v24  ;;  %v3167_v25 = vpack.c.bf16 %v2442_v47, %v2440_v37  ;;  %vm4758_vm4 = vcmask 818176  }
 0xa7f   :  { %v2083_v26 = vpop.permute.xlu1 %2082  ;;  %v3177_v45 = vpack.c.bf16 %v2069_v0, %v4353_v13  ;;  %p3316_p4 = pnand %p3315_p3, %p3309_p0 }
 0xa80   :  { %3168 = vmatprep.subr.bf16.mxu0 %v3167_v25 }
 0xa81   :  { %v2085_v29 = vpop.permute.xlu0 %2084  ;;  %3170 = vmatpush1.bf16.msra.mxu0 %v3169_v27  ;;  %v2446_v30 = vld [vmem:[#allocation5 + $0x198] sm:$0xff] }
 0xa82   :  { %v2087_v4 = vsel %vm4746_vm5, %v2083_v26, %v2085_v29  ;;  %2095 = vst.msk [vmem:[#allocation5 + $0x1d8] sm:$0xff] %vm1828_vm12, %v2085_v29  ;;  %v3171_v51 = vpack.c.bf16 %v2446_v30, %v2444_v31  ;;  %v2472_v30 = vld [vmem:[#allocation5 + $0x268] sm:$0xff] }
 0xa83   :  { %v2101_v34 = vpop.permute.xlu1 %2100  ;;  %v3181_v56 = vpack.c.bf16 %v2087_v4, %v4361_v17 }
 0xa84   :  { %3172 = vmatprep.subr.bf16.mxu0 %v3171_v51 }
 0xa85   :  { %v2103_v38 = vpop.permute.xlu0 %2102  ;;  %3174 = vmatpush1.bf16.msra.mxu0 %v3173_v35  ;;  %v2450_v43 = vld [vmem:[#allocation5 + $0x1b8] sm:$0xff] }
 0xa86   :  { %v2105_v7 = vsel %vm4747_vm6, %v2101_v34, %v2103_v38  ;;  %2113 = vst.msk [vmem:[#allocation5 + $0x1f8] sm:$0xff] %vm1828_vm12, %v2103_v38  ;;  %v3175_v32 = vpack.c.bf16 %v2450_v43, %v2448_v39  ;;  %v2476_v39 = vld [vmem:[#allocation5 + $0x288] sm:$0xff] }
 0xa87   :  { %v2119_v54 = vpop.permute.xlu1 %2118  ;;  %v3185_v58 = vpack.c.bf16 %v2105_v7, %v4369_v19 }
 0xa88   :  { %3176 = vmatprep.subr.bf16.mxu0 %v3175_v32 }
 0xa89   :  { %v2121_v49 = vpop.permute.xlu0 %2120  ;;  %3178 = vmatpush1.bf16.msra.mxu0 %v3177_v45  ;;  %v2454_v53 = vld [vmem:[#allocation5 + $0x1d8] sm:$0xff] }
 0xa8a   :  { %v2123_v10 = vsel %vm4748_vm7, %v2119_v54, %v2121_v49  ;;  %2131 = vst.msk [vmem:[#allocation5 + $0x218] sm:$0xff] %vm1828_vm12, %v2121_v49  ;;  %v3179_v55 = vpack.c.bf16 %v2454_v53, %v2452_v50  ;;  %v2480_v49 = vld [vmem:[#allocation5 + $0x2a8] sm:$0xff] }
 0xa8b   :  { %v2137_v48 = vpop.permute.xlu1 %2136  ;;  %v3189_v61 = vpack.c.bf16 %v2123_v10, %v4382_v23  ;;  %v2468_v23 = vld [vmem:[#allocation5 + $0x248] sm:$0xff] }
 0xa8c   :  { %3180 = vmatprep.subr.bf16.mxu0 %v3179_v55 }
 0xa8d   :  { %v2139_v57 = vpop.permute.xlu0 %2138  ;;  %3182 = vmatpush1.bf16.msra.mxu0 %v3181_v56  ;;  %v2458_v62 = vld [vmem:[#allocation5 + $0x1f8] sm:$0xff]  ;;  %v2484_v56 = vld [vmem:[#allocation5 + $0x2c8] sm:$0xff] }
 0xa8e   :  { %v2141_v13 = vsel %vm4749_vm8, %v2137_v48, %v2139_v57  ;;  %2149 = vst.msk [vmem:[#allocation5 + $0x238] sm:$0xff] %vm1828_vm12, %v2139_v57  ;;  %v3183_v40 = vpack.c.bf16 %v2458_v62, %v2456_v60 }
 0xa8f   :  { %v2155_v2 = vpop.permute.xlu1 %2154  ;;  %v3193_v47 = vpack.c.bf16 %v2141_v13, %v4392_v3 }
 0xa90   :  { %3184 = vmatprep.subr.bf16.mxu0 %v3183_v40 }
 0xa91   :  { %v2157_v17 = vpop.permute.xlu0 %2156  ;;  %3186 = vmatpush1.bf16.msra.mxu0 %v3185_v58  ;;  %v2462_v8 = vld [vmem:[#allocation5 + $0x218] sm:$0xff] }
 0xa92   :  { %v2159_v12 = vsel %vm4750_vm9, %v2155_v2, %v2157_v17  ;;  %2167 = vst.msk [vmem:[#allocation5 + $0x258] sm:$0xff] %vm1828_vm12, %v2157_v17  ;;  %v3187_v44 = vpack.c.bf16 %v2462_v8, %v2460_v6  ;;  %v2488_v2 = vld [vmem:[#allocation5 + $0x2e8] sm:$0xff] }
 0xa93   :  { %v2173_v16 = vpop.permute.xlu1 %2172  ;;  %v3197_v29 = vpack.c.bf16 %v2159_v12, %v4400_v28  ;;  %v2492_v12 = vld [vmem:[#allocation5 + $0x308] sm:$0xff] }
 0xa94   :  { %3188 = vmatprep.subr.bf16.mxu0 %v3187_v44  ;;  %2597 = vmatmul.mubr.f32.vlgmr.msra.gmra.mrb[14].mxu0 %v4379_v22 }
 0xa95   :  { %v2175_v19 = vpop.permute.xlu0 %2174  ;;  %3190 = vmatpush1.bf16.msra.mxu0 %v3189_v61  ;;  %v2466_v20 = vld [vmem:[#allocation5 + $0x238] sm:$0xff]  ;;  %2806 = vmatprep.mubr.msk.f32.mxu0 %vm4751_vm10, %v2528_v11 }
 0xa96   :  { %v2177_v21 = vsel %vm4752_vm11, %v2173_v16, %v2175_v19  ;;  %2185 = vst.msk [vmem:[#allocation5 + $0x278] sm:$0xff] %vm1828_vm12, %v2175_v19  ;;  %v3191_v24 = vpack.c.bf16 %v2466_v20, %v2464_v18  ;;  %v2496_v20 = vld [vmem:[#allocation5 + $0x328] sm:$0xff] }
 0xa97   :  { %v2191_v37 = vpop.permute.xlu1 %2190  ;;  %v3201_v35 = vpack.c.bf16 %v2177_v21, %v4408_v33 }
 0xa98   :  { %3192 = vmatprep.subr.bf16.mxu0 %v3191_v24 }
 0xa99   :  { %v2193_v0 = vpop.permute.xlu0 %2192  ;;  %3194 = vmatpush1.bf16.msra.mxu0 %v3193_v47  ;;  %v2470_v25 = vld [vmem:[#allocation5 + $0x258] sm:$0xff] }
 0xa9a   :  { %v2195_v22 = vsel %vm4753_vm1, %v2191_v37, %v2193_v0  ;;  %2203 = vst.msk [vmem:[#allocation5 + $0x298] sm:$0xff] %vm1828_vm12, %v2193_v0  ;;  %v3195_v26 = vpack.c.bf16 %v2470_v25, %v2468_v23  ;;  %v2500_v23 = vld [vmem:[#allocation5 + $0x348] sm:$0xff] }
 0xa9b   :  { %v2209_v27 = vpop.permute.xlu1 %2208  ;;  %v3205_v54 = vpack.c.bf16 %v2195_v22, %v4416_v36 }
 0xa9c   :  { %3196 = vmatprep.subr.bf16.mxu0 %v3195_v26 }
 0xa9d   :  { %v2211_v31 = vpop.permute.xlu0 %2210  ;;  %3198 = vmatpush1.bf16.msra.mxu0 %v3197_v29  ;;  %v2474_v4 = vld [vmem:[#allocation5 + $0x278] sm:$0xff] }
 0xa9e   :  { %v2214_v3 = vsel %vm2212_vm3, %v2209_v27, %v2211_v31  ;;  %2222 = vst.msk [vmem:[#allocation5 + $0x2b8] sm:$0xff] %vm1828_vm12, %v2211_v31  ;;  %v3199_v51 = vpack.c.bf16 %v2474_v4, %v2472_v30  ;;  %vm4754_vm3 = vcmask 859136   ;;  %v2504_v31 = vld [vmem:[#allocation5 + $0x368] sm:$0xff] }
 0xa9f   :  { %v2228_v34 = vpop.permute.xlu1 %2227  ;;  %v3209_v55 = vpack.c.bf16 %v2214_v3, %v4424_v42 }
 0xaa0   :  { %3200 = vmatprep.subr.bf16.mxu0 %v3199_v51 }
 0xaa1   :  { %v2230_v38 = vpop.permute.xlu0 %2229  ;;  %3202 = vmatpush1.bf16.msra.mxu0 %v3201_v35  ;;  %v2478_v43 = vld [vmem:[#allocation5 + $0x298] sm:$0xff]  ;;  %v2508_v35 = vld [vmem:[#allocation5 + $0x388] sm:$0xff] }
 0xaa2   :  { %v2233_v28 = vsel %vm2231_vm14, %v2228_v34, %v2230_v38  ;;  %2241 = vst.msk [vmem:[#allocation5 + $0x2d8] sm:$0xff] %vm1828_vm12, %v2230_v38  ;;  %v3203_v7 = vpack.c.bf16 %v2478_v43, %v2476_v39  ;;  %vm4755_vm14 = vcmask 842752  }
 0xaa3   :  { %v2247_v32 = vpop.permute.xlu1 %2246  ;;  %v3213_v13 = vpack.c.bf16 %v2233_v28, %v4432_v46  ;;  %v2512_v28 = vld [vmem:[#allocation5 + $0x3a8] sm:$0xff] }
 0xaa4   :  { %3204 = vmatprep.subr.bf16.mxu0 %v3203_v7 }
 0xaa5   :  { %v2249_v45 = vpop.permute.xlu0 %2248  ;;  %3206 = vmatpush1.bf16.msra.mxu0 %v3205_v54  ;;  %v2482_v50 = vld [vmem:[#allocation5 + $0x2b8] sm:$0xff]  ;;  %v2516_v54 = vld [vmem:[#allocation5 + $0x3c8] sm:$0xff] }
 0xaa6   :  { %v2252_v33 = vsel %vm4754_vm3, %v2247_v32, %v2249_v45  ;;  %2260 = vst.msk [vmem:[#allocation5 + $0x2f8] sm:$0xff] %vm1828_vm12, %v2249_v45  ;;  %v3207_v53 = vpack.c.bf16 %v2482_v50, %v2480_v49 }
 0xaa7   :  { %v2266_v10 = vpop.permute.xlu1 %2265  ;;  %v3217_v8 = vpack.c.bf16 %v2252_v33, %v4440_v52 }
 0xaa8   :  { %3208 = vmatprep.subr.bf16.mxu0 %v3207_v53 }
 0xaa9   :  { %v2268_v48 = vpop.permute.xlu0 %2267  ;;  %3210 = vmatpush1.bf16.msra.mxu0 %v3209_v55  ;;  %v2486_v57 = vld [vmem:[#allocation5 + $0x2d8] sm:$0xff] }
 0xaaa   :  { %v2271_v36 = vsel %vm2269_vm13, %v2266_v10, %v2268_v48  ;;  %2279 = vst.msk [vmem:[#allocation5 + $0x318] sm:$0xff] %vm1828_vm12, %v2268_v48  ;;  %v3211_v60 = vpack.c.bf16 %v2486_v57, %v2484_v56  ;;  %vm4756_vm13 = vcmask 834560  }
 0xaab   :  { %v2285_v62 = vpop.permute.xlu1 %2284  ;;  %v3221_v19 = vpack.c.bf16 %v2271_v36, %v4448_v41 }
 0xaac   :  { %3212 = vmatprep.subr.bf16.mxu0 %v3211_v60 }
 0xaad   :  { %v2287_v40 = vpop.permute.xlu0 %2286  ;;  %3214 = vmatpush1.bf16.msra.mxu0 %v3213_v13  ;;  %v2490_v58 = vld [vmem:[#allocation5 + $0x2f8] sm:$0xff] }
 0xaae   :  { %v2290_v42 = vsel %vm4755_vm14, %v2285_v62, %v2287_v40  ;;  %2298 = vst.msk [vmem:[#allocation5 + $0x338] sm:$0xff] %vm1828_vm12, %v2287_v40  ;;  %v3215_v17 = vpack.c.bf16 %v2490_v58, %v2488_v2 }
 0xaaf   :  { %v2304_v6 = vpop.permute.xlu1 %2303  ;;  %v3225_v47 = vpack.c.bf16 %v2290_v42, %v4456_v59 }
 0xab0   :  { %3216 = vmatprep.subr.bf16.mxu0 %v3215_v17 }
 0xab1   :  { %v2306_v11 = vpop.permute.xlu0 %2305  ;;  %3218 = vmatpush1.bf16.msra.mxu0 %v3217_v8  ;;  %v2494_v44 = vld [vmem:[#allocation5 + $0x318] sm:$0xff] }
 0xab2   :  { %v2308_v46 = vsel %vm4756_vm13, %v2304_v6, %v2306_v11  ;;  %2316 = vst.msk [vmem:[#allocation5 + $0x358] sm:$0xff] %vm1828_vm12, %v2306_v11  ;;  %v3219_v16 = vpack.c.bf16 %v2494_v44, %v2492_v12 }
 0xab3   :  { %v2322_v61 = vpop.permute.xlu1 %2321  ;;  %v3229_v27 = vpack.c.bf16 %v2308_v46, %v4464_v63 }
 0xab4   :  { %3220 = vmatprep.subr.bf16.mxu0 %v3219_v16 }
 0xab5   :  { %v2324_v18 = vpop.permute.xlu0 %2323  ;;  %3222 = vmatpush1.bf16.msra.mxu0 %v3221_v19  ;;  %v2498_v21 = vld [vmem:[#allocation5 + $0x338] sm:$0xff] }
 0xab6   :  { %v2327_v52 = vsel %vm4757_vm2, %v2322_v61, %v2324_v18  ;;  %2335 = vst.msk [vmem:[#allocation5 + $0x378] sm:$0xff] %vm1828_vm12, %v2324_v18  ;;  %v3223_v24 = vpack.c.bf16 %v2498_v21, %v2496_v20 }
 0xab7   :  { %v2341_v37 = vpop.permute.xlu1 %2340  ;;  %v3233_v3 = vpack.c.bf16 %v2327_v52, %v4472_v5 }
 0xab8   :  { %3224 = vmatprep.subr.bf16.mxu0 %v3223_v24 }
 0xab9   :  { %v2343_v0 = vpop.permute.xlu0 %2342  ;;  %3226 = vmatpush1.bf16.msra.mxu0 %v3225_v47  ;;  %v2502_v25 = vld [vmem:[#allocation5 + $0x358] sm:$0xff] }
 0xaba   :  { %v2346_v41 = vsel %vm4758_vm4, %v2341_v37, %v2343_v0  ;;  %2354 = vst.msk [vmem:[#allocation5 + $0x398] sm:$0xff] %vm1828_vm12, %v2343_v0  ;;  %v3227_v22 = vpack.c.bf16 %v2502_v25, %v2500_v23 }
 0xabb   :  { %v2360_v26 = vpop.permute.xlu1 %2359  ;;  %v3237_v43 = vpack.c.bf16 %v2346_v41, %v4480_v9 }
 0xabc   :  { %3228 = vmatprep.subr.bf16.mxu0 %v3227_v22 }
 0xabd   :  { %v2362_v29 = vpop.permute.xlu0 %2361  ;;  %3230 = vmatpush1.bf16.msra.mxu0 %v3229_v27  ;;  %v2506_v30 = vld [vmem:[#allocation5 + $0x378] sm:$0xff] }
 0xabe   :  { %v2365_v59 = vsel %vm2363_vm15, %v2360_v26, %v2362_v29  ;;  %2373 = vst.msk [vmem:[#allocation5 + $0x3b8] sm:$0xff] %vm1828_vm12, %v2362_v29  ;;  %v3231_v4 = vpack.c.bf16 %v2506_v30, %v2504_v31 }
 0xabf   :  { %v2379_v51 = vpop.permute.xlu1 %2378  ;;  %v3241_v5 = vpack.c.bf16 %v2365_v59, %v4488_v15 }
 0xac0   :  { %3232 = vmatprep.subr.bf16.mxu0 %v3231_v4 }
 0xac1   :  { %v2381_v34 = vpop.permute.xlu0 %2380  ;;  %3234 = vmatpush1.bf16.msra.mxu0 %v3233_v3  ;;  %v2510_v38 = vld [vmem:[#allocation5 + $0x398] sm:$0xff] }
 0xac2   :  { %v2384_v63 = vsel %vm2382_vm0, %v2379_v51, %v2381_v34  ;;  %2392 = vst.msk [vmem:[#allocation5 + $0x3d8] sm:$0xff] %vm1828_vm12, %v2381_v34  ;;  %v3235_v39 = vpack.c.bf16 %v2510_v38, %v2508_v35 }
 0xac3   :  { %v3245_v50 = vpack.c.bf16 %v2384_v63, %v4496_v14 }
 0xac4   :  { %3236 = vmatprep.subr.bf16.mxu0 %v3235_v39 }
 0xac5   :  { %3238 = vmatpush1.bf16.msra.mxu0 %v3237_v43  ;;  %v2514_v7 = vld [vmem:[#allocation5 + $0x3b8] sm:$0xff] }
 0xac6   :  { %v3239_v32 = vpack.c.bf16 %v2514_v7, %v2512_v28 }
 0xac8   :  { %3240 = vmatprep.subr.bf16.mxu0 %v3239_v32 }
 0xac9   :  { %3242 = vmatpush1.bf16.msra.mxu0 %v3241_v5  ;;  %v2518_v45 = vld [vmem:[#allocation5 + $0x3d8] sm:$0xff] }
 0xaca   :  { %v3243_v49 = vpack.c.bf16 %v2518_v45, %v2516_v54 }
 0xacc   :  { %3244 = vmatprep.subr.bf16.mxu0 %v3243_v49 }
 0xacd   :  { %3246 = vmatpush1.bf16.msra.mxu0 %v3245_v50 }
 0xad0   :  { %2668 = vmatmul.mubr.f32.vlgmr.msra.gmra.mrb[14].mxu0 %v4559_v1 }
 0xad1   :  { %3319 = shalt.err (!%p3316_p4)
}
 0xad2   :  { %s3320_s5 = scalar_lea.hbm %s4660_s15, 16 }
 0xad3   :  { %p3321_p5 = scmp.ne.s32.totalorder %s4660_s15, %s3320_s5  ;;  %p3324_p6 = scmp.lt.u32.totalorder %s3320_s5, %s4660_s15 }
 0xad5   :  { %p3326_p7 = pnand %p3324_p6, %p3321_p5 }
 0xad7   :  { %3329 = shalt.err (!%p3326_p7)
}
 0xad8   :  { %2700 = dma.vmem_to_hbm [thread:$0]  %s2698_s9, 16, %s4660_s15, [#allocation11]  }
 0xad9   :  { %s3417_s11 = smov [#allocation12]  }
 0xada   :  { %s2707_s21 = sshll.u32 %s3417_s11, 4  ;;  %s2708_s21 = int_to_ptr.vmem [resolvable:$true] %s2707_s21 }
 0xadb   :  { %s3330_s17 = scalar_lea.vmem %s2708_s21, 16  ;;  %s3334_s2 = scalar_lea.vmem %s2708_s21, 32 }
 0xadc   :  { %p3331_p8 = scmp.ne.s32.totalorder %s2708_s21, %s3330_s17  ;;  %p3335_p9 = scmp.lt.s32.totalorder %s2708_s21, %s2708_s21 }
 0xadd   :  { %p3336_p10 = scmp.lt.s32.totalorder %s3334_s2, %s3330_s17 }
 0xadf   :  { %p3337_p11 = por %p3336_p10, %p3335_p9 }
 0xae1   :  { %p3338_p12 = pnand %p3337_p11, %p3331_p8 }
 0xae3   :  { %3341 = shalt.err (!%p3338_p12)
}
 0xae4   :  { %s3342_s25 = scalar_lea.hbm %s4661_s16, 16 }
 0xae5   :  { %p3343_p13 = scmp.ne.s32.totalorder %s4661_s16, %s3342_s25  ;;  %p3346_p0 = scmp.lt.u32.totalorder %s3342_s25, %s4661_s16 }
 0xae7   :  { %p3348_p1 = pnand %p3346_p0, %p3343_p13 }
 0xae9   :  { %3351 = shalt.err (!%p3348_p1)
}
 0xaea   :  { %2710 = dma.vmem_to_hbm [thread:$0]  %s2708_s21, 16, %s4661_s16, [#allocation11]   ;;  %v2523_v9 = vpop.permute.xlu1 %2522  ;;  %vm2678_vm0 = vcmask 588804   ;;  %vm4759_vm12 = vcmask 1043456  }
 0xaeb   :  { %s3418_s3 = smov [#allocation8]   ;;  %vm2679_vm15 = vmor %vm2678_vm0, %vm4759_vm12 }
 0xaec   :  { %s2687_s13 = sshll.u32 %s3418_s3, 4  ;;  %s2688_s13 = int_to_ptr.vmem [resolvable:$true] %s2687_s13 }
 0xaed   :  { %s3352_s22 = scalar_lea.vmem %s2688_s13, 128  ;;  %p3357_p3 = scmp.lt.s32.totalorder %s2688_s13, %s2688_s13 }
 0xaee   :  { %p3353_p2 = scmp.ne.s32.totalorder %s2688_s13, %s3352_s22  ;;  %p3358_p4 = scmp.lt.s32.totalorder %s3352_s22, %s3352_s22 }
 0xaf0   :  { %p3359_p5 = por %p3358_p4, %p3357_p3 }
 0xaf2   :  { %p3360_p6 = pnand %p3359_p5, %p3353_p2 }
 0xba3   :  { %v2669_v15 = vpop.f32.mrb[14].mxu0 }
 0xba4   :  { %v3248_v14 = vadd.f32 %v2669_v15, %v2523_v9  ;;  %v2671_v1 = vpop.f32.mrb[15].mxu0 }
 0xba5   :  { %v3249_v33 = vadd.f32 %v2671_v1, %v2523_v9 }
 0xba7   :  { %v2676_v53 = vcombine.low %v3248_v14, %v3249_v33 }
 0xba9   :  { %2680 = vst.msk [vmem:[#allocation8] sm:$0xff] %vm2679_vm15, %v2676_v53 }
 0xbaa   :  { %3363 = shalt.err (!%p3360_p6)
}
 0xbab   :  { %s3364_s9 = scalar_lea.hbm %s4659_s14, 128 }
 0xbac   :  { %p3365_p7 = scmp.ne.s32.totalorder %s4659_s14, %s3364_s9  ;;  %p3368_p8 = scmp.lt.u32.totalorder %s3364_s9, %s4659_s14 }
 0xbae   :  { %p3370_p9 = pnand %p3368_p8, %p3365_p7 }
 0xbb0   :  { %3373 = shalt.err (!%p3370_p9)
}
 0xbb1   :  { %2690 = dma.vmem_to_hbm [thread:$0]  %s2688_s13, 128, %s4659_s14, [#allocation9]  }
 0xbb2   :  { %3374 = dma.done.wait [#allocation9], 128  }
 0xbb3   :  { %3375 = vsyncadd [#allocation9], 4294967168 }
 0xbb4   :  { %3376 = dma.done.wait [#allocation11], 32  }
 0xbb5   :  { %3377 = vsyncadd [#allocation11], 4294967264 }
 0xbb6   :  { %2720 = vsyncpa [#allocation9], 1 }
 0xbb7   :  { %2721 = vsyncpa [#allocation11], 1 }

</bundles_post_ra>
